<compile_context>
chip_gen: v7x
topology: tpu7x:2x2x1
jax: 0.10.0
libtpu: 0.0.40
codegen_flags: <defaults>
</compile_context>

<pallas_src>
import jax
import jax.numpy as jnp
from jax import lax
from jax.experimental import pallas as pl
from jax.experimental.pallas import tpu as pltpu


# ----------------------------------------------------------------------------
# Single fused kernel: conv1 -> conv2 -> conv3 -> {policy head, value head}
# ----------------------------------------------------------------------------
def _net_fused_kernel(
    x_ref,                                   # (B, H, W, 3)  f32 input, NHWC
    w1_ref, b1_ref,                          # (27, 32)  bf16, (1, 32)  f32
    w2_ref, b2_ref,                          # (288, 64) bf16, (1, 64)  f32
    w3_ref, b3_ref,                          # (576,128) bf16, (1, 128) f32
    whT_ref, bh_ref,                         # (5, 128) f32, (5, 1) f32   fused 1x1 head convs
    wafc_ref, bafc_ref,                      # (3*HW, s2) f32, (1, s2)    policy fc
    wvfc1_ref, bvfc1_ref,                    # (2*HW, 64) f32, (1, 64)    value fc1
    wvfc2_ref, bvfc2_ref,                    # (64, 1) f32, (1, 1)        value fc2
    action_ref, value_ref,                   # (B, s2), (B, 1) outputs
    pad0_ref, col0_ref,                      # conv1 halo + im2col scratch
    pad1_ref, col1_ref,                      # conv2 halo + im2col scratch
    pad2_ref, col2_ref,                      # conv3 halo + im2col scratch
    aflat_ref, vflat_ref,                    # (B, 3*HW), (B, 2*HW) NCHW-flat head acts
):
    B, H, W, _ = x_ref.shape
    HW = H * W
    n_act = aflat_ref.shape[1] // HW          # 3 policy head channels
    n_val = vflat_ref.shape[1] // HW          # 2 value head channels

    def conv3x3_relu(x_val, pad_ref, col_ref, w_ref, b_ref):
        """3x3 'same' conv + bias + ReLU over the whole batch (im2col + 1 matmul).

        x_val: (B, H, W, Cin) f32 value.  Returns (B*HW, Cout) f32.
        """
        cin = x_val.shape[-1]
        # --- halo-only zeroing: the interior is fully overwritten below, so
        #     only the 1-pixel border of the pad scratch needs to be zeroed.
        zrow = jnp.zeros((B, 1, W + 2, cin), jnp.float32)
        zcol = jnp.zeros((B, H, 1, cin), jnp.float32)
        pad_ref[:, 0:1, :, :] = zrow
        pad_ref[:, H + 1:H + 2, :, :] = zrow
        pad_ref[:, 1:H + 1, 0:1, :] = zcol
        pad_ref[:, 1:H + 1, W + 1:W + 2, :] = zcol
        pad_ref[:, 1:H + 1, 1:W + 1, :] = x_val
        xp = pad_ref[...]
        # --- im2col: the 9 shifted windows land in contiguous lane blocks.
        for k in range(9):                     # static unroll over the 9 taps
            dy, dx = k // 3, k % 3
            col_ref[:, k * cin:(k + 1) * cin] = (
                xp[:, dy:dy + H, dx:dx + W, :].reshape(B * HW, cin))
        # --- ONE MXU matmul per layer: bf16 operands, f32 accumulation.
        acc = jnp.dot(col_ref[...].astype(jnp.bfloat16), w_ref[...],
                      preferred_element_type=jnp.float32)
        return jnp.maximum(acc + b_ref[...], 0.0)                            # (B*HW, Cout)

    t1 = conv3x3_relu(x_ref[...], pad0_ref, col0_ref, w1_ref, b1_ref)        # (B*HW, 32)
    t2 = conv3x3_relu(t1.reshape(B, H, W, t1.shape[-1]),
                      pad1_ref, col1_ref, w2_ref, b2_ref)                    # (B*HW, 64)
    t3 = conv3x3_relu(t2.reshape(B, H, W, t2.shape[-1]),
                      pad2_ref, col2_ref, w3_ref, b3_ref)                    # (B*HW, 128)

    # ---- fused 1x1 head convs (policy 3ch + value 2ch), transposed so each
    #      channel's spatial map is a lane-contiguous row: (5, B*HW).
    heads_t = lax.dot_general(whT_ref[...], t3, (((1,), (1,)), ((), ())),
                              preferred_element_type=jnp.float32)
    heads_t = jnp.maximum(heads_t + bh_ref[...], 0.0)                        # (5, B*HW)

    # ---- scatter into torch NCHW-flatten order (c*HW + hw) with cheap row
    #      stores, so the torch FC weights apply unchanged and every FC below
    #      is a single whole-batch matmul.
    for b in range(B):
        for c in range(n_act):
            aflat_ref[b:b + 1, c * HW:(c + 1) * HW] = \
                heads_t[c:c + 1, b * HW:(b + 1) * HW]
        for c in range(n_val):
            vflat_ref[b:b + 1, c * HW:(c + 1) * HW] = \
                heads_t[n_act + c:n_act + c + 1, b * HW:(b + 1) * HW]

    # ---- policy head FC: one (B, 3*HW) @ (3*HW, s2) matmul, one dense store.
    action = jnp.dot(aflat_ref[...], wafc_ref[...],
                     preferred_element_type=jnp.float32) + bafc_ref[...]
    action_ref[...] = action.astype(action_ref.dtype)

    # ---- value head: fc1 + ReLU + fc2 + tanh, whole batch at once.
    hid = jnp.maximum(jnp.dot(vflat_ref[...], wvfc1_ref[...],
                              preferred_element_type=jnp.float32) + bvfc1_ref[...], 0.0)
    val = jnp.tanh(jnp.dot(hid, wvfc2_ref[...],
                           preferred_element_type=jnp.float32) + bvfc2_ref[...])
    value_ref[...] = val.astype(value_ref.dtype)


# ----------------------------------------------------------------------------
# Wrapper (matches policy_value_net.Net.forward)
# ----------------------------------------------------------------------------
def net_forward(state_nchw, p):
    """state: (B, 3, size, size) NCHW -> (action (B, size^2), value (B, 1))."""
    x = jnp.transpose(state_nchw, (0, 2, 3, 1)).astype(jnp.float32)   # NCHW -> NHWC
    B, H, W, _ = x.shape
    HW = H * W
    s2 = p["wa_fc"].shape[1]

    # All weight reshapes / casts / concats below run once in XLA (free).
    conv_w = lambda w: w.reshape(-1, w.shape[-1]).astype(jnp.bfloat16)  # (9*Cin, Cout)
    row = lambda b: b.reshape(1, -1).astype(jnp.float32)

    w_heads_t = jnp.concatenate([p["wa_conv"], p["wv_conv"]], axis=1).T   # (5, 128)
    b_heads = jnp.concatenate([p["ba_conv"], p["bv_conv"]]).reshape(-1, 1)  # (5, 1)

    args = (
        x,
        conv_w(p["w1"]), row(p["b1"]),
        conv_w(p["w2"]), row(p["b2"]),
        conv_w(p["w3"]), row(p["b3"]),
        w_heads_t.astype(jnp.float32), b_heads.astype(jnp.float32),
        p["wa_fc"].astype(jnp.float32),  row(p["ba_fc"]),
        p["wv_fc1"].astype(jnp.float32), row(p["bv_fc1"]),
        p["wv_fc2"].astype(jnp.float32), row(p["bv_fc2"]),
    )
    vmem = lambda: pl.BlockSpec(memory_space=pltpu.MemorySpace.VMEM)
    return pl.pallas_call(
        _net_fused_kernel,
        out_shape=(jax.ShapeDtypeStruct((B, s2), jnp.float32),
                   jax.ShapeDtypeStruct((B, 1), jnp.float32)),
        in_specs=[vmem() for _ in args],
        out_specs=(vmem(), vmem()),
        scratch_shapes=[
            pltpu.VMEM((B, H + 2, W + 2, 3), jnp.float32),    # pad0
            pltpu.VMEM((B * HW, 9 * 3), jnp.float32),         # col0 (im2col)
            pltpu.VMEM((B, H + 2, W + 2, 32), jnp.float32),   # pad1
            pltpu.VMEM((B * HW, 9 * 32), jnp.float32),        # col1
            pltpu.VMEM((B, H + 2, W + 2, 64), jnp.float32),   # pad2
            pltpu.VMEM((B * HW, 9 * 64), jnp.float32),        # col2
            pltpu.VMEM((B, 3 * HW), jnp.float32),             # policy NCHW-flat acts
            pltpu.VMEM((B, 2 * HW), jnp.float32),             # value NCHW-flat acts
        ],
    )(*args)


# ----------------------------------------------------------------------------
# Pure-JAX reference (for in-script correctness check)
# ----------------------------------------------------------------------------
def ref_forward(state_nchw, p):
    x = jnp.transpose(state_nchw, (0, 2, 3, 1))

    def conv(x, w, b):
        y = lax.conv_general_dilated(
            x, w, (1, 1), "SAME", dimension_numbers=("NHWC", "HWIO", "NHWC"))
        return jnp.maximum(y + b, 0.0)

    t3 = conv(conv(conv(x, p["w1"], p["b1"]), p["w2"], p["b2"]), p["w3"], p["b3"])
    B, H, W, _ = t3.shape

    a = jnp.maximum(jnp.einsum("bhwc,cd->bhwd", t3, p["wa_conv"]) + p["ba_conv"], 0.0)
    a = a.transpose(0, 3, 1, 2).reshape(B, 3 * H * W)
    action = a @ p["wa_fc"] + p["ba_fc"]

    v = jnp.maximum(jnp.einsum("bhwc,cd->bhwd", t3, p["wv_conv"]) + p["bv_conv"], 0.0)
    v = v.transpose(0, 3, 1, 2).reshape(B, 2 * H * W)
    v = jnp.maximum(v @ p["wv_fc1"] + p["bv_fc1"], 0.0)
    value = jnp.tanh(v @ p["wv_fc2"] + p["bv_fc2"])
    return action, value


# ----------------------------------------------------------------------------
# Deterministic parameter init (synthetic weights, shapes from Net.__init__)
# ----------------------------------------------------------------------------
def init_params(size, key):
    ks = jax.random.split(key, 16)
    n = lambda k, s, sc=0.1: (sc * jax.random.normal(k, s)).astype(jnp.float32)
    s2 = size * size
    return {
        "w1": n(ks[0], (3, 3, 3, 32)),     "b1": n(ks[1], (32,)),
        "w2": n(ks[2], (3, 3, 32, 64)),    "b2": n(ks[3], (64,)),
        "w3": n(ks[4], (3, 3, 64, 128)),   "b3": n(ks[5], (128,)),
        "wa_conv": n(ks[6], (128, 3)),     "ba_conv": n(ks[7], (3,)),
        "wa_fc": n(ks[8], (3 * s2, s2)),   "ba_fc": n(ks[9], (s2,)),
        "wv_conv": n(ks[10], (128, 2)),    "bv_conv": n(ks[11], (2,)),
        "wv_fc1": n(ks[12], (2 * s2, 64)), "bv_fc1": n(ks[13], (64,)),
        "wv_fc2": n(ks[14], (64, 1)),      "bv_fc2": n(ks[15], (1,)),
    }


if __name__ == "__main__":
    size = 8          # board size -> spatial H = W = 8
    batch = 2
    key = jax.random.PRNGKey(0)
    k_p, k_x = jax.random.split(key)

    params = init_params(size, k_p)
    state = jax.random.normal(k_x, (batch, 3, size, size), jnp.float32)  # NCHW

    fwd = jax.jit(net_forward)
    action, value = jax.block_until_ready(fwd(state, params))

    # sanity-check against a pure-JAX f32 reference; conv matmuls use bf16 MXU
    # operands (f32 accumulation), so tolerance is relaxed per the perf review.
    action_ref_v, value_ref_v = ref_forward(state, params)
    assert action.shape == (batch, size * size) and value.shape == (batch, 1)
    assert jnp.allclose(action, action_ref_v, atol=2e-2, rtol=2e-2)
    assert jnp.allclose(value, value_ref_v, atol=2e-2, rtol=2e-2)

    print("KERNEL_OK")
</pallas_src>

<mosaic_0001>
module attributes {stable_mosaic.version = 11 : i64} {
  func.func @_net_fused_kernel(%arg0: memref<2x8x8x3xf32, #tpu.memory_space<vmem>>, %arg1: memref<27x32xbf16, #tpu.memory_space<vmem>>, %arg2: memref<1x32xf32, #tpu.memory_space<vmem>>, %arg3: memref<288x64xbf16, #tpu.memory_space<vmem>>, %arg4: memref<1x64xf32, #tpu.memory_space<vmem>>, %arg5: memref<576x128xbf16, #tpu.memory_space<vmem>>, %arg6: memref<1x128xf32, #tpu.memory_space<vmem>>, %arg7: memref<5x128xf32, #tpu.memory_space<vmem>>, %arg8: memref<5x1xf32, #tpu.memory_space<vmem>>, %arg9: memref<192x64xf32, #tpu.memory_space<vmem>>, %arg10: memref<1x64xf32, #tpu.memory_space<vmem>>, %arg11: memref<128x64xf32, #tpu.memory_space<vmem>>, %arg12: memref<1x64xf32, #tpu.memory_space<vmem>>, %arg13: memref<64x1xf32, #tpu.memory_space<vmem>>, %arg14: memref<1x1xf32, #tpu.memory_space<vmem>>, %arg15: memref<2x64xf32, #tpu.memory_space<vmem>>, %arg16: memref<2x1xf32, #tpu.memory_space<vmem>>, %arg17: memref<2x10x10x3xf32, #tpu.memory_space<vmem>>, %arg18: memref<128x27xf32, #tpu.memory_space<vmem>>, %arg19: memref<2x10x10x32xf32, #tpu.memory_space<vmem>>, %arg20: memref<128x288xf32, #tpu.memory_space<vmem>>, %arg21: memref<2x10x10x64xf32, #tpu.memory_space<vmem>>, %arg22: memref<128x576xf32, #tpu.memory_space<vmem>>, %arg23: memref<2x192xf32, #tpu.memory_space<vmem>>, %arg24: memref<2x128xf32, #tpu.memory_space<vmem>>) attributes {dimension_semantics = [], scalar_prefetch = 0 : i64, scratch_operands = 8 : i64, tpu.core_type = #tpu.core_type<tc>} {
    %c0 = arith.constant 0 : index
    %c0_0 = arith.constant 0 : index
    %c0_1 = arith.constant 0 : index
    %c0_2 = arith.constant 0 : index
    %0 = vector.load %arg0[%c0, %c0_0, %c0_1, %c0_2] : memref<2x8x8x3xf32, #tpu.memory_space<vmem>>, vector<2x8x8x3xf32>
    %cst = arith.constant 0.000000e+00 : f32
    %1 = vector.broadcast %cst : f32 to vector<2x1x10x3xf32>
    %cst_3 = arith.constant 0.000000e+00 : f32
    %2 = vector.broadcast %cst_3 : f32 to vector<2x8x1x3xf32>
    %c0_4 = arith.constant 0 : index
    %c0_5 = arith.constant 0 : index
    %c0_6 = arith.constant 0 : index
    %c0_7 = arith.constant 0 : index
    %3 = vector.load %arg17[%c0_4, %c0_5, %c0_6, %c0_7] : memref<2x10x10x3xf32, #tpu.memory_space<vmem>>, vector<2x1x10x3xf32>
    tpu.vector_store %arg17[%c0_4, %c0_5, %c0_6, %c0_7], %1 {strides = array<i32>} : memref<2x10x10x3xf32, #tpu.memory_space<vmem>>, vector<2x1x10x3xf32>,
    %c0_8 = arith.constant 0 : index
    %c9 = arith.constant 9 : index
    %c0_9 = arith.constant 0 : index
    %c0_10 = arith.constant 0 : index
    %4 = vector.load %arg17[%c0_8, %c9, %c0_9, %c0_10] : memref<2x10x10x3xf32, #tpu.memory_space<vmem>>, vector<2x1x10x3xf32>
    tpu.vector_store %arg17[%c0_8, %c9, %c0_9, %c0_10], %1 {strides = array<i32>} : memref<2x10x10x3xf32, #tpu.memory_space<vmem>>, vector<2x1x10x3xf32>,
    %c0_11 = arith.constant 0 : index
    %c1 = arith.constant 1 : index
    %c0_12 = arith.constant 0 : index
    %c0_13 = arith.constant 0 : index
    %5 = vector.load %arg17[%c0_11, %c1, %c0_12, %c0_13] : memref<2x10x10x3xf32, #tpu.memory_space<vmem>>, vector<2x8x1x3xf32>
    tpu.vector_store %arg17[%c0_11, %c1, %c0_12, %c0_13], %2 {strides = array<i32>} : memref<2x10x10x3xf32, #tpu.memory_space<vmem>>, vector<2x8x1x3xf32>,
    %c0_14 = arith.constant 0 : index
    %c1_15 = arith.constant 1 : index
    %c9_16 = arith.constant 9 : index
    %c0_17 = arith.constant 0 : index
    %6 = vector.load %arg17[%c0_14, %c1_15, %c9_16, %c0_17] : memref<2x10x10x3xf32, #tpu.memory_space<vmem>>, vector<2x8x1x3xf32>
    tpu.vector_store %arg17[%c0_14, %c1_15, %c9_16, %c0_17], %2 {strides = array<i32>} : memref<2x10x10x3xf32, #tpu.memory_space<vmem>>, vector<2x8x1x3xf32>,
    %c0_18 = arith.constant 0 : index
    %c1_19 = arith.constant 1 : index
    %c1_20 = arith.constant 1 : index
    %c0_21 = arith.constant 0 : index
    %7 = vector.load %arg17[%c0_18, %c1_19, %c1_20, %c0_21] : memref<2x10x10x3xf32, #tpu.memory_space<vmem>>, vector<2x8x8x3xf32>
    tpu.vector_store %arg17[%c0_18, %c1_19, %c1_20, %c0_21], %0 {strides = array<i32>} : memref<2x10x10x3xf32, #tpu.memory_space<vmem>>, vector<2x8x8x3xf32>,
    %c0_22 = arith.constant 0 : index
    %c0_23 = arith.constant 0 : index
    %c0_24 = arith.constant 0 : index
    %c0_25 = arith.constant 0 : index
    %8 = vector.load %arg17[%c0_22, %c0_23, %c0_24, %c0_25] : memref<2x10x10x3xf32, #tpu.memory_space<vmem>>, vector<2x10x10x3xf32>
    %9 = vector.extract_strided_slice %8 {offsets = [0, 0, 0, 0], sizes = [2, 8, 8, 3], strides = [1, 1, 1, 1]} : vector<2x10x10x3xf32> to vector<2x8x8x3xf32>
    %10 = vector.shape_cast %9 : vector<2x8x8x3xf32> to vector<128x3xf32>
    %c0_26 = arith.constant 0 : index
    %c0_27 = arith.constant 0 : index
    %11 = vector.load %arg18[%c0_26, %c0_27] : memref<128x27xf32, #tpu.memory_space<vmem>>, vector<128x3xf32>
    tpu.vector_store %arg18[%c0_26, %c0_27], %10 {strides = array<i32>} : memref<128x27xf32, #tpu.memory_space<vmem>>, vector<128x3xf32>,
    %12 = vector.extract_strided_slice %8 {offsets = [0, 0, 1, 0], sizes = [2, 8, 8, 3], strides = [1, 1, 1, 1]} : vector<2x10x10x3xf32> to vector<2x8x8x3xf32>
    %13 = vector.shape_cast %12 : vector<2x8x8x3xf32> to vector<128x3xf32>
    %c0_28 = arith.constant 0 : index
    %c3 = arith.constant 3 : index
    %14 = vector.load %arg18[%c0_28, %c3] : memref<128x27xf32, #tpu.memory_space<vmem>>, vector<128x3xf32>
    tpu.vector_store %arg18[%c0_28, %c3], %13 {strides = array<i32>} : memref<128x27xf32, #tpu.memory_space<vmem>>, vector<128x3xf32>,
    %15 = vector.extract_strided_slice %8 {offsets = [0, 0, 2, 0], sizes = [2, 8, 8, 3], strides = [1, 1, 1, 1]} : vector<2x10x10x3xf32> to vector<2x8x8x3xf32>
    %16 = vector.shape_cast %15 : vector<2x8x8x3xf32> to vector<128x3xf32>
    %c0_29 = arith.constant 0 : index
    %c6 = arith.constant 6 : index
    %17 = vector.load %arg18[%c0_29, %c6] : memref<128x27xf32, #tpu.memory_space<vmem>>, vector<128x3xf32>
    tpu.vector_store %arg18[%c0_29, %c6], %16 {strides = array<i32>} : memref<128x27xf32, #tpu.memory_space<vmem>>, vector<128x3xf32>,
    %18 = vector.extract_strided_slice %8 {offsets = [0, 1, 0, 0], sizes = [2, 8, 8, 3], strides = [1, 1, 1, 1]} : vector<2x10x10x3xf32> to vector<2x8x8x3xf32>
    %19 = vector.shape_cast %18 : vector<2x8x8x3xf32> to vector<128x3xf32>
    %c0_30 = arith.constant 0 : index
    %c9_31 = arith.constant 9 : index
    %20 = vector.load %arg18[%c0_30, %c9_31] : memref<128x27xf32, #tpu.memory_space<vmem>>, vector<128x3xf32>
    tpu.vector_store %arg18[%c0_30, %c9_31], %19 {strides = array<i32>} : memref<128x27xf32, #tpu.memory_space<vmem>>, vector<128x3xf32>,
    %21 = vector.extract_strided_slice %8 {offsets = [0, 1, 1, 0], sizes = [2, 8, 8, 3], strides = [1, 1, 1, 1]} : vector<2x10x10x3xf32> to vector<2x8x8x3xf32>
    %22 = vector.shape_cast %21 : vector<2x8x8x3xf32> to vector<128x3xf32>
    %c0_32 = arith.constant 0 : index
    %c12 = arith.constant 12 : index
    %23 = vector.load %arg18[%c0_32, %c12] : memref<128x27xf32, #tpu.memory_space<vmem>>, vector<128x3xf32>
    tpu.vector_store %arg18[%c0_32, %c12], %22 {strides = array<i32>} : memref<128x27xf32, #tpu.memory_space<vmem>>, vector<128x3xf32>,
    %24 = vector.extract_strided_slice %8 {offsets = [0, 1, 2, 0], sizes = [2, 8, 8, 3], strides = [1, 1, 1, 1]} : vector<2x10x10x3xf32> to vector<2x8x8x3xf32>
    %25 = vector.shape_cast %24 : vector<2x8x8x3xf32> to vector<128x3xf32>
    %c0_33 = arith.constant 0 : index
    %c15 = arith.constant 15 : index
    %26 = vector.load %arg18[%c0_33, %c15] : memref<128x27xf32, #tpu.memory_space<vmem>>, vector<128x3xf32>
    tpu.vector_store %arg18[%c0_33, %c15], %25 {strides = array<i32>} : memref<128x27xf32, #tpu.memory_space<vmem>>, vector<128x3xf32>,
    %27 = vector.extract_strided_slice %8 {offsets = [0, 2, 0, 0], sizes = [2, 8, 8, 3], strides = [1, 1, 1, 1]} : vector<2x10x10x3xf32> to vector<2x8x8x3xf32>
    %28 = vector.shape_cast %27 : vector<2x8x8x3xf32> to vector<128x3xf32>
    %c0_34 = arith.constant 0 : index
    %c18 = arith.constant 18 : index
    %29 = vector.load %arg18[%c0_34, %c18] : memref<128x27xf32, #tpu.memory_space<vmem>>, vector<128x3xf32>
    tpu.vector_store %arg18[%c0_34, %c18], %28 {strides = array<i32>} : memref<128x27xf32, #tpu.memory_space<vmem>>, vector<128x3xf32>,
    %30 = vector.extract_strided_slice %8 {offsets = [0, 2, 1, 0], sizes = [2, 8, 8, 3], strides = [1, 1, 1, 1]} : vector<2x10x10x3xf32> to vector<2x8x8x3xf32>
    %31 = vector.shape_cast %30 : vector<2x8x8x3xf32> to vector<128x3xf32>
    %c0_35 = arith.constant 0 : index
    %c21 = arith.constant 21 : index
    %32 = vector.load %arg18[%c0_35, %c21] : memref<128x27xf32, #tpu.memory_space<vmem>>, vector<128x3xf32>
    tpu.vector_store %arg18[%c0_35, %c21], %31 {strides = array<i32>} : memref<128x27xf32, #tpu.memory_space<vmem>>, vector<128x3xf32>,
    %33 = vector.extract_strided_slice %8 {offsets = [0, 2, 2, 0], sizes = [2, 8, 8, 3], strides = [1, 1, 1, 1]} : vector<2x10x10x3xf32> to vector<2x8x8x3xf32>
    %34 = vector.shape_cast %33 : vector<2x8x8x3xf32> to vector<128x3xf32>
    %c0_36 = arith.constant 0 : index
    %c24 = arith.constant 24 : index
    %35 = vector.load %arg18[%c0_36, %c24] : memref<128x27xf32, #tpu.memory_space<vmem>>, vector<128x3xf32>
    tpu.vector_store %arg18[%c0_36, %c24], %34 {strides = array<i32>} : memref<128x27xf32, #tpu.memory_space<vmem>>, vector<128x3xf32>,
    %c0_37 = arith.constant 0 : index
    %c0_38 = arith.constant 0 : index
    %36 = vector.load %arg18[%c0_37, %c0_38] : memref<128x27xf32, #tpu.memory_space<vmem>>, vector<128x27xf32>
    %37 = arith.truncf %36 : vector<128x27xf32> to vector<128x27xbf16>
    %c0_39 = arith.constant 0 : index
    %c0_40 = arith.constant 0 : index
    %38 = vector.load %arg1[%c0_39, %c0_40] : memref<27x32xbf16, #tpu.memory_space<vmem>>, vector<27x32xbf16>
    %cst_41 = arith.constant dense<0.000000e+00> : vector<128x32xf32>
    %39 = tpu.matmul %37, %38, %cst_41 {dimension_numbers = #tpu.dot_dimension_numbers<[1], [0], [0], [1], [0, 0, 1, 1], [], []>} : vector<128x27xbf16>, vector<27x32xbf16>, vector<128x32xf32> -> vector<128x32xf32>
    %c0_42 = arith.constant 0 : index
    %c0_43 = arith.constant 0 : index
    %40 = vector.load %arg2[%c0_42, %c0_43] : memref<1x32xf32, #tpu.memory_space<vmem>>, vector<1x32xf32>
    %41 = vector.broadcast %40 : vector<1x32xf32> to vector<128x32xf32>
    %42 = arith.addf %39, %41 : vector<128x32xf32>
    %cst_44 = arith.constant 0.000000e+00 : f32
    %43 = vector.broadcast %cst_44 : f32 to vector<128x32xf32>
    %44 = arith.maximumf %42, %43 : vector<128x32xf32>
    %45 = vector.shape_cast %44 : vector<128x32xf32> to vector<2x8x8x32xf32>
    %cst_45 = arith.constant 0.000000e+00 : f32
    %46 = vector.broadcast %cst_45 : f32 to vector<2x1x10x32xf32>
    %cst_46 = arith.constant 0.000000e+00 : f32
    %47 = vector.broadcast %cst_46 : f32 to vector<2x8x1x32xf32>
    %c0_47 = arith.constant 0 : index
    %c0_48 = arith.constant 0 : index
    %c0_49 = arith.constant 0 : index
    %c0_50 = arith.constant 0 : index
    %48 = vector.load %arg19[%c0_47, %c0_48, %c0_49, %c0_50] : memref<2x10x10x32xf32, #tpu.memory_space<vmem>>, vector<2x1x10x32xf32>
    tpu.vector_store %arg19[%c0_47, %c0_48, %c0_49, %c0_50], %46 {strides = array<i32>} : memref<2x10x10x32xf32, #tpu.memory_space<vmem>>, vector<2x1x10x32xf32>,
    %c0_51 = arith.constant 0 : index
    %c9_52 = arith.constant 9 : index
    %c0_53 = arith.constant 0 : index
    %c0_54 = arith.constant 0 : index
    %49 = vector.load %arg19[%c0_51, %c9_52, %c0_53, %c0_54] : memref<2x10x10x32xf32, #tpu.memory_space<vmem>>, vector<2x1x10x32xf32>
    tpu.vector_store %arg19[%c0_51, %c9_52, %c0_53, %c0_54], %46 {strides = array<i32>} : memref<2x10x10x32xf32, #tpu.memory_space<vmem>>, vector<2x1x10x32xf32>,
    %c0_55 = arith.constant 0 : index
    %c1_56 = arith.constant 1 : index
    %c0_57 = arith.constant 0 : index
    %c0_58 = arith.constant 0 : index
    %50 = vector.load %arg19[%c0_55, %c1_56, %c0_57, %c0_58] : memref<2x10x10x32xf32, #tpu.memory_space<vmem>>, vector<2x8x1x32xf32>
    tpu.vector_store %arg19[%c0_55, %c1_56, %c0_57, %c0_58], %47 {strides = array<i32>} : memref<2x10x10x32xf32, #tpu.memory_space<vmem>>, vector<2x8x1x32xf32>,
    %c0_59 = arith.constant 0 : index
    %c1_60 = arith.constant 1 : index
    %c9_61 = arith.constant 9 : index
    %c0_62 = arith.constant 0 : index
    %51 = vector.load %arg19[%c0_59, %c1_60, %c9_61, %c0_62] : memref<2x10x10x32xf32, #tpu.memory_space<vmem>>, vector<2x8x1x32xf32>
    tpu.vector_store %arg19[%c0_59, %c1_60, %c9_61, %c0_62], %47 {strides = array<i32>} : memref<2x10x10x32xf32, #tpu.memory_space<vmem>>, vector<2x8x1x32xf32>,
    %c0_63 = arith.constant 0 : index
    %c1_64 = arith.constant 1 : index
    %c1_65 = arith.constant 1 : index
    %c0_66 = arith.constant 0 : index
    %52 = vector.load %arg19[%c0_63, %c1_64, %c1_65, %c0_66] : memref<2x10x10x32xf32, #tpu.memory_space<vmem>>, vector<2x8x8x32xf32>
    tpu.vector_store %arg19[%c0_63, %c1_64, %c1_65, %c0_66], %45 {strides = array<i32>} : memref<2x10x10x32xf32, #tpu.memory_space<vmem>>, vector<2x8x8x32xf32>,
    %c0_67 = arith.constant 0 : index
    %c0_68 = arith.constant 0 : index
    %c0_69 = arith.constant 0 : index
    %c0_70 = arith.constant 0 : index
    %53 = vector.load %arg19[%c0_67, %c0_68, %c0_69, %c0_70] : memref<2x10x10x32xf32, #tpu.memory_space<vmem>>, vector<2x10x10x32xf32>
    %54 = vector.extract_strided_slice %53 {offsets = [0, 0, 0, 0], sizes = [2, 8, 8, 32], strides = [1, 1, 1, 1]} : vector<2x10x10x32xf32> to vector<2x8x8x32xf32>
    %55 = vector.shape_cast %54 : vector<2x8x8x32xf32> to vector<128x32xf32>
    %c0_71 = arith.constant 0 : index
    %c0_72 = arith.constant 0 : index
    %56 = vector.load %arg20[%c0_71, %c0_72] : memref<128x288xf32, #tpu.memory_space<vmem>>, vector<128x32xf32>
    tpu.vector_store %arg20[%c0_71, %c0_72], %55 {strides = array<i32>} : memref<128x288xf32, #tpu.memory_space<vmem>>, vector<128x32xf32>,
    %57 = vector.extract_strided_slice %53 {offsets = [0, 0, 1, 0], sizes = [2, 8, 8, 32], strides = [1, 1, 1, 1]} : vector<2x10x10x32xf32> to vector<2x8x8x32xf32>
    %58 = vector.shape_cast %57 : vector<2x8x8x32xf32> to vector<128x32xf32>
    %c0_73 = arith.constant 0 : index
    %c32 = arith.constant 32 : index
    %59 = vector.load %arg20[%c0_73, %c32] : memref<128x288xf32, #tpu.memory_space<vmem>>, vector<128x32xf32>
    tpu.vector_store %arg20[%c0_73, %c32], %58 {strides = array<i32>} : memref<128x288xf32, #tpu.memory_space<vmem>>, vector<128x32xf32>,
    %60 = vector.extract_strided_slice %53 {offsets = [0, 0, 2, 0], sizes = [2, 8, 8, 32], strides = [1, 1, 1, 1]} : vector<2x10x10x32xf32> to vector<2x8x8x32xf32>
    %61 = vector.shape_cast %60 : vector<2x8x8x32xf32> to vector<128x32xf32>
    %c0_74 = arith.constant 0 : index
    %c64 = arith.constant 64 : index
    %62 = vector.load %arg20[%c0_74, %c64] : memref<128x288xf32, #tpu.memory_space<vmem>>, vector<128x32xf32>
    tpu.vector_store %arg20[%c0_74, %c64], %61 {strides = array<i32>} : memref<128x288xf32, #tpu.memory_space<vmem>>, vector<128x32xf32>,
    %63 = vector.extract_strided_slice %53 {offsets = [0, 1, 0, 0], sizes = [2, 8, 8, 32], strides = [1, 1, 1, 1]} : vector<2x10x10x32xf32> to vector<2x8x8x32xf32>
    %64 = vector.shape_cast %63 : vector<2x8x8x32xf32> to vector<128x32xf32>
    %c0_75 = arith.constant 0 : index
    %c96 = arith.constant 96 : index
    %65 = vector.load %arg20[%c0_75, %c96] : memref<128x288xf32, #tpu.memory_space<vmem>>, vector<128x32xf32>
    tpu.vector_store %arg20[%c0_75, %c96], %64 {strides = array<i32>} : memref<128x288xf32, #tpu.memory_space<vmem>>, vector<128x32xf32>,
    %66 = vector.extract_strided_slice %53 {offsets = [0, 1, 1, 0], sizes = [2, 8, 8, 32], strides = [1, 1, 1, 1]} : vector<2x10x10x32xf32> to vector<2x8x8x32xf32>
    %67 = vector.shape_cast %66 : vector<2x8x8x32xf32> to vector<128x32xf32>
    %c0_76 = arith.constant 0 : index
    %c128 = arith.constant 128 : index
    %68 = vector.load %arg20[%c0_76, %c128] : memref<128x288xf32, #tpu.memory_space<vmem>>, vector<128x32xf32>
    tpu.vector_store %arg20[%c0_76, %c128], %67 {strides = array<i32>} : memref<128x288xf32, #tpu.memory_space<vmem>>, vector<128x32xf32>,
    %69 = vector.extract_strided_slice %53 {offsets = [0, 1, 2, 0], sizes = [2, 8, 8, 32], strides = [1, 1, 1, 1]} : vector<2x10x10x32xf32> to vector<2x8x8x32xf32>
    %70 = vector.shape_cast %69 : vector<2x8x8x32xf32> to vector<128x32xf32>
    %c0_77 = arith.constant 0 : index
    %c160 = arith.constant 160 : index
    %71 = vector.load %arg20[%c0_77, %c160] : memref<128x288xf32, #tpu.memory_space<vmem>>, vector<128x32xf32>
    tpu.vector_store %arg20[%c0_77, %c160], %70 {strides = array<i32>} : memref<128x288xf32, #tpu.memory_space<vmem>>, vector<128x32xf32>,
    %72 = vector.extract_strided_slice %53 {offsets = [0, 2, 0, 0], sizes = [2, 8, 8, 32], strides = [1, 1, 1, 1]} : vector<2x10x10x32xf32> to vector<2x8x8x32xf32>
    %73 = vector.shape_cast %72 : vector<2x8x8x32xf32> to vector<128x32xf32>
    %c0_78 = arith.constant 0 : index
    %c192 = arith.constant 192 : index
    %74 = vector.load %arg20[%c0_78, %c192] : memref<128x288xf32, #tpu.memory_space<vmem>>, vector<128x32xf32>
    tpu.vector_store %arg20[%c0_78, %c192], %73 {strides = array<i32>} : memref<128x288xf32, #tpu.memory_space<vmem>>, vector<128x32xf32>,
    %75 = vector.extract_strided_slice %53 {offsets = [0, 2, 1, 0], sizes = [2, 8, 8, 32], strides = [1, 1, 1, 1]} : vector<2x10x10x32xf32> to vector<2x8x8x32xf32>
    %76 = vector.shape_cast %75 : vector<2x8x8x32xf32> to vector<128x32xf32>
    %c0_79 = arith.constant 0 : index
    %c224 = arith.constant 224 : index
    %77 = vector.load %arg20[%c0_79, %c224] : memref<128x288xf32, #tpu.memory_space<vmem>>, vector<128x32xf32>
    tpu.vector_store %arg20[%c0_79, %c224], %76 {strides = array<i32>} : memref<128x288xf32, #tpu.memory_space<vmem>>, vector<128x32xf32>,
    %78 = vector.extract_strided_slice %53 {offsets = [0, 2, 2, 0], sizes = [2, 8, 8, 32], strides = [1, 1, 1, 1]} : vector<2x10x10x32xf32> to vector<2x8x8x32xf32>
    %79 = vector.shape_cast %78 : vector<2x8x8x32xf32> to vector<128x32xf32>
    %c0_80 = arith.constant 0 : index
    %c256 = arith.constant 256 : index
    %80 = vector.load %arg20[%c0_80, %c256] : memref<128x288xf32, #tpu.memory_space<vmem>>, vector<128x32xf32>
    tpu.vector_store %arg20[%c0_80, %c256], %79 {strides = array<i32>} : memref<128x288xf32, #tpu.memory_space<vmem>>, vector<128x32xf32>,
    %c0_81 = arith.constant 0 : index
    %c0_82 = arith.constant 0 : index
    %81 = vector.load %arg20[%c0_81, %c0_82] : memref<128x288xf32, #tpu.memory_space<vmem>>, vector<128x288xf32>
    %82 = arith.truncf %81 : vector<128x288xf32> to vector<128x288xbf16>
    %c0_83 = arith.constant 0 : index
    %c0_84 = arith.constant 0 : index
    %83 = vector.load %arg3[%c0_83, %c0_84] : memref<288x64xbf16, #tpu.memory_space<vmem>>, vector<288x64xbf16>
    %cst_85 = arith.constant dense<0.000000e+00> : vector<128x64xf32>
    %84 = tpu.matmul %82, %83, %cst_85 {dimension_numbers = #tpu.dot_dimension_numbers<[1], [0], [0], [1], [0, 0, 1, 1], [], []>} : vector<128x288xbf16>, vector<288x64xbf16>, vector<128x64xf32> -> vector<128x64xf32>
    %c0_86 = arith.constant 0 : index
    %c0_87 = arith.constant 0 : index
    %85 = vector.load %arg4[%c0_86, %c0_87] : memref<1x64xf32, #tpu.memory_space<vmem>>, vector<1x64xf32>
    %86 = vector.broadcast %85 : vector<1x64xf32> to vector<128x64xf32>
    %87 = arith.addf %84, %86 : vector<128x64xf32>
    %cst_88 = arith.constant 0.000000e+00 : f32
    %88 = vector.broadcast %cst_88 : f32 to vector<128x64xf32>
    %89 = arith.maximumf %87, %88 : vector<128x64xf32>
    %90 = vector.shape_cast %89 : vector<128x64xf32> to vector<2x8x8x64xf32>
    %cst_89 = arith.constant 0.000000e+00 : f32
    %91 = vector.broadcast %cst_89 : f32 to vector<2x1x10x64xf32>
    %cst_90 = arith.constant 0.000000e+00 : f32
    %92 = vector.broadcast %cst_90 : f32 to vector<2x8x1x64xf32>
    %c0_91 = arith.constant 0 : index
    %c0_92 = arith.constant 0 : index
    %c0_93 = arith.constant 0 : index
    %c0_94 = arith.constant 0 : index
    %93 = vector.load %arg21[%c0_91, %c0_92, %c0_93, %c0_94] : memref<2x10x10x64xf32, #tpu.memory_space<vmem>>, vector<2x1x10x64xf32>
    tpu.vector_store %arg21[%c0_91, %c0_92, %c0_93, %c0_94], %91 {strides = array<i32>} : memref<2x10x10x64xf32, #tpu.memory_space<vmem>>, vector<2x1x10x64xf32>,
    %c0_95 = arith.constant 0 : index
    %c9_96 = arith.constant 9 : index
    %c0_97 = arith.constant 0 : index
    %c0_98 = arith.constant 0 : index
    %94 = vector.load %arg21[%c0_95, %c9_96, %c0_97, %c0_98] : memref<2x10x10x64xf32, #tpu.memory_space<vmem>>, vector<2x1x10x64xf32>
    tpu.vector_store %arg21[%c0_95, %c9_96, %c0_97, %c0_98], %91 {strides = array<i32>} : memref<2x10x10x64xf32, #tpu.memory_space<vmem>>, vector<2x1x10x64xf32>,
    %c0_99 = arith.constant 0 : index
    %c1_100 = arith.constant 1 : index
    %c0_101 = arith.constant 0 : index
    %c0_102 = arith.constant 0 : index
    %95 = vector.load %arg21[%c0_99, %c1_100, %c0_101, %c0_102] : memref<2x10x10x64xf32, #tpu.memory_space<vmem>>, vector<2x8x1x64xf32>
    tpu.vector_store %arg21[%c0_99, %c1_100, %c0_101, %c0_102], %92 {strides = array<i32>} : memref<2x10x10x64xf32, #tpu.memory_space<vmem>>, vector<2x8x1x64xf32>,
    %c0_103 = arith.constant 0 : index
    %c1_104 = arith.constant 1 : index
    %c9_105 = arith.constant 9 : index
    %c0_106 = arith.constant 0 : index
    %96 = vector.load %arg21[%c0_103, %c1_104, %c9_105, %c0_106] : memref<2x10x10x64xf32, #tpu.memory_space<vmem>>, vector<2x8x1x64xf32>
    tpu.vector_store %arg21[%c0_103, %c1_104, %c9_105, %c0_106], %92 {strides = array<i32>} : memref<2x10x10x64xf32, #tpu.memory_space<vmem>>, vector<2x8x1x64xf32>,
    %c0_107 = arith.constant 0 : index
    %c1_108 = arith.constant 1 : index
    %c1_109 = arith.constant 1 : index
    %c0_110 = arith.constant 0 : index
    %97 = vector.load %arg21[%c0_107, %c1_108, %c1_109, %c0_110] : memref<2x10x10x64xf32, #tpu.memory_space<vmem>>, vector<2x8x8x64xf32>
    tpu.vector_store %arg21[%c0_107, %c1_108, %c1_109, %c0_110], %90 {strides = array<i32>} : memref<2x10x10x64xf32, #tpu.memory_space<vmem>>, vector<2x8x8x64xf32>,
    %c0_111 = arith.constant 0 : index
    %c0_112 = arith.constant 0 : index
    %c0_113 = arith.constant 0 : index
    %c0_114 = arith.constant 0 : index
    %98 = vector.load %arg21[%c0_111, %c0_112, %c0_113, %c0_114] : memref<2x10x10x64xf32, #tpu.memory_space<vmem>>, vector<2x10x10x64xf32>
    %99 = vector.extract_strided_slice %98 {offsets = [0, 0, 0, 0], sizes = [2, 8, 8, 64], strides = [1, 1, 1, 1]} : vector<2x10x10x64xf32> to vector<2x8x8x64xf32>
    %100 = vector.shape_cast %99 : vector<2x8x8x64xf32> to vector<128x64xf32>
    %c0_115 = arith.constant 0 : index
    %c0_116 = arith.constant 0 : index
    %101 = vector.load %arg22[%c0_115, %c0_116] : memref<128x576xf32, #tpu.memory_space<vmem>>, vector<128x64xf32>
    tpu.vector_store %arg22[%c0_115, %c0_116], %100 {strides = array<i32>} : memref<128x576xf32, #tpu.memory_space<vmem>>, vector<128x64xf32>,
    %102 = vector.extract_strided_slice %98 {offsets = [0, 0, 1, 0], sizes = [2, 8, 8, 64], strides = [1, 1, 1, 1]} : vector<2x10x10x64xf32> to vector<2x8x8x64xf32>
    %103 = vector.shape_cast %102 : vector<2x8x8x64xf32> to vector<128x64xf32>
    %c0_117 = arith.constant 0 : index
    %c64_118 = arith.constant 64 : index
    %104 = vector.load %arg22[%c0_117, %c64_118] : memref<128x576xf32, #tpu.memory_space<vmem>>, vector<128x64xf32>
    tpu.vector_store %arg22[%c0_117, %c64_118], %103 {strides = array<i32>} : memref<128x576xf32, #tpu.memory_space<vmem>>, vector<128x64xf32>,
    %105 = vector.extract_strided_slice %98 {offsets = [0, 0, 2, 0], sizes = [2, 8, 8, 64], strides = [1, 1, 1, 1]} : vector<2x10x10x64xf32> to vector<2x8x8x64xf32>
    %106 = vector.shape_cast %105 : vector<2x8x8x64xf32> to vector<128x64xf32>
    %c0_119 = arith.constant 0 : index
    %c128_120 = arith.constant 128 : index
    %107 = vector.load %arg22[%c0_119, %c128_120] : memref<128x576xf32, #tpu.memory_space<vmem>>, vector<128x64xf32>
    tpu.vector_store %arg22[%c0_119, %c128_120], %106 {strides = array<i32>} : memref<128x576xf32, #tpu.memory_space<vmem>>, vector<128x64xf32>,
    %108 = vector.extract_strided_slice %98 {offsets = [0, 1, 0, 0], sizes = [2, 8, 8, 64], strides = [1, 1, 1, 1]} : vector<2x10x10x64xf32> to vector<2x8x8x64xf32>
    %109 = vector.shape_cast %108 : vector<2x8x8x64xf32> to vector<128x64xf32>
    %c0_121 = arith.constant 0 : index
    %c192_122 = arith.constant 192 : index
    %110 = vector.load %arg22[%c0_121, %c192_122] : memref<128x576xf32, #tpu.memory_space<vmem>>, vector<128x64xf32>
    tpu.vector_store %arg22[%c0_121, %c192_122], %109 {strides = array<i32>} : memref<128x576xf32, #tpu.memory_space<vmem>>, vector<128x64xf32>,
    %111 = vector.extract_strided_slice %98 {offsets = [0, 1, 1, 0], sizes = [2, 8, 8, 64], strides = [1, 1, 1, 1]} : vector<2x10x10x64xf32> to vector<2x8x8x64xf32>
    %112 = vector.shape_cast %111 : vector<2x8x8x64xf32> to vector<128x64xf32>
    %c0_123 = arith.constant 0 : index
    %c256_124 = arith.constant 256 : index
    %113 = vector.load %arg22[%c0_123, %c256_124] : memref<128x576xf32, #tpu.memory_space<vmem>>, vector<128x64xf32>
    tpu.vector_store %arg22[%c0_123, %c256_124], %112 {strides = array<i32>} : memref<128x576xf32, #tpu.memory_space<vmem>>, vector<128x64xf32>,
    %114 = vector.extract_strided_slice %98 {offsets = [0, 1, 2, 0], sizes = [2, 8, 8, 64], strides = [1, 1, 1, 1]} : vector<2x10x10x64xf32> to vector<2x8x8x64xf32>
    %115 = vector.shape_cast %114 : vector<2x8x8x64xf32> to vector<128x64xf32>
    %c0_125 = arith.constant 0 : index
    %c320 = arith.constant 320 : index
    %116 = vector.load %arg22[%c0_125, %c320] : memref<128x576xf32, #tpu.memory_space<vmem>>, vector<128x64xf32>
    tpu.vector_store %arg22[%c0_125, %c320], %115 {strides = array<i32>} : memref<128x576xf32, #tpu.memory_space<vmem>>, vector<128x64xf32>,
    %117 = vector.extract_strided_slice %98 {offsets = [0, 2, 0, 0], sizes = [2, 8, 8, 64], strides = [1, 1, 1, 1]} : vector<2x10x10x64xf32> to vector<2x8x8x64xf32>
    %118 = vector.shape_cast %117 : vector<2x8x8x64xf32> to vector<128x64xf32>
    %c0_126 = arith.constant 0 : index
    %c384 = arith.constant 384 : index
    %119 = vector.load %arg22[%c0_126, %c384] : memref<128x576xf32, #tpu.memory_space<vmem>>, vector<128x64xf32>
    tpu.vector_store %arg22[%c0_126, %c384], %118 {strides = array<i32>} : memref<128x576xf32, #tpu.memory_space<vmem>>, vector<128x64xf32>,
    %120 = vector.extract_strided_slice %98 {offsets = [0, 2, 1, 0], sizes = [2, 8, 8, 64], strides = [1, 1, 1, 1]} : vector<2x10x10x64xf32> to vector<2x8x8x64xf32>
    %121 = vector.shape_cast %120 : vector<2x8x8x64xf32> to vector<128x64xf32>
    %c0_127 = arith.constant 0 : index
    %c448 = arith.constant 448 : index
    %122 = vector.load %arg22[%c0_127, %c448] : memref<128x576xf32, #tpu.memory_space<vmem>>, vector<128x64xf32>
    tpu.vector_store %arg22[%c0_127, %c448], %121 {strides = array<i32>} : memref<128x576xf32, #tpu.memory_space<vmem>>, vector<128x64xf32>,
    %123 = vector.extract_strided_slice %98 {offsets = [0, 2, 2, 0], sizes = [2, 8, 8, 64], strides = [1, 1, 1, 1]} : vector<2x10x10x64xf32> to vector<2x8x8x64xf32>
    %124 = vector.shape_cast %123 : vector<2x8x8x64xf32> to vector<128x64xf32>
    %c0_128 = arith.constant 0 : index
    %c512 = arith.constant 512 : index
    %125 = vector.load %arg22[%c0_128, %c512] : memref<128x576xf32, #tpu.memory_space<vmem>>, vector<128x64xf32>
    tpu.vector_store %arg22[%c0_128, %c512], %124 {strides = array<i32>} : memref<128x576xf32, #tpu.memory_space<vmem>>, vector<128x64xf32>,
    %c0_129 = arith.constant 0 : index
    %c0_130 = arith.constant 0 : index
    %126 = vector.load %arg22[%c0_129, %c0_130] : memref<128x576xf32, #tpu.memory_space<vmem>>, vector<128x576xf32>
    %127 = arith.truncf %126 : vector<128x576xf32> to vector<128x576xbf16>
    %c0_131 = arith.constant 0 : index
    %c0_132 = arith.constant 0 : index
    %128 = vector.load %arg5[%c0_131, %c0_132] : memref<576x128xbf16, #tpu.memory_space<vmem>>, vector<576x128xbf16>
    %cst_133 = arith.constant dense<0.000000e+00> : vector<128x128xf32>
    %129 = tpu.matmul %127, %128, %cst_133 {dimension_numbers = #tpu.dot_dimension_numbers<[1], [0], [0], [1], [0, 0, 1, 1], [], []>} : vector<128x576xbf16>, vector<576x128xbf16>, vector<128x128xf32> -> vector<128x128xf32>
    %c0_134 = arith.constant 0 : index
    %c0_135 = arith.constant 0 : index
    %130 = vector.load %arg6[%c0_134, %c0_135] : memref<1x128xf32, #tpu.memory_space<vmem>>, vector<1x128xf32>
    %131 = vector.broadcast %130 : vector<1x128xf32> to vector<128x128xf32>
    %132 = arith.addf %129, %131 : vector<128x128xf32>
    %cst_136 = arith.constant 0.000000e+00 : f32
    %133 = vector.broadcast %cst_136 : f32 to vector<128x128xf32>
    %134 = arith.maximumf %132, %133 : vector<128x128xf32>
    %c0_137 = arith.constant 0 : index
    %c0_138 = arith.constant 0 : index
    %135 = vector.load %arg7[%c0_137, %c0_138] : memref<5x128xf32, #tpu.memory_space<vmem>>, vector<5x128xf32>
    %cst_139 = arith.constant dense<0.000000e+00> : vector<5x128xf32>
    %136 = tpu.matmul %135, %134, %cst_139 {dimension_numbers = #tpu.dot_dimension_numbers<[1], [1], [0], [0], [0, 0, 1, 0], [], []>} : vector<5x128xf32>, vector<128x128xf32>, vector<5x128xf32> -> vector<5x128xf32>
    %c0_140 = arith.constant 0 : index
    %c0_141 = arith.constant 0 : index
    %137 = vector.load %arg8[%c0_140, %c0_141] : memref<5x1xf32, #tpu.memory_space<vmem>>, vector<5x1xf32>
    %138 = vector.broadcast %137 : vector<5x1xf32> to vector<5x128xf32>
    %139 = arith.addf %136, %138 : vector<5x128xf32>
    %cst_142 = arith.constant 0.000000e+00 : f32
    %140 = vector.broadcast %cst_142 : f32 to vector<5x128xf32>
    %141 = arith.maximumf %139, %140 : vector<5x128xf32>
    %142 = vector.extract_strided_slice %141 {offsets = [0, 0], sizes = [1, 64], strides = [1, 1]} : vector<5x128xf32> to vector<1x64xf32>
    %c0_143 = arith.constant 0 : index
    %c0_144 = arith.constant 0 : index
    %143 = vector.load %arg23[%c0_143, %c0_144] : memref<2x192xf32, #tpu.memory_space<vmem>>, vector<1x64xf32>
    tpu.vector_store %arg23[%c0_143, %c0_144], %142 {strides = array<i32>} : memref<2x192xf32, #tpu.memory_space<vmem>>, vector<1x64xf32>,
    %144 = vector.extract_strided_slice %141 {offsets = [1, 0], sizes = [1, 64], strides = [1, 1]} : vector<5x128xf32> to vector<1x64xf32>
    %c0_145 = arith.constant 0 : index
    %c64_146 = arith.constant 64 : index
    %145 = vector.load %arg23[%c0_145, %c64_146] : memref<2x192xf32, #tpu.memory_space<vmem>>, vector<1x64xf32>
    tpu.vector_store %arg23[%c0_145, %c64_146], %144 {strides = array<i32>} : memref<2x192xf32, #tpu.memory_space<vmem>>, vector<1x64xf32>,
    %146 = vector.extract_strided_slice %141 {offsets = [2, 0], sizes = [1, 64], strides = [1, 1]} : vector<5x128xf32> to vector<1x64xf32>
    %c0_147 = arith.constant 0 : index
    %c128_148 = arith.constant 128 : index
    %147 = vector.load %arg23[%c0_147, %c128_148] : memref<2x192xf32, #tpu.memory_space<vmem>>, vector<1x64xf32>
    tpu.vector_store %arg23[%c0_147, %c128_148], %146 {strides = array<i32>} : memref<2x192xf32, #tpu.memory_space<vmem>>, vector<1x64xf32>,
    %148 = vector.extract_strided_slice %141 {offsets = [3, 0], sizes = [1, 64], strides = [1, 1]} : vector<5x128xf32> to vector<1x64xf32>
    %c0_149 = arith.constant 0 : index
    %c0_150 = arith.constant 0 : index
    %149 = vector.load %arg24[%c0_149, %c0_150] : memref<2x128xf32, #tpu.memory_space<vmem>>, vector<1x64xf32>
    tpu.vector_store %arg24[%c0_149, %c0_150], %148 {strides = array<i32>} : memref<2x128xf32, #tpu.memory_space<vmem>>, vector<1x64xf32>,
    %150 = vector.extract_strided_slice %141 {offsets = [4, 0], sizes = [1, 64], strides = [1, 1]} : vector<5x128xf32> to vector<1x64xf32>
    %c0_151 = arith.constant 0 : index
    %c64_152 = arith.constant 64 : index
    %151 = vector.load %arg24[%c0_151, %c64_152] : memref<2x128xf32, #tpu.memory_space<vmem>>, vector<1x64xf32>
    tpu.vector_store %arg24[%c0_151, %c64_152], %150 {strides = array<i32>} : memref<2x128xf32, #tpu.memory_space<vmem>>, vector<1x64xf32>,
    %152 = vector.extract_strided_slice %141 {offsets = [0, 64], sizes = [1, 64], strides = [1, 1]} : vector<5x128xf32> to vector<1x64xf32>
    %c1_153 = arith.constant 1 : index
    %c0_154 = arith.constant 0 : index
    %153 = vector.load %arg23[%c1_153, %c0_154] : memref<2x192xf32, #tpu.memory_space<vmem>>, vector<1x64xf32>
    tpu.vector_store %arg23[%c1_153, %c0_154], %152 {strides = array<i32>} : memref<2x192xf32, #tpu.memory_space<vmem>>, vector<1x64xf32>,
    %154 = vector.extract_strided_slice %141 {offsets = [1, 64], sizes = [1, 64], strides = [1, 1]} : vector<5x128xf32> to vector<1x64xf32>
    %c1_155 = arith.constant 1 : index
    %c64_156 = arith.constant 64 : index
    %155 = vector.load %arg23[%c1_155, %c64_156] : memref<2x192xf32, #tpu.memory_space<vmem>>, vector<1x64xf32>
    tpu.vector_store %arg23[%c1_155, %c64_156], %154 {strides = array<i32>} : memref<2x192xf32, #tpu.memory_space<vmem>>, vector<1x64xf32>,
    %156 = vector.extract_strided_slice %141 {offsets = [2, 64], sizes = [1, 64], strides = [1, 1]} : vector<5x128xf32> to vector<1x64xf32>
    %c1_157 = arith.constant 1 : index
    %c128_158 = arith.constant 128 : index
    %157 = vector.load %arg23[%c1_157, %c128_158] : memref<2x192xf32, #tpu.memory_space<vmem>>, vector<1x64xf32>
    tpu.vector_store %arg23[%c1_157, %c128_158], %156 {strides = array<i32>} : memref<2x192xf32, #tpu.memory_space<vmem>>, vector<1x64xf32>,
    %158 = vector.extract_strided_slice %141 {offsets = [3, 64], sizes = [1, 64], strides = [1, 1]} : vector<5x128xf32> to vector<1x64xf32>
    %c1_159 = arith.constant 1 : index
    %c0_160 = arith.constant 0 : index
    %159 = vector.load %arg24[%c1_159, %c0_160] : memref<2x128xf32, #tpu.memory_space<vmem>>, vector<1x64xf32>
    tpu.vector_store %arg24[%c1_159, %c0_160], %158 {strides = array<i32>} : memref<2x128xf32, #tpu.memory_space<vmem>>, vector<1x64xf32>,
    %160 = vector.extract_strided_slice %141 {offsets = [4, 64], sizes = [1, 64], strides = [1, 1]} : vector<5x128xf32> to vector<1x64xf32>
    %c1_161 = arith.constant 1 : index
    %c64_162 = arith.constant 64 : index
    %161 = vector.load %arg24[%c1_161, %c64_162] : memref<2x128xf32, #tpu.memory_space<vmem>>, vector<1x64xf32>
    tpu.vector_store %arg24[%c1_161, %c64_162], %160 {strides = array<i32>} : memref<2x128xf32, #tpu.memory_space<vmem>>, vector<1x64xf32>,
    %c0_163 = arith.constant 0 : index
    %c0_164 = arith.constant 0 : index
    %162 = vector.load %arg23[%c0_163, %c0_164] : memref<2x192xf32, #tpu.memory_space<vmem>>, vector<2x192xf32>
    %c0_165 = arith.constant 0 : index
    %c0_166 = arith.constant 0 : index
    %163 = vector.load %arg9[%c0_165, %c0_166] : memref<192x64xf32, #tpu.memory_space<vmem>>, vector<192x64xf32>
    %cst_167 = arith.constant dense<0.000000e+00> : vector<2x64xf32>
    %164 = tpu.matmul %162, %163, %cst_167 {dimension_numbers = #tpu.dot_dimension_numbers<[1], [0], [0], [1], [0, 0, 1, 1], [], []>} : vector<2x192xf32>, vector<192x64xf32>, vector<2x64xf32> -> vector<2x64xf32>
    %c0_168 = arith.constant 0 : index
    %c0_169 = arith.constant 0 : index
    %165 = vector.load %arg10[%c0_168, %c0_169] : memref<1x64xf32, #tpu.memory_space<vmem>>, vector<1x64xf32>
    %166 = vector.broadcast %165 : vector<1x64xf32> to vector<2x64xf32>
    %167 = arith.addf %164, %166 : vector<2x64xf32>
    %c0_170 = arith.constant 0 : index
    %c0_171 = arith.constant 0 : index
    %168 = vector.load %arg15[%c0_170, %c0_171] : memref<2x64xf32, #tpu.memory_space<vmem>>, vector<2x64xf32>
    tpu.vector_store %arg15[%c0_170, %c0_171], %167 {strides = array<i32>} : memref<2x64xf32, #tpu.memory_space<vmem>>, vector<2x64xf32>,
    %c0_172 = arith.constant 0 : index
    %c0_173 = arith.constant 0 : index
    %169 = vector.load %arg24[%c0_172, %c0_173] : memref<2x128xf32, #tpu.memory_space<vmem>>, vector<2x128xf32>
    %c0_174 = arith.constant 0 : index
    %c0_175 = arith.constant 0 : index
    %170 = vector.load %arg11[%c0_174, %c0_175] : memref<128x64xf32, #tpu.memory_space<vmem>>, vector<128x64xf32>
    %cst_176 = arith.constant dense<0.000000e+00> : vector<2x64xf32>
    %171 = tpu.matmul %169, %170, %cst_176 {dimension_numbers = #tpu.dot_dimension_numbers<[1], [0], [0], [1], [0, 0, 1, 1], [], []>} : vector<2x128xf32>, vector<128x64xf32>, vector<2x64xf32> -> vector<2x64xf32>
    %c0_177 = arith.constant 0 : index
    %c0_178 = arith.constant 0 : index
    %172 = vector.load %arg12[%c0_177, %c0_178] : memref<1x64xf32, #tpu.memory_space<vmem>>, vector<1x64xf32>
    %173 = vector.broadcast %172 : vector<1x64xf32> to vector<2x64xf32>
    %174 = arith.addf %171, %173 : vector<2x64xf32>
    %cst_179 = arith.constant 0.000000e+00 : f32
    %175 = vector.broadcast %cst_179 : f32 to vector<2x64xf32>
    %176 = arith.maximumf %174, %175 : vector<2x64xf32>
    %c0_180 = arith.constant 0 : index
    %c0_181 = arith.constant 0 : index
    %177 = vector.load %arg13[%c0_180, %c0_181] : memref<64x1xf32, #tpu.memory_space<vmem>>, vector<64x1xf32>
    %cst_182 = arith.constant dense<0.000000e+00> : vector<2x1xf32>
    %178 = tpu.matmul %176, %177, %cst_182 {dimension_numbers = #tpu.dot_dimension_numbers<[1], [0], [0], [1], [0, 0, 1, 1], [], []>} : vector<2x64xf32>, vector<64x1xf32>, vector<2x1xf32> -> vector<2x1xf32>
    %c0_183 = arith.constant 0 : index
    %c0_184 = arith.constant 0 : index
    %179 = vector.load %arg14[%c0_183, %c0_184] : memref<1x1xf32, #tpu.memory_space<vmem>>, vector<1x1xf32>
    %180 = vector.broadcast %179 : vector<1x1xf32> to vector<2x1xf32>
    %181 = arith.addf %178, %180 : vector<2x1xf32>
    %182 = math.tanh %181 : vector<2x1xf32>
    %c0_185 = arith.constant 0 : index
    %c0_186 = arith.constant 0 : index
    %183 = vector.load %arg16[%c0_185, %c0_186] : memref<2x1xf32, #tpu.memory_space<vmem>>, vector<2x1xf32>
    tpu.vector_store %arg16[%c0_185, %c0_186], %182 {strides = array<i32>} : memref<2x1xf32, #tpu.memory_space<vmem>>, vector<2x1xf32>,
    return
  }
}

</mosaic_0001>

<bundles_post_ra>
// kernel: net_forward.1
= control target key start
LH: loop header
LB: loop body
LE: loop exit
PB: predicated region body
PF: predicated region fallthrough
CT: control target
= control target key end

     0   :  { %s6999_s0 = inlined_call_operand.vmem [shape: f32[2,8,8,3], index: 0, kind: input, shape index: {}]   ;;  %s7000_s1 = inlined_call_operand.vmem [shape: bf16[27,32], index: 1, kind: input, shape index: {}]   ;;  %s7001_s2 = inlined_call_operand.vmem [shape: f32[1,32], index: 2, kind: input, shape index: {}]   ;;  %s7002_s3 = inlined_call_operand.vmem [shape: bf16[288,64], index: 3, kind: input, shape index: {}]   ;;  %s7003_s4 = inlined_call_operand.vmem [shape: f32[1,64], index: 4, kind: input, shape index: {}]   ;;  %s7004_s5 = inlined_call_operand.vmem [shape: bf16[576,128], index: 5, kind: input, shape index: {}]   ;;  %s7005_s6 = inlined_call_operand.vmem [shape: f32[1,128], index: 6, kind: input, shape index: {}]   ;;  %s7006_s7 = inlined_call_operand.vmem [shape: f32[5,128], index: 7, kind: input, shape index: {}]   ;;  %s7007_s8 = inlined_call_operand.vmem [shape: f32[5,1], index: 8, kind: input, shape index: {}]   ;;  %s7008_s9 = inlined_call_operand.vmem [shape: f32[192,64], index: 9, kind: input, shape index: {}]   ;;  %s7009_s10 = inlined_call_operand.vmem [shape: f32[1,64], index: 10, kind: input, shape index: {}]   ;;  %s7010_s11 = inlined_call_operand.vmem [shape: f32[128,64], index: 11, kind: input, shape index: {}]   ;;  %s7011_s12 = inlined_call_operand.vmem [shape: f32[1,64], index: 12, kind: input, shape index: {}]   ;;  %s7012_s13 = inlined_call_operand.vmem [shape: f32[64,1], index: 13, kind: input, shape index: {}]   ;;  %s7013_s14 = inlined_call_operand.<no memory space> [shape: f32[1,1], index: 14, kind: input, shape index: {}]   ;;  %s7014_s15 = inlined_call_operand.hbm [shape: f32[2,64], index: 15, kind: output, shape index: {0}]   ;;  %s7015_s16 = inlined_call_operand.vmem [shape: f32[2,1], index: 16, kind: output, shape index: {1}]  }
   0x1   :  { %7017 = sst [smem:[#allocation14_spill]] %s6999_s0  ;;  %v22_v0 = vstv %s7013_s14 }
   0x2   :  { %23 = vst [vmem:[#allocation10] sm:$0x1] %v22_v0 }
   0x3   :  { %vm72_vm0 = vcmask 23552   ;;  %vm74_vm1 = vcmask 17408   ;;  %s7018_s25 = sld [smem:[#allocation14_spill]]  ;;  %v4732_v2 = vmov 0.0   ;;  %vm84_vm2 = vcmask 16384   ;;  %s4733_s30 = smov 3  }
   0x4   :  { %73 = vst.msk [vmem:[#allocation2] sm:$0xff] %vm72_vm0, %v4732_v2  ;;  %76 = vst.msk [vmem:[#allocation2 + $0xa0] sm:$0xff] %vm72_vm0, %v4732_v2  ;;  %vm221_vm3 = vcmask 1046528   ;;  %vm335_vm4 = vcmask 1045504   ;;  %s4734_s0 = smov 6   ;;  %s4735_s19 = smov 9  }
   0x5   :  { %75 = vst.msk [vmem:[#allocation2 + $0x8] sm:$0x3] %vm74_vm1, %v4732_v2  ;;  %77 = vst.msk [vmem:[#allocation2 + $0xa8] sm:$0x3] %vm74_vm1, %v4732_v2  ;;  %s4736_s20 = smov 12   ;;  %s4737_s21 = smov 15  }
   0x6   :  { %79 = vst.msk [vmem:[#allocation2 + $0x90] sm:$0xff] %vm72_vm0, %v4732_v2  ;;  %81 = vst.msk [vmem:[#allocation2 + $0x130] sm:$0xff] %vm72_vm0, %v4732_v2  ;;  %s4738_s24 = smov 18   ;;  %s4739_s14 = smov 21   ;;  %vm942_vm5 = vcmask 1044480  }
   0x7   :  { %80 = vst.msk [vmem:[#allocation2 + $0x98] sm:$0x3] %vm74_vm1, %v4732_v2  ;;  %82 = vst.msk [vmem:[#allocation2 + $0x138] sm:$0x3] %vm74_vm1, %v4732_v2 }
   0x8   :  { %86 = vst.msk [vmem:[#allocation2 + $0x20] sm:$0x1] %vm84_vm2, %v4732_v2  ;;  %102 = vst.msk [vmem:[#allocation2 + $0x29] sm:$0x1] %vm84_vm2, %v4732_v2 }
   0x9   :  { %v57_v1 = vld [vmem:[%s7018_s25 + $0x8] sm:$0xff]  ;;  %v58_v3 = vld [vmem:[%s7018_s25 + $0x10] sm:$0xff]  ;;  %v56_v4 = vld [vmem:[%s7018_s25] sm:$0xff]  ;;  %85 = vst.msk [vmem:[#allocation2 + $0x10] sm:$0x1] %vm84_vm2, %v4732_v2 }
   0xa   :  { %118 = vst.msk [vmem:[#allocation2 + $0x21] sm:$0xff] %vm72_vm0, %v57_v1  ;;  %119 = vst.msk [vmem:[#allocation2 + $0x31] sm:$0xff] %vm72_vm0, %v58_v3  ;;  %v59_v5 = vld [vmem:[%s7018_s25 + $0x18] sm:$0xff]  ;;  %v60_v6 = vld [vmem:[%s7018_s25 + $0x20] sm:$0xff] }
   0xb   :  { %87 = vst.msk [vmem:[#allocation2 + $0x30] sm:$0x1] %vm84_vm2, %v4732_v2  ;;  %88 = vst.msk [vmem:[#allocation2 + $0x40] sm:$0x1] %vm84_vm2, %v4732_v2  ;;  %v62_v7 = vld [vmem:[%s7018_s25 + $0x30] sm:$0xff]  ;;  %v61_v8 = vld [vmem:[%s7018_s25 + $0x28] sm:$0xff] }
   0xc   :  { %89 = vst.msk [vmem:[#allocation2 + $0x50] sm:$0x1] %vm84_vm2, %v4732_v2  ;;  %90 = vst.msk [vmem:[#allocation2 + $0x60] sm:$0x1] %vm84_vm2, %v4732_v2  ;;  %v63_v9 = vld [vmem:[%s7018_s25 + $0x38] sm:$0xff]  ;;  %v64_v10 = vld [vmem:[%s7018_s25 + $0x40] sm:$0xff] }
   0xd   :  { %91 = vst.msk [vmem:[#allocation2 + $0x70] sm:$0x1] %vm84_vm2, %v4732_v2  ;;  %92 = vst.msk [vmem:[#allocation2 + $0x80] sm:$0x1] %vm84_vm2, %v4732_v2  ;;  %v66_v11 = vld [vmem:[%s7018_s25 + $0x50] sm:$0xff]  ;;  %v65_v12 = vld [vmem:[%s7018_s25 + $0x48] sm:$0xff] }
   0xe   :  { %93 = vst.msk [vmem:[#allocation2 + $0xb0] sm:$0x1] %vm84_vm2, %v4732_v2  ;;  %94 = vst.msk [vmem:[#allocation2 + $0xc0] sm:$0x1] %vm84_vm2, %v4732_v2  ;;  %v133_v13 = vld [vmem:[#allocation2] sm:$0xff]  ;;  %v67_v53 = vld [vmem:[%s7018_s25 + $0x58] sm:$0xff] }
   0xf   :  { %95 = vst.msk [vmem:[#allocation2 + $0xd0] sm:$0x1] %vm84_vm2, %v4732_v2  ;;  %96 = vst.msk [vmem:[#allocation2 + $0xe0] sm:$0x1] %vm84_vm2, %v4732_v2  ;;  %v134_v14 = vld [vmem:[#allocation2 + $0x8] sm:$0x3] }
  0x10   :  { %97 = vst.msk [vmem:[#allocation2 + $0xf0] sm:$0x1] %vm84_vm2, %v4732_v2  ;;  %98 = vst.msk [vmem:[#allocation2 + $0x100] sm:$0x1] %vm84_vm2, %v4732_v2  ;;  %v222_v15 = vrot.slane %v133_v13, 1  ;;  %v223_v16 = vrot.slane %v134_v14, 1 }
  0x11   :  { %99 = vst.msk [vmem:[#allocation2 + $0x110] sm:$0x1] %vm84_vm2, %v4732_v2  ;;  %100 = vst.msk [vmem:[#allocation2 + $0x120] sm:$0x1] %vm84_vm2, %v4732_v2  ;;  %v4959_v17 = vld [vmem:[#allocation2 + $0x20] sm:$0xff]  ;;  %v336_v33 = vrot.slane %v133_v13, 2 }
  0x12   :  { %101 = vst.msk [vmem:[#allocation2 + $0x19] sm:$0x1] %vm84_vm2, %v4732_v2  ;;  %103 = vst.msk [vmem:[#allocation2 + $0x39] sm:$0x1] %vm84_vm2, %v4732_v2  ;;  %v138_v18 = vld [vmem:[#allocation2 + $0x28] sm:$0x3]  ;;  %v224_v25 = vsel %vm221_vm3, %v222_v15, %v223_v16 }
  0x13   :  { %104 = vst.msk [vmem:[#allocation2 + $0x49] sm:$0x1] %vm84_vm2, %v4732_v2  ;;  %105 = vst.msk [vmem:[#allocation2 + $0x59] sm:$0x1] %vm84_vm2, %v4732_v2  ;;  %v4961_v19 = vld [vmem:[#allocation2 + $0x30] sm:$0xff]  ;;  %v228_v20 = vrot.slane %v4959_v17, 1  ;;  %270 = vrot.lane.b32.xlu0 %v224_v25, %s4733_s30 }
  0x14   :  { %106 = vst.msk [vmem:[#allocation2 + $0x69] sm:$0x1] %vm84_vm2, %v4732_v2  ;;  %107 = vst.msk [vmem:[#allocation2 + $0x79] sm:$0x1] %vm84_vm2, %v4732_v2  ;;  %v229_v21 = vrot.slane %v138_v18, 1  ;;  %v231_v23 = vrot.slane %v4961_v19, 1 }
  0x15   :  { %108 = vst.msk [vmem:[#allocation2 + $0x89] sm:$0x1] %vm84_vm2, %v4732_v2  ;;  %109 = vst.msk [vmem:[#allocation2 + $0xb9] sm:$0x1] %vm84_vm2, %v4732_v2  ;;  %v337_v34 = vrot.slane %v134_v14, 2  ;;  %v342_v43 = vrot.slane %v4959_v17, 2 }
  0x16   :  { %110 = vst.msk [vmem:[#allocation2 + $0xc9] sm:$0x1] %vm84_vm2, %v4732_v2  ;;  %111 = vst.msk [vmem:[#allocation2 + $0xd9] sm:$0x1] %vm84_vm2, %v4732_v2  ;;  %v4975_v30 = vsel %vm221_vm3, %v228_v20, %v229_v21  ;;  %v343_v44 = vrot.slane %v138_v18, 2  ;;  %v5006_v45 = vld [vmem:[#allocation2 + $0xa0] sm:$0xff] }
  0x17   :  { %112 = vst.msk [vmem:[#allocation2 + $0xe9] sm:$0x1] %vm84_vm2, %v4732_v2  ;;  %113 = vst.msk [vmem:[#allocation2 + $0xf9] sm:$0x1] %vm84_vm2, %v4732_v2  ;;  %274 = vrot.lane.b32.xlu1 %v4975_v30, %s4733_s30  ;;  %v338_v42 = vsel %vm335_vm4, %v336_v33, %v337_v34  ;;  %v345_v47 = vrot.slane %v4961_v19, 2  ;;  %v68_v62 = vld [vmem:[%s7018_s25 + $0x60] sm:$0xff] }
  0x18   :  { %114 = vst.msk [vmem:[#allocation2 + $0x109] sm:$0x1] %vm84_vm2, %v4732_v2  ;;  %115 = vst.msk [vmem:[#allocation2 + $0x119] sm:$0x1] %vm84_vm2, %v4732_v2  ;;  %v344_v51 = vsel %vm335_vm4, %v342_v43, %v343_v44 }
  0x19   :  { %116 = vst.msk [vmem:[#allocation2 + $0x129] sm:$0x1] %vm84_vm2, %v4732_v2  ;;  %v140_v22 = vld [vmem:[#allocation2 + $0x38] sm:$0x3] }
  0x1a   :  { %117 = vst.msk [vmem:[#allocation2 + $0x11] sm:$0xff] %vm72_vm0, %v56_v4  ;;  %120 = vst.msk [vmem:[#allocation2 + $0x41] sm:$0xff] %vm72_vm0, %v59_v5  ;;  %v232_v26 = vrot.slane %v140_v22, 1  ;;  %v346_v48 = vrot.slane %v140_v22, 2  ;;  %v4649_v4 = vld [vmem:[%s7000_s1] sm:$0xff]  }
  0x1b   :  { %121 = vst.msk [vmem:[#allocation2 + $0x51] sm:$0xff] %vm72_vm0, %v60_v6  ;;  %123 = vst.msk [vmem:[#allocation2 + $0x71] sm:$0xff] %vm72_vm0, %v62_v7  ;;  %4381 = vmatprep.subr.bf16.mxu0 %v4649_v4  ;;  %v4650_v6 = vld [vmem:[%s7000_s1 + $0x8] sm:$0x3f]   ;;  %v4740_v7 = vmov 65535  }
  0x1c   :  { %122 = vst.msk [vmem:[#allocation2 + $0x61] sm:$0xff] %vm72_vm0, %v61_v8  ;;  %124 = vst.msk [vmem:[#allocation2 + $0x81] sm:$0xff] %vm72_vm0, %v63_v9  ;;  %v4988_v36 = vsel %vm221_vm3, %v231_v23, %v232_v26  ;;  %v347_v52 = vsel %vm335_vm4, %v345_v47, %v346_v48  ;;  %v943_v8 = vsel %vm942_vm5, 4294967295, %v4740_v7  ;;  %4382 = vmatpush3.bf16.msra.mxu0 %v4649_v4 }
  0x1d   :  { %125 = vst.msk [vmem:[#allocation2 + $0xb1] sm:$0xff] %vm72_vm0, %v64_v10  ;;  %127 = vst.msk [vmem:[#allocation2 + $0xd1] sm:$0xff] %vm72_vm0, %v66_v11  ;;  %276 = vrot.lane.b32.xlu1 %v4988_v36, %s4733_s30  ;;  %v944_v9 = vsel %vm335_vm4, %v943_v8, 0 }
  0x1e   :  { %126 = vst.msk [vmem:[#allocation2 + $0xc1] sm:$0xff] %vm72_vm0, %v65_v12  ;;  %173 = vst.msk [vmem:[#allocation3] sm:$0xff] %vm72_vm0, %v133_v13  ;;  %v946_v10 = vand.u32 %v4650_v6, %v944_v9 }
  0x1f   :  { %175 = vst.msk [vmem:[#allocation3 + $0x10] sm:$0xff] %vm72_vm0, %v4959_v17  ;;  %176 = vst.msk [vmem:[#allocation3 + $0x18] sm:$0xff] %vm72_vm0, %v4961_v19 }
  0x20   :  { %181 = vst.msk [vmem:[#allocation3 + $0x40] sm:$0xff] %vm72_vm0, %v5006_v45  ;;  %128 = vst.msk [vmem:[#allocation2 + $0xe1] sm:$0xff] %vm72_vm0, %v67_v53  ;;  %4383 = vmatprep.subr.bf16.mxu0 %v946_v10 }
  0x21   :  { %v135_v24 = vld [vmem:[#allocation2 + $0x10] sm:$0xff]  ;;  %v136_v27 = vld [vmem:[#allocation2 + $0x18] sm:$0x3]  ;;  %v4971_v29 = vld [vmem:[#allocation2 + $0x40] sm:$0xff]  ;;  %129 = vst.msk [vmem:[#allocation2 + $0xf1] sm:$0xff] %vm72_vm0, %v68_v62 }
  0x22   :  { %v225_v28 = vrot.slane %v135_v24, 1  ;;  %174 = vst.msk [vmem:[#allocation3 + $0x8] sm:$0xff] %vm72_vm0, %v135_v24  ;;  %v226_v31 = vrot.slane %v136_v27, 1  ;;  %177 = vst.msk [vmem:[#allocation3 + $0x20] sm:$0xff] %vm72_vm0, %v4971_v29  ;;  %v4979_v32 = vld [vmem:[#allocation2 + $0x50] sm:$0xff]  ;;  %v339_v38 = vrot.slane %v135_v24, 2 }
  0x23   :  { %178 = vst.msk [vmem:[#allocation3 + $0x28] sm:$0xff] %vm72_vm0, %v4979_v32  ;;  %v4985_v35 = vld [vmem:[#allocation2 + $0x70] sm:$0xff]  ;;  %v340_v39 = vrot.slane %v136_v27, 2  ;;  %v4993_v40 = vld [vmem:[#allocation2 + $0x60] sm:$0xff]  ;;  %v142_v54 = vld [vmem:[#allocation2 + $0x48] sm:$0x3] }
  0x24   :  { %v227_v37 = vsel %vm221_vm3, %v225_v28, %v226_v31  ;;  %180 = vst.msk [vmem:[#allocation3 + $0x38] sm:$0xff] %vm72_vm0, %v4985_v35  ;;  %179 = vst.msk [vmem:[#allocation3 + $0x30] sm:$0xff] %vm72_vm0, %v4993_v40  ;;  %v4998_v41 = vld [vmem:[#allocation2 + $0xb0] sm:$0xff]  ;;  %v234_v55 = vrot.slane %v4971_v29, 1  ;;  %v235_v56 = vrot.slane %v142_v54, 1  ;;  %v348_v59 = vrot.slane %v4971_v29, 2 }
  0x25   :  { %272 = vrot.lane.b32.xlu0 %v227_v37, %s4733_s30  ;;  %182 = vst.msk [vmem:[#allocation3 + $0x48] sm:$0xff] %vm72_vm0, %v4998_v41  ;;  %v341_v46 = vsel %vm335_vm4, %v339_v38, %v340_v39  ;;  %v5012_v49 = vld [vmem:[#allocation2 + $0xd0] sm:$0xff]  ;;  %v5016_v50 = vld [vmem:[#allocation2 + $0xc0] sm:$0xff]  ;;  %v349_v60 = vrot.slane %v142_v54, 2  ;;  %v144_v63 = vld [vmem:[#allocation2 + $0x58] sm:$0x3] }
  0x26   :  { %184 = vst.msk [vmem:[#allocation3 + $0x58] sm:$0xff] %vm72_vm0, %v5012_v49  ;;  %183 = vst.msk [vmem:[#allocation3 + $0x50] sm:$0xff] %vm72_vm0, %v5016_v50  ;;  %386 = vrot.lane.b32.xlu1 %v341_v46, %s4734_s0  ;;  %v236_v58 = vsel %vm221_vm3, %v234_v55, %v235_v56  ;;  %v237_v0 = vrot.slane %v4979_v32, 1  ;;  %v238_v1 = vrot.slane %v144_v63, 1  ;;  %v351_v11 = vrot.slane %v4979_v32, 2 }
  0x27   :  { %v5036_v57 = vld [vmem:[#allocation2 + $0xe0] sm:$0xff]  ;;  %v5053_v61 = vsel %vm335_vm4, %v348_v59, %v349_v60  ;;  %v352_v12 = vrot.slane %v144_v63, 2 }
  0x28   :  { %185 = vst.msk [vmem:[#allocation3 + $0x60] sm:$0xff] %vm72_vm0, %v5036_v57  ;;  %v5069_v3 = vld [vmem:[#allocation2 + $0xf0] sm:$0xff]  ;;  %v239_v5 = vsel %vm221_vm3, %v237_v0, %v238_v1 }
  0x29   :  { %384 = vrot.lane.b32.xlu0 %v338_v42, %s4734_s0  ;;  %186 = vst.msk [vmem:[#allocation3 + $0x68] sm:$0xff] %vm72_vm0, %v5069_v3 }
  0x2a   :  { %390 = vrot.lane.b32.xlu1 %v347_v52, %s4734_s0 }
  0x2d   :  { %388 = vrot.lane.b32.xlu0 %v344_v51, %s4734_s0 }
  0x2e   :  { %453 = vrot.lane.b32.xlu1 %v4959_v17, %s4735_s19 }
  0x31   :  { %451 = vrot.lane.b32.xlu0 %v135_v24, %s4735_s19 }
  0x32   :  { %457 = vrot.lane.b32.xlu1 %v4971_v29, %s4735_s19 }
  0x35   :  { %455 = vrot.lane.b32.xlu0 %v4961_v19, %s4735_s19 }
  0x36   :  { %526 = vrot.lane.b32.xlu1 %v4975_v30, %s4736_s20 }
  0x39   :  { %524 = vrot.lane.b32.xlu0 %v227_v37, %s4736_s20 }
  0x3a   :  { %530 = vrot.lane.b32.xlu1 %v236_v58, %s4736_s20 }
  0x3d   :  { %528 = vrot.lane.b32.xlu0 %v4988_v36, %s4736_s20 }
  0x3e   :  { %597 = vrot.lane.b32.xlu1 %v344_v51, %s4737_s21 }
  0x41   :  { %595 = vrot.lane.b32.xlu0 %v341_v46, %s4737_s21 }
  0x42   :  { %601 = vrot.lane.b32.xlu1 %v5053_v61, %s4737_s21 }
  0x45   :  { %599 = vrot.lane.b32.xlu0 %v347_v52, %s4737_s21 }
  0x46   :  { %664 = vrot.lane.b32.xlu1 %v4961_v19, %s4738_s24 }
  0x49   :  { %662 = vrot.lane.b32.xlu0 %v4959_v17, %s4738_s24 }
  0x4a   :  { %668 = vrot.lane.b32.xlu1 %v4979_v32, %s4738_s24 }
  0x4d   :  { %666 = vrot.lane.b32.xlu0 %v4971_v29, %s4738_s24 }
  0x4e   :  { %737 = vrot.lane.b32.xlu1 %v4988_v36, %s4739_s14 }
  0x51   :  { %735 = vrot.lane.b32.xlu0 %v4975_v30, %s4739_s14 }
  0x52   :  { %741 = vrot.lane.b32.xlu1 %v239_v5, %s4739_s14 }
  0x55   :  { %739 = vrot.lane.b32.xlu0 %v236_v58, %s4739_s14 }
  0x56   :  { %24 = vsyncpa [#allocation12], 0  ;;  %4384 = vmatpush3.bf16.msra.mxu0 %v946_v10  ;;  %s4741_s17 = smov 24   ;;  %v70_v13 = vld [vmem:[%s7018_s25 + $0x70] sm:$0xff]  ;;  %v69_v14 = vld [vmem:[%s7018_s25 + $0x68] sm:$0xff]  ;;  %v353_v15 = vsel %vm335_vm4, %v351_v11, %v352_v12  ;;  %v240_v18 = vrot.slane %v4993_v40, 1 }
  0x57   :  { %808 = vrot.lane.b32.xlu1 %v347_v52, %s4741_s17  ;;  %v146_v16 = vld [vmem:[#allocation2 + $0x68] sm:$0x3]  ;;  %131 = vst.msk [vmem:[#allocation2 + $0x111] sm:$0xff] %vm72_vm0, %v70_v13  ;;  %130 = vst.msk [vmem:[#allocation2 + $0x101] sm:$0xff] %vm72_vm0, %v69_v14  ;;  %v148_v17 = vld [vmem:[#allocation2 + $0x78] sm:$0x3] }
  0x58   :  { %v241_v19 = vrot.slane %v146_v16, 1  ;;  %v243_v20 = vrot.slane %v4985_v35, 1  ;;  %v244_v21 = vrot.slane %v148_v17, 1  ;;  %v354_v26 = vrot.slane %v4993_v40, 2  ;;  %v71_v33 = vld [vmem:[%s7018_s25 + $0x78] sm:$0xff]  ;;  %v149_v34 = vld [vmem:[#allocation2 + $0x80] sm:$0xff] }
  0x59   :  { %806 = vrot.lane.b32.xlu0 %v344_v51, %s4741_s17  ;;  %v355_v27 = vrot.slane %v146_v16, 2  ;;  %v357_v28 = vrot.slane %v4985_v35, 2  ;;  %v358_v29 = vrot.slane %v148_v17, 2  ;;  %132 = vst.msk [vmem:[#allocation2 + $0x121] sm:$0xff] %vm72_vm0, %v71_v33  ;;  %v150_v36 = vld [vmem:[#allocation2 + $0x88] sm:$0x3] }
  0x5a   :  { %v242_v22 = vsel %vm221_vm3, %v240_v18, %v241_v19  ;;  %v245_v25 = vsel %vm221_vm3, %v243_v20, %v244_v21  ;;  %v518_v37 = vrot.slane %v149_v34, 1  ;;  %v519_v38 = vrot.slane %v150_v36, 1  ;;  %v151_v44 = vld [vmem:[#allocation2 + $0x90] sm:$0xff]  ;;  %v152_v46 = vld [vmem:[#allocation2 + $0x98] sm:$0x3]  ;;  %s4742_s25 = smov 32  }
  0x5b   :  { %812 = vrot.lane.b32.xlu1 %v353_v15, %s4741_s17  ;;  %v356_v30 = vsel %vm335_vm4, %v354_v26, %v355_v27  ;;  %v359_v31 = vsel %vm335_vm4, %v357_v28, %v358_v29  ;;  %v590_v42 = vrot.slane %v150_v36, 2  ;;  %v729_v47 = vrot.slane %v151_v44, 1  ;;  %v154_v55 = vld [vmem:[#allocation2 + $0xa8] sm:$0x3] }
  0x5c   :  { %v520_v39 = vsel %vm221_vm3, %v518_v37, %v519_v38  ;;  %v730_v48 = vrot.slane %v152_v46, 1  ;;  %vm318_vm6 = vcmask 48152   ;;  %v801_v54 = vrot.slane %v152_v46, 2  ;;  %v158_v1 = vld [vmem:[#allocation2 + $0xc8] sm:$0x3] }
  0x5d   :  { %810 = vrot.lane.b32.xlu0 %v5053_v61, %s4741_s17  ;;  %vm432_vm7 = vcmask 72752   ;;  %v246_v59 = vrot.slane %v5006_v45, 1  ;;  %v247_v60 = vrot.slane %v154_v55, 1  ;;  %v249_v63 = vrot.slane %v4998_v41, 1 }
  0x5e   :  { %v5109_v23 = vld [vmem:[#allocation2 + $0x110] sm:$0xff]  ;;  %v5111_v24 = vld [vmem:[#allocation2 + $0x100] sm:$0xff]  ;;  %v731_v52 = vsel %vm221_vm3, %v729_v47, %v730_v48  ;;  %v252_v7 = vrot.slane %v5016_v50, 1  ;;  %v253_v8 = vrot.slane %v158_v1, 1  ;;  %v255_v11 = vrot.slane %v5012_v49, 1 }
  0x5f   :  { %280 = vrot.lane.b32.xlu1 %v239_v5, %s4733_s30  ;;  %188 = vst.msk [vmem:[#allocation3 + $0x78] sm:$0xff] %vm72_vm0, %v5109_v23  ;;  %187 = vst.msk [vmem:[#allocation3 + $0x70] sm:$0xff] %vm72_vm0, %v5111_v24  ;;  %v248_v6 = vsel %vm221_vm3, %v246_v59, %v247_v60  ;;  %vm499_vm8 = vcmask 97352   ;;  %v361_v16 = vrot.slane %v154_v55, 2  ;;  %v363_v19 = vrot.slane %v4998_v41, 2 }
  0x60   :  { %v5183_v14 = vsel %vm221_vm3, %v252_v7, %v253_v8  ;;  %v369_v28 = vrot.slane %v5012_v49, 2  ;;  %vm572_vm9 = vcmask 121952   ;;  %vm643_vm10 = vcmask 146552  }
  0x61   :  { %278 = vrot.lane.b32.xlu0 %v236_v58, %s4733_s30  ;;  %v156_v58 = vld [vmem:[#allocation2 + $0xb8] sm:$0x3]  ;;  %vm710_vm11 = vcmask 171152   ;;  %vm783_vm12 = vcmask 195752   ;;  %vm854_vm13 = vcmask 220352   ;;  %vm917_vm14 = vcmask 220160  }
  0x62   :  { %v250_v0 = vrot.slane %v156_v58, 1  ;;  %v364_v20 = vrot.slane %v156_v58, 2  ;;  %vm1061_vm15 = vcmask 261120   ;;  %vm1063_vm0 = vcmask 254976  }
  0x63   :  { %284 = vrot.lane.b32.xlu1 %v245_v25, %s4733_s30  ;;  %1062 = vst.msk [vmem:[#allocation4] sm:$0xff] %vm1061_vm15, %v4732_v2  ;;  %1065 = vst.msk [vmem:[#allocation4 + $0xa0] sm:$0xff] %vm1061_vm15, %v4732_v2  ;;  %vm1073_vm1 = vcmask 253952   ;;  %vm1306_vm2 = vcmask 523520   ;;  %vm1419_vm5 = vcmask 785920  }
  0x64   :  { %v251_v10 = vsel %vm221_vm3, %v249_v63, %v250_v0  ;;  %v365_v27 = vsel %vm335_vm4, %v363_v19, %v364_v20  ;;  %v168_v19 = vld [vmem:[#allocation2 + $0x118] sm:$0x3]  ;;  %v264_v20 = vrot.slane %v5111_v24, 1  ;;  %1064 = vst.msk [vmem:[#allocation4 + $0x8] sm:$0x3] %vm1063_vm0, %v4732_v2 }
  0x65   :  { %282 = vrot.lane.b32.xlu0 %v242_v22, %s4733_s30  ;;  %1071 = vst.msk [vmem:[#allocation4 + $0x138] sm:$0x3] %vm1063_vm0, %v4732_v2  ;;  %1066 = vst.msk [vmem:[#allocation4 + $0xa8] sm:$0x3] %vm1063_vm0, %v4732_v2 }
  0x66   :  { %1068 = vst.msk [vmem:[#allocation4 + $0x90] sm:$0xff] %vm1061_vm15, %v4732_v2  ;;  %1070 = vst.msk [vmem:[#allocation4 + $0x130] sm:$0xff] %vm1061_vm15, %v4732_v2 }
  0x67   :  { %394 = vrot.lane.b32.xlu1 %v353_v15, %s4734_s0  ;;  %1069 = vst.msk [vmem:[#allocation4 + $0x98] sm:$0x3] %vm1063_vm0, %v4732_v2 }
  0x68   :  { %1076 = vst.msk [vmem:[#allocation4 + $0x30] sm:$0x1] %vm1073_vm1, %v4732_v2  ;;  %1074 = vst.msk [vmem:[#allocation4 + $0x10] sm:$0x1] %vm1073_vm1, %v4732_v2 }
  0x69   :  { %392 = vrot.lane.b32.xlu0 %v5053_v61, %s4734_s0  ;;  %1075 = vst.msk [vmem:[#allocation4 + $0x20] sm:$0x1] %vm1073_vm1, %v4732_v2  ;;  %1077 = vst.msk [vmem:[#allocation4 + $0x40] sm:$0x1] %vm1073_vm1, %v4732_v2 }
  0x6a   :  { %1078 = vst.msk [vmem:[#allocation4 + $0x50] sm:$0x1] %vm1073_vm1, %v4732_v2  ;;  %1079 = vst.msk [vmem:[#allocation4 + $0x60] sm:$0x1] %vm1073_vm1, %v4732_v2 }
  0x6b   :  { %398 = vrot.lane.b32.xlu1 %v359_v31, %s4734_s0  ;;  %1080 = vst.msk [vmem:[#allocation4 + $0x70] sm:$0x1] %vm1073_vm1, %v4732_v2  ;;  %1081 = vst.msk [vmem:[#allocation4 + $0x80] sm:$0x1] %vm1073_vm1, %v4732_v2 }
  0x6c   :  { %1082 = vst.msk [vmem:[#allocation4 + $0xb0] sm:$0x1] %vm1073_vm1, %v4732_v2  ;;  %1083 = vst.msk [vmem:[#allocation4 + $0xc0] sm:$0x1] %vm1073_vm1, %v4732_v2 }
  0x6d   :  { %396 = vrot.lane.b32.xlu0 %v356_v30, %s4734_s0  ;;  %1084 = vst.msk [vmem:[#allocation4 + $0xd0] sm:$0x1] %vm1073_vm1, %v4732_v2  ;;  %1085 = vst.msk [vmem:[#allocation4 + $0xe0] sm:$0x1] %vm1073_vm1, %v4732_v2 }
  0x6e   :  { %1086 = vst.msk [vmem:[#allocation4 + $0xf0] sm:$0x1] %vm1073_vm1, %v4732_v2  ;;  %1087 = vst.msk [vmem:[#allocation4 + $0x100] sm:$0x1] %vm1073_vm1, %v4732_v2 }
  0x6f   :  { %461 = vrot.lane.b32.xlu1 %v4993_v40, %s4735_s19  ;;  %1088 = vst.msk [vmem:[#allocation4 + $0x110] sm:$0x1] %vm1073_vm1, %v4732_v2  ;;  %1089 = vst.msk [vmem:[#allocation4 + $0x120] sm:$0x1] %vm1073_vm1, %v4732_v2 }
  0x70   :  { %1090 = vst.msk [vmem:[#allocation4 + $0x19] sm:$0x1] %vm1073_vm1, %v4732_v2  ;;  %1091 = vst.msk [vmem:[#allocation4 + $0x29] sm:$0x1] %vm1073_vm1, %v4732_v2 }
  0x71   :  { %459 = vrot.lane.b32.xlu0 %v4979_v32, %s4735_s19  ;;  %v589_v32 = vrot.slane %v149_v34, 2  ;;  %1092 = vst.msk [vmem:[#allocation4 + $0x39] sm:$0x1] %vm1073_vm1, %v4732_v2  ;;  %1093 = vst.msk [vmem:[#allocation4 + $0x49] sm:$0x1] %vm1073_vm1, %v4732_v2 }
  0x72   :  { %1094 = vst.msk [vmem:[#allocation4 + $0x59] sm:$0x1] %vm1073_vm1, %v4732_v2  ;;  %1095 = vst.msk [vmem:[#allocation4 + $0x69] sm:$0x1] %vm1073_vm1, %v4732_v2 }
  0x73   :  { %465 = vrot.lane.b32.xlu1 %v149_v34, %s4735_s19  ;;  %v591_v43 = vsel %vm335_vm4, %v589_v32, %v590_v42  ;;  %v162_v42 = vld [vmem:[#allocation2 + $0xe8] sm:$0x3]  ;;  %1096 = vst.msk [vmem:[#allocation4 + $0x79] sm:$0x1] %vm1073_vm1, %v4732_v2  ;;  %1097 = vst.msk [vmem:[#allocation4 + $0x89] sm:$0x1] %vm1073_vm1, %v4732_v2 }
  0x74   :  { %1098 = vst.msk [vmem:[#allocation4 + $0xb9] sm:$0x1] %vm1073_vm1, %v4732_v2  ;;  %1099 = vst.msk [vmem:[#allocation4 + $0xc9] sm:$0x1] %vm1073_vm1, %v4732_v2 }
  0x75   :  { %463 = vrot.lane.b32.xlu0 %v4985_v35, %s4735_s19  ;;  %1100 = vst.msk [vmem:[#allocation4 + $0xd9] sm:$0x1] %vm1073_vm1, %v4732_v2  ;;  %1101 = vst.msk [vmem:[#allocation4 + $0xe9] sm:$0x1] %vm1073_vm1, %v4732_v2 }
  0x76   :  { %1102 = vst.msk [vmem:[#allocation4 + $0xf9] sm:$0x1] %vm1073_vm1, %v4732_v2  ;;  %1103 = vst.msk [vmem:[#allocation4 + $0x109] sm:$0x1] %vm1073_vm1, %v4732_v2 }
  0x77   :  { %534 = vrot.lane.b32.xlu1 %v242_v22, %s4736_s20  ;;  %1104 = vst.msk [vmem:[#allocation4 + $0x119] sm:$0x1] %vm1073_vm1, %v4732_v2  ;;  %1105 = vst.msk [vmem:[#allocation4 + $0x129] sm:$0x1] %vm1073_vm1, %v4732_v2 }
  0x79   :  { %532 = vrot.lane.b32.xlu0 %v239_v5, %s4736_s20  ;;  %v160_v5 = vld [vmem:[#allocation2 + $0xd8] sm:$0x3] }
  0x7a   :  { %v256_v12 = vrot.slane %v160_v5, 1  ;;  %v370_v29 = vrot.slane %v160_v5, 2 }
  0x7b   :  { %538 = vrot.lane.b32.xlu1 %v520_v39, %s4736_s20 }
  0x7c   :  { %v5187_v18 = vsel %vm221_vm3, %v255_v11, %v256_v12 }
  0x7d   :  { %536 = vrot.lane.b32.xlu0 %v245_v25, %s4736_s20 }
  0x7f   :  { %605 = vrot.lane.b32.xlu1 %v356_v30, %s4737_s21 }
  0x81   :  { %603 = vrot.lane.b32.xlu0 %v353_v15, %s4737_s21  ;;  %v360_v15 = vrot.slane %v5006_v45, 2 }
  0x83   :  { %609 = vrot.lane.b32.xlu1 %v591_v43, %s4737_s21  ;;  %v362_v45 = vsel %vm335_vm4, %v360_v15, %v361_v16 }
  0x85   :  { %607 = vrot.lane.b32.xlu0 %v359_v31, %s4737_s21  ;;  %v271_v51 = vpop.permute.xlu0 %270 }
  0x86   :  { %319 = vst.msk [vmem:[#allocation3] sm:$0xff] %vm318_vm6, %v271_v51 }
  0x87   :  { %672 = vrot.lane.b32.xlu1 %v4985_v35, %s4738_s24  ;;  %v800_v35 = vrot.slane %v151_v44, 2 }
  0x89   :  { %670 = vrot.lane.b32.xlu0 %v4993_v40, %s4738_s24  ;;  %v275_v40 = vpop.permute.xlu1 %274  ;;  %v802_v62 = vsel %vm335_vm4, %v800_v35, %v801_v54  ;;  %v373_v35 = vrot.slane %v162_v42, 2 }
  0x8a   :  { %321 = vst.msk [vmem:[#allocation3 + $0x10] sm:$0xff] %vm318_vm6, %v275_v40  ;;  %v372_v40 = vrot.slane %v5036_v57, 2 }
  0x8b   :  { %676 = vrot.lane.b32.xlu1 %v151_v44, %s4738_s24  ;;  %v259_v44 = vrot.slane %v162_v42, 1 }
  0x8c   :  { %v5250_v55 = vsel %vm335_vm4, %v372_v40, %v373_v35 }
  0x8d   :  { %674 = vrot.lane.b32.xlu0 %v149_v34, %s4738_s24  ;;  %v5208_v34 = vsel %vm335_vm4, %v369_v28, %v370_v29 }
  0x8f   :  { %745 = vrot.lane.b32.xlu1 %v245_v25, %s4739_s14  ;;  %v277_v56 = vpop.permute.xlu1 %276  ;;  %v367_v25 = vrot.slane %v158_v1, 2 }
  0x90   :  { %322 = vst.msk [vmem:[#allocation3 + $0x18] sm:$0xff] %vm318_vm6, %v277_v56 }
  0x91   :  { %743 = vrot.lane.b32.xlu0 %v242_v22, %s4739_s14  ;;  %v366_v22 = vrot.slane %v5016_v50, 2 }
  0x93   :  { %749 = vrot.lane.b32.xlu1 %v731_v52, %s4739_s14 }
  0x95   :  { %747 = vrot.lane.b32.xlu0 %v520_v39, %s4739_s14 }
  0x97   :  { %v273_v53 = vpop.permute.xlu0 %272  ;;  %816 = vrot.lane.b32.xlu1 %v359_v31, %s4741_s17  ;;  %v5205_v31 = vsel %vm335_vm4, %v366_v22, %v367_v25  ;;  %v267_v22 = vrot.slane %v5109_v23, 1  ;;  %v268_v25 = vrot.slane %v168_v19, 1 }
  0x98   :  { %320 = vst.msk [vmem:[#allocation3 + $0x8] sm:$0xff] %vm318_vm6, %v273_v53  ;;  %v387_v4 = vpop.permute.xlu1 %386 }
  0x99   :  { %814 = vrot.lane.b32.xlu0 %v356_v30, %s4741_s17  ;;  %434 = vst.msk [vmem:[#allocation3 + $0x8] sm:$0xff] %vm432_vm7, %v387_v4  ;;  %v5316_v29 = vsel %vm221_vm3, %v267_v22, %v268_v25 }
  0x9b   :  { %v385_v61 = vpop.permute.xlu0 %384  ;;  %820 = vrot.lane.b32.xlu1 %v802_v62, %s4741_s17  ;;  %v164_v62 = vld [vmem:[#allocation2 + $0xf8] sm:$0x3] }
  0x9c   :  { %433 = vst.msk [vmem:[#allocation3] sm:$0xff] %vm432_vm7, %v385_v61  ;;  %v391_v13 = vpop.permute.xlu1 %390  ;;  %v262_v0 = vrot.slane %v164_v62, 1  ;;  %v376_v11 = vrot.slane %v164_v62, 2 }
  0x9d   :  { %818 = vrot.lane.b32.xlu0 %v591_v43, %s4741_s17  ;;  %436 = vst.msk [vmem:[#allocation3 + $0x18] sm:$0xff] %vm432_vm7, %v391_v13 }
  0x9f   :  { %v389_v9 = vpop.permute.xlu0 %388  ;;  %288 = vrot.lane.b32.xlu1 %v251_v10, %s4733_s30 }
  0xa0   :  { %435 = vst.msk [vmem:[#allocation3 + $0x10] sm:$0xff] %vm432_vm7, %v389_v9  ;;  %v454_v21 = vpop.permute.xlu1 %453 }
  0xa1   :  { %286 = vrot.lane.b32.xlu0 %v248_v6, %s4733_s30  ;;  %501 = vst.msk [vmem:[#allocation3 + $0x8] sm:$0xff] %vm499_vm8, %v454_v21 }
  0xa3   :  { %v452_v17 = vpop.permute.xlu0 %451  ;;  %292 = vrot.lane.b32.xlu1 %v5187_v18, %s4733_s30 }
  0xa4   :  { %500 = vst.msk [vmem:[#allocation3] sm:$0xff] %vm499_vm8, %v452_v17  ;;  %v458_v30 = vpop.permute.xlu1 %457  ;;  %v166_v17 = vld [vmem:[#allocation2 + $0x108] sm:$0x3] }
  0xa5   :  { %290 = vrot.lane.b32.xlu0 %v5183_v14, %s4733_s30  ;;  %503 = vst.msk [vmem:[#allocation3 + $0x18] sm:$0xff] %vm499_vm8, %v458_v30  ;;  %v265_v21 = vrot.slane %v166_v17, 1 }
  0xa7   :  { %v456_v26 = vpop.permute.xlu0 %455  ;;  %402 = vrot.lane.b32.xlu1 %v365_v27, %s4734_s0 }
  0xa8   :  { %502 = vst.msk [vmem:[#allocation3 + $0x10] sm:$0xff] %vm499_vm8, %v456_v26  ;;  %v527_v36 = vpop.permute.xlu1 %526 }
  0xa9   :  { %400 = vrot.lane.b32.xlu0 %v362_v45, %s4734_s0  ;;  %574 = vst.msk [vmem:[#allocation3 + $0x8] sm:$0xff] %vm572_vm9, %v527_v36  ;;  %v381_v36 = vrot.slane %v5109_v23, 2 }
  0xab   :  { %v525_v33 = vpop.permute.xlu0 %524  ;;  %406 = vrot.lane.b32.xlu1 %v5208_v34, %s4734_s0 }
  0xac   :  { %573 = vst.msk [vmem:[#allocation3] sm:$0xff] %vm572_vm9, %v525_v33  ;;  %v531_v38 = vpop.permute.xlu1 %530  ;;  %v379_v33 = vrot.slane %v166_v17, 2 }
  0xad   :  { %404 = vrot.lane.b32.xlu0 %v5205_v31, %s4734_s0  ;;  %576 = vst.msk [vmem:[#allocation3 + $0x18] sm:$0xff] %vm572_vm9, %v531_v38 }
  0xaf   :  { %v529_v37 = vpop.permute.xlu0 %528  ;;  %469 = vrot.lane.b32.xlu1 %v5016_v50, %s4735_s19 }
  0xb0   :  { %575 = vst.msk [vmem:[#allocation3 + $0x10] sm:$0xff] %vm572_vm9, %v529_v37  ;;  %v598_v32 = vpop.permute.xlu1 %597  ;;  %v382_v37 = vrot.slane %v168_v19, 2 }
  0xb1   :  { %467 = vrot.lane.b32.xlu0 %v4998_v41, %s4735_s19  ;;  %645 = vst.msk [vmem:[#allocation3 + $0x8] sm:$0xff] %vm643_vm10, %v598_v32  ;;  %v258_v41 = vrot.slane %v5036_v57, 1 }
  0xb2   :  { %v5336_v42 = vsel %vm335_vm4, %v381_v36, %v382_v37 }
  0xb3   :  { %v596_v39 = vpop.permute.xlu0 %595  ;;  %473 = vrot.lane.b32.xlu1 %v5036_v57, %s4735_s19  ;;  %v5235_v48 = vsel %vm221_vm3, %v258_v41, %v259_v44 }
  0xb4   :  { %644 = vst.msk [vmem:[#allocation3] sm:$0xff] %vm643_vm10, %v596_v39  ;;  %v602_v46 = vpop.permute.xlu1 %601 }
  0xb5   :  { %471 = vrot.lane.b32.xlu0 %v5012_v49, %s4735_s19  ;;  %647 = vst.msk [vmem:[#allocation3 + $0x18] sm:$0xff] %vm643_vm10, %v602_v46 }
  0xb7   :  { %v600_v43 = vpop.permute.xlu0 %599  ;;  %542 = vrot.lane.b32.xlu1 %v5183_v14, %s4736_s20 }
  0xb8   :  { %646 = vst.msk [vmem:[#allocation3 + $0x10] sm:$0xff] %vm643_vm10, %v600_v43  ;;  %v665_v51 = vpop.permute.xlu1 %664 }
  0xb9   :  { %540 = vrot.lane.b32.xlu0 %v251_v10, %s4736_s20  ;;  %712 = vst.msk [vmem:[#allocation3 + $0x8] sm:$0xff] %vm710_vm11, %v665_v51  ;;  %v375_v10 = vrot.slane %v5069_v3, 2  ;;  %v170_v51 = vld [vmem:[#allocation2 + $0x128] sm:$0x3] }
  0xba   :  { %v522_v35 = vrot.slane %v170_v51, 1 }
  0xbb   :  { %v663_v47 = vpop.permute.xlu0 %662  ;;  %546 = vrot.lane.b32.xlu1 %v5235_v48, %s4736_s20  ;;  %v5296_v16 = vsel %vm335_vm4, %v375_v10, %v376_v11 }
  0xbc   :  { %711 = vst.msk [vmem:[#allocation3] sm:$0xff] %vm710_vm11, %v663_v47  ;;  %v669_v53 = vpop.permute.xlu1 %668  ;;  %v169_v47 = vld [vmem:[#allocation2 + $0x120] sm:$0xff] }
  0xbd   :  { %544 = vrot.lane.b32.xlu0 %v5187_v18, %s4736_s20  ;;  %714 = vst.msk [vmem:[#allocation3 + $0x18] sm:$0xff] %vm710_vm11, %v669_v53 }
  0xbf   :  { %v667_v52 = vpop.permute.xlu0 %666  ;;  %613 = vrot.lane.b32.xlu1 %v5205_v31, %s4737_s21 }
  0xc0   :  { %713 = vst.msk [vmem:[#allocation3 + $0x10] sm:$0xff] %vm710_vm11, %v667_v52  ;;  %v738_v56 = vpop.permute.xlu1 %737  ;;  %v521_v52 = vrot.slane %v169_v47, 1 }
  0xc1   :  { %611 = vrot.lane.b32.xlu0 %v365_v27, %s4737_s21  ;;  %785 = vst.msk [vmem:[#allocation3 + $0x8] sm:$0xff] %vm783_vm12, %v738_v56  ;;  %v5313_v27 = vsel %vm221_vm3, %v264_v20, %v265_v21  ;;  %v592_v56 = vrot.slane %v169_v47, 2 }
  0xc3   :  { %v736_v54 = vpop.permute.xlu0 %735  ;;  %617 = vrot.lane.b32.xlu1 %v5250_v55, %s4737_s21 }
  0xc4   :  { %784 = vst.msk [vmem:[#allocation3] sm:$0xff] %vm783_vm12, %v736_v54  ;;  %v742_v59 = vpop.permute.xlu1 %741  ;;  %v523_v54 = vsel %vm221_vm3, %v521_v52, %v522_v35  ;;  %v1141_v35 = vld [vmem:[#allocation4 + $0x98] sm:$0x3] }
  0xc5   :  { %615 = vrot.lane.b32.xlu0 %v5208_v34, %s4737_s21  ;;  %787 = vst.msk [vmem:[#allocation3 + $0x18] sm:$0xff] %vm783_vm12, %v742_v59  ;;  %v593_v59 = vrot.slane %v170_v51, 2  ;;  %v1140_v51 = vld [vmem:[#allocation4 + $0x90] sm:$0xff] }
  0xc7   :  { %v740_v58 = vpop.permute.xlu0 %739  ;;  %680 = vrot.lane.b32.xlu1 %v5012_v49, %s4738_s24  ;;  %v5374_v62 = vsel %vm335_vm4, %v592_v56, %v593_v59 }
  0xc8   :  { %786 = vst.msk [vmem:[#allocation3 + $0x10] sm:$0xff] %vm783_vm12, %v740_v58 }
  0xc9   :  { %678 = vrot.lane.b32.xlu0 %v5016_v50, %s4738_s24  ;;  %v809_v61 = vpop.permute.xlu1 %808  ;;  %v261_v50 = vrot.slane %v5069_v3, 1 }
  0xca   :  { %856 = vst.msk [vmem:[#allocation3 + $0x8] sm:$0xff] %vm854_vm13, %v809_v61 }
  0xcb   :  { %v807_v60 = vpop.permute.xlu0 %806  ;;  %684 = vrot.lane.b32.xlu1 %v5069_v3, %s4738_s24 }
  0xcc   :  { %855 = vst.msk [vmem:[#allocation3] sm:$0xff] %vm854_vm13, %v807_v60 }
  0xcd   :  { %682 = vrot.lane.b32.xlu0 %v5036_v57, %s4738_s24  ;;  %v813_v1 = vpop.permute.xlu1 %812  ;;  %v5278_v57 = vsel %vm221_vm3, %v261_v50, %v262_v0 }
  0xce   :  { %858 = vst.msk [vmem:[#allocation3 + $0x18] sm:$0xff] %vm854_vm13, %v813_v1 }
  0xcf   :  { %v811_v63 = vpop.permute.xlu0 %810  ;;  %753 = vrot.lane.b32.xlu1 %v5187_v18, %s4739_s14 }
  0xd0   :  { %857 = vst.msk [vmem:[#allocation3 + $0x10] sm:$0xff] %vm854_vm13, %v811_v63 }
  0xd1   :  { %751 = vrot.lane.b32.xlu0 %v5183_v14, %s4739_s14  ;;  %v281_v5 = vpop.permute.xlu1 %280  ;;  %v872_v6 = vld [vmem:[#allocation3 + $0x8] sm:$0xff] }
  0xd2   :  { %324 = vst.msk [vmem:[#allocation3 + $0x28] sm:$0xff] %vm318_vm6, %v281_v5 }
  0xd3   :  { %v279_v49 = vpop.permute.xlu0 %278  ;;  %v871_v4 = vld [vmem:[#allocation3] sm:$0xff]  ;;  %757 = vrot.lane.b32.xlu1 %v5278_v57, %s4739_s14 }
  0xd4   :  { %323 = vst.msk [vmem:[#allocation3 + $0x20] sm:$0xff] %vm318_vm6, %v279_v49  ;;  %v887_v7 = vpack.c.bf16 %v872_v6, %v871_v4  ;;  %v171_v49 = vld [vmem:[#allocation2 + $0x130] sm:$0xff]  ;;  %v172_v4 = vld [vmem:[#allocation2 + $0x138] sm:$0x3] }
  0xd5   :  { %755 = vrot.lane.b32.xlu0 %v5235_v48, %s4739_s14  ;;  %v285_v12 = vpop.permute.xlu1 %284  ;;  %v874_v13 = vld [vmem:[#allocation3 + $0x18] sm:$0xff]  ;;  %v732_v5 = vrot.slane %v171_v49, 1 }
  0xd6   :  { %4385 = vmatprep.mubr.msk.bf16.mxu0 %vm917_vm14, %v887_v7  ;;  %326 = vst.msk [vmem:[#allocation3 + $0x38] sm:$0xff] %vm318_vm6, %v285_v12  ;;  %v733_v7 = vrot.slane %v172_v4, 1 }
  0xd7   :  { %v283_v8 = vpop.permute.xlu0 %282  ;;  %v873_v9 = vld [vmem:[#allocation3 + $0x10] sm:$0xff]  ;;  %824 = vrot.lane.b32.xlu1 %v5208_v34, %s4741_s17 }
  0xd8   :  { %325 = vst.msk [vmem:[#allocation3 + $0x30] sm:$0xff] %vm318_vm6, %v283_v8  ;;  %v888_v14 = vpack.c.bf16 %v874_v13, %v873_v9  ;;  %v803_v13 = vrot.slane %v171_v49, 2 }
  0xd9   :  { %822 = vrot.lane.b32.xlu0 %v5205_v31, %s4741_s17  ;;  %v395_v18 = vpop.permute.xlu1 %394  ;;  %v378_v31 = vrot.slane %v5111_v24, 2 }
  0xda   :  { %4386 = vmatmul.mubr.msk.bf16.vlgmr.msra.gmra.mrb[0].mxu0 %vm917_vm14, %v888_v14  ;;  %438 = vst.msk [vmem:[#allocation3 + $0x28] sm:$0xff] %vm432_vm7, %v395_v18 }
  0xdb   :  { %v393_v15 = vpop.permute.xlu0 %392  ;;  %828 = vrot.lane.b32.xlu1 %v5296_v16, %s4741_s17  ;;  %v5333_v39 = vsel %vm335_vm4, %v378_v31, %v379_v33 }
  0xdc   :  { %437 = vst.msk [vmem:[#allocation3 + $0x20] sm:$0xff] %vm432_vm7, %v393_v15 }
  0xdd   :  { %826 = vrot.lane.b32.xlu0 %v5250_v55, %s4741_s17  ;;  %v399_v26 = vpop.permute.xlu1 %398 }
  0xde   :  { %440 = vst.msk [vmem:[#allocation3 + $0x38] sm:$0xff] %vm432_vm7, %v399_v26 }
  0xdf   :  { %v397_v45 = vpop.permute.xlu0 %396  ;;  %296 = vrot.lane.b32.xlu1 %v5278_v57, %s4733_s30 }
  0xe0   :  { %439 = vst.msk [vmem:[#allocation3 + $0x30] sm:$0xff] %vm432_vm7, %v397_v45 }
  0xe1   :  { %294 = vrot.lane.b32.xlu0 %v5235_v48, %s4733_s30  ;;  %v462_v30 = vpop.permute.xlu1 %461 }
  0xe2   :  { %505 = vst.msk [vmem:[#allocation3 + $0x28] sm:$0xff] %vm499_vm8, %v462_v30 }
  0xe3   :  { %v460_v28 = vpop.permute.xlu0 %459  ;;  %300 = vrot.lane.b32.xlu1 %v5316_v29, %s4733_s30 }
  0xe4   :  { %504 = vst.msk [vmem:[#allocation3 + $0x20] sm:$0xff] %vm499_vm8, %v460_v28  ;;  %v1123_v28 = vld [vmem:[#allocation4 + $0x8] sm:$0x3] }
  0xe5   :  { %298 = vrot.lane.b32.xlu0 %v5313_v27, %s4733_s30  ;;  %v466_v38 = vpop.permute.xlu1 %465  ;;  %v1211_v31 = vrot.slane %v1123_v28, 1  ;;  %s4743_s30 = smov 64  }
  0xe6   :  { %507 = vst.msk [vmem:[#allocation3 + $0x38] sm:$0xff] %vm499_vm8, %v466_v38 }
  0xe7   :  { %v464_v34 = vpop.permute.xlu0 %463  ;;  %410 = vrot.lane.b32.xlu1 %v5296_v16, %s4734_s0 }
  0xe8   :  { %506 = vst.msk [vmem:[#allocation3 + $0x30] sm:$0xff] %vm499_vm8, %v464_v34 }
  0xe9   :  { %408 = vrot.lane.b32.xlu0 %v5250_v55, %s4734_s0  ;;  %v535_v43 = vpop.permute.xlu1 %534 }
  0xea   :  { %578 = vst.msk [vmem:[#allocation3 + $0x28] sm:$0xff] %vm572_vm9, %v535_v43 }
  0xeb   :  { %v533_v32 = vpop.permute.xlu0 %532  ;;  %414 = vrot.lane.b32.xlu1 %v5336_v42, %s4734_s0 }
  0xec   :  { %577 = vst.msk [vmem:[#allocation3 + $0x20] sm:$0xff] %vm572_vm9, %v533_v32  ;;  %v1324_v32 = vrot.slane %v1123_v28, 2 }
  0xed   :  { %412 = vrot.lane.b32.xlu0 %v5333_v39, %s4734_s0  ;;  %v539_v44 = vpop.permute.xlu1 %538  ;;  %s4744_s0 = smov 96  }
  0xee   :  { %580 = vst.msk [vmem:[#allocation3 + $0x38] sm:$0xff] %vm572_vm9, %v539_v44  ;;  %v1143_v44 = vld [vmem:[#allocation4 + $0xa8] sm:$0x3] }
  0xef   :  { %v537_v41 = vpop.permute.xlu0 %536  ;;  %477 = vrot.lane.b32.xlu1 %v5111_v24, %s4735_s19  ;;  %v1348_v56 = vrot.slane %v1143_v44, 2 }
  0xf0   :  { %579 = vst.msk [vmem:[#allocation3 + $0x30] sm:$0xff] %vm572_vm9, %v537_v41  ;;  %v1142_v41 = vld [vmem:[#allocation4 + $0xa0] sm:$0xff] }
  0xf1   :  { %475 = vrot.lane.b32.xlu0 %v5069_v3, %s4735_s19  ;;  %v606_v48 = vpop.permute.xlu1 %605  ;;  %1170 = vst.msk [vmem:[#allocation5 + $0xc0] sm:$0xff] %vm1061_vm15, %v1142_v41 }
  0xf2   :  { %649 = vst.msk [vmem:[#allocation3 + $0x28] sm:$0xff] %vm643_vm10, %v606_v48  ;;  %v1235_v48 = vrot.slane %v1143_v44, 1 }
  0xf3   :  { %v604_v46 = vpop.permute.xlu0 %603  ;;  %481 = vrot.lane.b32.xlu1 %v169_v47, %s4735_s19 }
  0xf4   :  { %648 = vst.msk [vmem:[#allocation3 + $0x20] sm:$0xff] %vm643_vm10, %v604_v46 }
  0xf5   :  { %479 = vrot.lane.b32.xlu0 %v5109_v23, %s4735_s19  ;;  %v610_v3 = vpop.permute.xlu1 %609 }
  0xf6   :  { %651 = vst.msk [vmem:[#allocation3 + $0x38] sm:$0xff] %vm643_vm10, %v610_v3 }
  0xf7   :  { %v608_v40 = vpop.permute.xlu0 %607  ;;  %550 = vrot.lane.b32.xlu1 %v5313_v27, %s4736_s20 }
  0xf8   :  { %650 = vst.msk [vmem:[#allocation3 + $0x30] sm:$0xff] %vm643_vm10, %v608_v40 }
  0xf9   :  { %548 = vrot.lane.b32.xlu0 %v5278_v57, %s4736_s20  ;;  %v673_v55 = vpop.permute.xlu1 %672 }
  0xfa   :  { %716 = vst.msk [vmem:[#allocation3 + $0x28] sm:$0xff] %vm710_vm11, %v673_v55  ;;  %v1347_v55 = vrot.slane %v1142_v41, 2 }
  0xfb   :  { %v671_v53 = vpop.permute.xlu0 %670  ;;  %554 = vrot.lane.b32.xlu1 %v523_v54, %s4736_s20 }
  0xfc   :  { %715 = vst.msk [vmem:[#allocation3 + $0x20] sm:$0xff] %vm710_vm11, %v671_v53  ;;  %v1681_v53 = vrot.slane %v1140_v51, 1 }
  0xfd   :  { %552 = vrot.lane.b32.xlu0 %v5316_v29, %s4736_s20  ;;  %v677_v60 = vpop.permute.xlu1 %676 }
  0xfe   :  { %718 = vst.msk [vmem:[#allocation3 + $0x38] sm:$0xff] %vm710_vm11, %v677_v60  ;;  %v1752_v60 = vrot.slane %v1141_v35, 2 }
  0xff   :  { %v675_v58 = vpop.permute.xlu0 %674  ;;  %621 = vrot.lane.b32.xlu1 %v5333_v39, %s4737_s21 }
 0x100   :  { %717 = vst.msk [vmem:[#allocation3 + $0x30] sm:$0xff] %vm710_vm11, %v675_v58  ;;  %v1751_v58 = vrot.slane %v1140_v51, 2 }
 0x101   :  { %619 = vrot.lane.b32.xlu0 %v5296_v16, %s4737_s21  ;;  %v746_v63 = vpop.permute.xlu1 %745  ;;  %v804_v16 = vrot.slane %v172_v4, 2 }
 0x102   :  { %789 = vst.msk [vmem:[#allocation3 + $0x28] sm:$0xff] %vm783_vm12, %v746_v63 }
 0x103   :  { %v744_v61 = vpop.permute.xlu0 %743  ;;  %625 = vrot.lane.b32.xlu1 %v5374_v62, %s4737_s21  ;;  %v805_v21 = vsel %vm335_vm4, %v803_v13, %v804_v16 }
 0x104   :  { %788 = vst.msk [vmem:[#allocation3 + $0x20] sm:$0xff] %vm783_vm12, %v744_v61  ;;  %v1349_v61 = vsel %vm335_vm4, %v1347_v55, %v1348_v56 }
 0x105   :  { %623 = vrot.lane.b32.xlu0 %v5336_v42, %s4737_s21  ;;  %v750_v0 = vpop.permute.xlu1 %749 }
 0x106   :  { %791 = vst.msk [vmem:[#allocation3 + $0x38] sm:$0xff] %vm783_vm12, %v750_v0 }
 0x107   :  { %v748_v50 = vpop.permute.xlu0 %747  ;;  %688 = vrot.lane.b32.xlu1 %v5109_v23, %s4738_s24 }
 0x108   :  { %790 = vst.msk [vmem:[#allocation3 + $0x30] sm:$0xff] %vm783_vm12, %v748_v50  ;;  %v1753_v50 = vsel %vm335_vm4, %v1751_v58, %v1752_v60 }
 0x109   :  { %686 = vrot.lane.b32.xlu0 %v5111_v24, %s4738_s24  ;;  %v817_v57 = vpop.permute.xlu1 %816  ;;  %v734_v24 = vsel %vm221_vm3, %v732_v5, %v733_v7  ;;  %1780 = vst.msk [vmem:[#allocation5 + $0xb8] sm:$0xff] %vm1061_vm15, %v1753_v50  ;;  %v5583_v50 = vld [vmem:[%s7001_s2] ss:$0 sm:$0xff] }
 0x10a   :  { %860 = vst.msk [vmem:[#allocation3 + $0x28] sm:$0xff] %vm854_vm13, %v817_v57 }
 0x10b   :  { %v815_v1 = vpop.permute.xlu0 %814  ;;  %692 = vrot.lane.b32.xlu1 %v171_v49, %s4738_s24 }
 0x10c   :  { %859 = vst.msk [vmem:[#allocation3 + $0x20] sm:$0xff] %vm854_vm13, %v815_v1 }
 0x10d   :  { %690 = vrot.lane.b32.xlu0 %v169_v47, %s4738_s24  ;;  %v821_v8 = vpop.permute.xlu1 %820  ;;  %v1234_v47 = vrot.slane %v1142_v41, 1 }
 0x10e   :  { %862 = vst.msk [vmem:[#allocation3 + $0x38] sm:$0xff] %vm854_vm13, %v821_v8 }
 0x10f   :  { %v819_v6 = vpop.permute.xlu0 %818  ;;  %761 = vrot.lane.b32.xlu1 %v5316_v29, %s4739_s14  ;;  %v1236_v52 = vsel %vm221_vm3, %v1234_v47, %v1235_v48 }
 0x110   :  { %861 = vst.msk [vmem:[#allocation3 + $0x30] sm:$0xff] %vm854_vm13, %v819_v6 }
 0x111   :  { %759 = vrot.lane.b32.xlu0 %v5313_v27, %s4739_s14  ;;  %v289_v10 = vpop.permute.xlu1 %288  ;;  %v876_v11 = vld [vmem:[#allocation3 + $0x28] sm:$0xff]  ;;  %v1122_v27 = vld [vmem:[#allocation4] sm:$0xff] }
 0x112   :  { %328 = vst.msk [vmem:[#allocation3 + $0x48] sm:$0xff] %vm318_vm6, %v289_v10  ;;  %v1210_v30 = vrot.slane %v1122_v27, 1 }
 0x113   :  { %v287_v23 = vpop.permute.xlu0 %286  ;;  %v875_v9 = vld [vmem:[#allocation3 + $0x20] sm:$0xff]  ;;  %765 = vrot.lane.b32.xlu1 %v734_v24, %s4739_s14  ;;  %1162 = vst.msk [vmem:[#allocation5] sm:$0xff] %vm1061_vm15, %v1122_v27 }
 0x114   :  { %327 = vst.msk [vmem:[#allocation3 + $0x40] sm:$0xff] %vm318_vm6, %v287_v23  ;;  %v889_v12 = vpack.c.bf16 %v876_v11, %v875_v9  ;;  %v1212_v33 = vsel %vm221_vm3, %v1210_v30, %v1211_v31 }
 0x115   :  { %763 = vrot.lane.b32.xlu0 %v523_v54, %s4739_s14  ;;  %v293_v17 = vpop.permute.xlu1 %292  ;;  %v878_v18 = vld [vmem:[#allocation3 + $0x38] sm:$0xff]  ;;  %v1682_v54 = vrot.slane %v1141_v35, 1 }
 0x116   :  { %4389 = vmatprep.mubr.msk.bf16.mxu0 %vm917_vm14, %v889_v12  ;;  %330 = vst.msk [vmem:[#allocation3 + $0x58] sm:$0xff] %vm318_vm6, %v293_v17 }
 0x117   :  { %v291_v14 = vpop.permute.xlu0 %290  ;;  %v877_v15 = vld [vmem:[#allocation3 + $0x30] sm:$0xff]  ;;  %832 = vrot.lane.b32.xlu1 %v5336_v42, %s4741_s17  ;;  %v1683_v59 = vsel %vm221_vm3, %v1681_v53, %v1682_v54 }
 0x118   :  { %329 = vst.msk [vmem:[#allocation3 + $0x50] sm:$0xff] %vm318_vm6, %v291_v14  ;;  %v890_v19 = vpack.c.bf16 %v878_v18, %v877_v15 }
 0x119   :  { %830 = vrot.lane.b32.xlu0 %v5333_v39, %s4741_s17  ;;  %v403_v45 = vpop.permute.xlu1 %402  ;;  %v1323_v39 = vrot.slane %v1122_v27, 2 }
 0x11a   :  { %4390 = vmatmul.mubr.msk.bf16.gmra.mrb[4].mxu0 %vm917_vm14, %v890_v19  ;;  %442 = vst.msk [vmem:[#allocation3 + $0x48] sm:$0xff] %vm432_vm7, %v403_v45 }
 0x11b   :  { %v401_v20 = vpop.permute.xlu0 %400  ;;  %836 = vrot.lane.b32.xlu1 %v805_v21, %s4741_s17  ;;  %v1325_v42 = vsel %vm335_vm4, %v1323_v39, %v1324_v32 }
 0x11c   :  { %441 = vst.msk [vmem:[#allocation3 + $0x40] sm:$0xff] %vm432_vm7, %v401_v20 }
 0x11d   :  { %834 = vrot.lane.b32.xlu0 %v5374_v62, %s4741_s17  ;;  %v407_v25 = vpop.permute.xlu1 %406 }
 0x11e   :  { %444 = vst.msk [vmem:[#allocation3 + $0x58] sm:$0xff] %vm432_vm7, %v407_v25 }
 0x11f   :  { %v405_v22 = vpop.permute.xlu0 %404  ;;  %1629 = vrot.lane.b32.xlu1 %v1140_v51, %s4743_s30 }
 0x120   :  { %443 = vst.msk [vmem:[#allocation3 + $0x50] sm:$0xff] %vm432_vm7, %v405_v22 }
 0x121   :  { %v470_v29 = vpop.permute.xlu1 %469  ;;  %1258 = vrot.lane.b32.xlu0 %v1212_v33, %s4742_s25 }
 0x122   :  { %509 = vst.msk [vmem:[#allocation3 + $0x48] sm:$0xff] %vm499_vm8, %v470_v29 }
 0x123   :  { %v468_v26 = vpop.permute.xlu0 %467  ;;  %1701 = vrot.lane.b32.xlu1 %v1683_v59, %s4744_s0 }
 0x124   :  { %508 = vst.msk [vmem:[#allocation3 + $0x40] sm:$0xff] %vm499_vm8, %v468_v26 }
 0x125   :  { %v474_v36 = vpop.permute.xlu1 %473  ;;  %1371 = vrot.lane.b32.xlu0 %v1325_v42, %s4743_s30 }
 0x126   :  { %511 = vst.msk [vmem:[#allocation3 + $0x58] sm:$0xff] %vm499_vm8, %v474_v36 }
 0x127   :  { %v472_v34 = vpop.permute.xlu0 %471 }
 0x128   :  { %510 = vst.msk [vmem:[#allocation3 + $0x50] sm:$0xff] %vm499_vm8, %v472_v34 }
 0x129   :  { %v543_v38 = vpop.permute.xlu1 %542  ;;  %1274 = vrot.lane.b32.xlu0 %v1236_v52, %s4742_s25 }
 0x12a   :  { %582 = vst.msk [vmem:[#allocation3 + $0x48] sm:$0xff] %vm572_vm9, %v543_v38 }
 0x12b   :  { %v541_v37 = vpop.permute.xlu0 %540 }
 0x12c   :  { %581 = vst.msk [vmem:[#allocation3 + $0x40] sm:$0xff] %vm572_vm9, %v541_v37 }
 0x12d   :  { %v547_v46 = vpop.permute.xlu1 %546  ;;  %1387 = vrot.lane.b32.xlu0 %v1349_v61, %s4743_s30 }
 0x12e   :  { %584 = vst.msk [vmem:[#allocation3 + $0x58] sm:$0xff] %vm572_vm9, %v547_v46  ;;  %v4652_v46 = vld [vmem:[%s7002_s3 + $0x88] sm:$0xff]  }
 0x12f   :  { %v545_v43 = vpop.permute.xlu0 %544 }
 0x130   :  { %583 = vst.msk [vmem:[#allocation3 + $0x50] sm:$0xff] %vm572_vm9, %v545_v43  ;;  %v4651_v43 = vld [vmem:[%s7002_s3 + $0x80] sm:$0xff]  }
 0x131   :  { %v614_v3 = vpop.permute.xlu1 %613  ;;  %4401 = vmatprep.subr.bf16.mxu0 %v4651_v43 }
 0x132   :  { %653 = vst.msk [vmem:[#allocation3 + $0x48] sm:$0xff] %vm643_vm10, %v614_v3  ;;  %4402 = vmatpush3.bf16.msra.mxu0 %v4651_v43 }
 0x133   :  { %v612_v40 = vpop.permute.xlu0 %611  ;;  %4403 = vmatprep.subr.bf16.mxu0 %v4652_v46 }
 0x134   :  { %652 = vst.msk [vmem:[#allocation3 + $0x40] sm:$0xff] %vm643_vm10, %v612_v40 }
 0x135   :  { %v618_v63 = vpop.permute.xlu1 %617 }
 0x136   :  { %655 = vst.msk [vmem:[#allocation3 + $0x58] sm:$0xff] %vm643_vm10, %v618_v63  ;;  %4404 = vmatpush3.bf16.msra.mxu0 %v4652_v46  ;;  %v4656_v46 = vld [vmem:[%s7002_s3 + $0x8] sm:$0xff]  }
 0x137   :  { %v616_v62 = vpop.permute.xlu0 %615 }
 0x138   :  { %654 = vst.msk [vmem:[#allocation3 + $0x50] sm:$0xff] %vm643_vm10, %v616_v62 }
 0x139   :  { %v681_v1 = vpop.permute.xlu1 %680 }
 0x13a   :  { %720 = vst.msk [vmem:[#allocation3 + $0x48] sm:$0xff] %vm710_vm11, %v681_v1 }
 0x13b   :  { %v679_v0 = vpop.permute.xlu0 %678 }
 0x13c   :  { %719 = vst.msk [vmem:[#allocation3 + $0x40] sm:$0xff] %vm710_vm11, %v679_v0 }
 0x13d   :  { %v685_v57 = vpop.permute.xlu1 %684 }
 0x13e   :  { %722 = vst.msk [vmem:[#allocation3 + $0x58] sm:$0xff] %vm710_vm11, %v685_v57 }
 0x13f   :  { %v683_v49 = vpop.permute.xlu0 %682 }
 0x140   :  { %721 = vst.msk [vmem:[#allocation3 + $0x50] sm:$0xff] %vm710_vm11, %v683_v49 }
 0x141   :  { %v754_v5 = vpop.permute.xlu1 %753 }
 0x142   :  { %793 = vst.msk [vmem:[#allocation3 + $0x48] sm:$0xff] %vm783_vm12, %v754_v5 }
 0x143   :  { %v752_v4 = vpop.permute.xlu0 %751 }
 0x144   :  { %792 = vst.msk [vmem:[#allocation3 + $0x40] sm:$0xff] %vm783_vm12, %v752_v4 }
 0x145   :  { %v758_v7 = vpop.permute.xlu1 %757 }
 0x146   :  { %795 = vst.msk [vmem:[#allocation3 + $0x58] sm:$0xff] %vm783_vm12, %v758_v7 }
 0x147   :  { %v756_v6 = vpop.permute.xlu0 %755 }
 0x148   :  { %794 = vst.msk [vmem:[#allocation3 + $0x50] sm:$0xff] %vm783_vm12, %v756_v6 }
 0x149   :  { %v825_v23 = vpop.permute.xlu1 %824 }
 0x14a   :  { %864 = vst.msk [vmem:[#allocation3 + $0x48] sm:$0xff] %vm854_vm13, %v825_v23 }
 0x14b   :  { %v823_v8 = vpop.permute.xlu0 %822 }
 0x14c   :  { %863 = vst.msk [vmem:[#allocation3 + $0x40] sm:$0xff] %vm854_vm13, %v823_v8 }
 0x14d   :  { %v829_v9 = vpop.permute.xlu1 %828 }
 0x14e   :  { %866 = vst.msk [vmem:[#allocation3 + $0x58] sm:$0xff] %vm854_vm13, %v829_v9 }
 0x14f   :  { %v827_v24 = vpop.permute.xlu0 %826 }
 0x150   :  { %865 = vst.msk [vmem:[#allocation3 + $0x50] sm:$0xff] %vm854_vm13, %v827_v24 }
 0x151   :  { %v297_v12 = vpop.permute.xlu1 %296  ;;  %v880_v13 = vld [vmem:[#allocation3 + $0x48] sm:$0xff] }
 0x152   :  { %332 = vst.msk [vmem:[#allocation3 + $0x68] sm:$0xff] %vm318_vm6, %v297_v12 }
 0x153   :  { %v295_v10 = vpop.permute.xlu0 %294  ;;  %v879_v11 = vld [vmem:[#allocation3 + $0x40] sm:$0xff] }
 0x154   :  { %331 = vst.msk [vmem:[#allocation3 + $0x60] sm:$0xff] %vm318_vm6, %v295_v10  ;;  %v891_v14 = vpack.c.bf16 %v880_v13, %v879_v11 }
 0x155   :  { %v301_v17 = vpop.permute.xlu1 %300  ;;  %v882_v18 = vld [vmem:[#allocation3 + $0x58] sm:$0xff] }
 0x156   :  { %4393 = vmatprep.mubr.msk.bf16.mxu0 %vm917_vm14, %v891_v14  ;;  %334 = vst.msk [vmem:[#allocation3 + $0x78] sm:$0xff] %vm318_vm6, %v301_v17 }
 0x157   :  { %v299_v15 = vpop.permute.xlu0 %298  ;;  %v881_v16 = vld [vmem:[#allocation3 + $0x50] sm:$0xff] }
 0x158   :  { %333 = vst.msk [vmem:[#allocation3 + $0x70] sm:$0xff] %vm318_vm6, %v299_v15  ;;  %v892_v19 = vpack.c.bf16 %v882_v18, %v881_v16  ;;  %vm1486_vm6 = vcmask 1048320  }
 0x159   :  { %v411_v21 = vpop.permute.xlu1 %410 }
 0x15a   :  { %4394 = vmatmul.mubr.msk.bf16.gmra.mrb[8].mxu0 %vm917_vm14, %v892_v19  ;;  %446 = vst.msk [vmem:[#allocation3 + $0x68] sm:$0xff] %vm432_vm7, %v411_v21 }
 0x15b   :  { %v409_v20 = vpop.permute.xlu0 %408 }
 0x15c   :  { %445 = vst.msk [vmem:[#allocation3 + $0x60] sm:$0xff] %vm432_vm7, %v409_v20 }
 0x15d   :  { %v415_v22 = vpop.permute.xlu1 %414 }
 0x15e   :  { %448 = vst.msk [vmem:[#allocation3 + $0x78] sm:$0xff] %vm432_vm7, %v415_v22 }
 0x15f   :  { %v413_v45 = vpop.permute.xlu0 %412 }
 0x160   :  { %447 = vst.msk [vmem:[#allocation3 + $0x70] sm:$0xff] %vm432_vm7, %v413_v45  ;;  %vm2246_vm7 = vcmask 523264  }
 0x161   :  { %v478_v26 = vpop.permute.xlu1 %477  ;;  %2247 = vst.msk [vmem:[#allocation6] sm:$0xff] %vm2246_vm7, %v4732_v2  ;;  %2250 = vst.msk [vmem:[#allocation6 + $0xa0] sm:$0xff] %vm2246_vm7, %v4732_v2 }
 0x162   :  { %513 = vst.msk [vmem:[#allocation3 + $0x68] sm:$0xff] %vm499_vm8, %v478_v26 }
 0x163   :  { %v476_v25 = vpop.permute.xlu0 %475  ;;  %2253 = vst.msk [vmem:[#allocation6 + $0x90] sm:$0xff] %vm2246_vm7, %v4732_v2  ;;  %2255 = vst.msk [vmem:[#allocation6 + $0x130] sm:$0xff] %vm2246_vm7, %v4732_v2 }
 0x164   :  { %512 = vst.msk [vmem:[#allocation3 + $0x60] sm:$0xff] %vm499_vm8, %v476_v25 }
 0x165   :  { %v482_v28 = vpop.permute.xlu1 %481 }
 0x166   :  { %515 = vst.msk [vmem:[#allocation3 + $0x78] sm:$0xff] %vm499_vm8, %v482_v28 }
 0x167   :  { %v480_v27 = vpop.permute.xlu0 %479 }
 0x168   :  { %514 = vst.msk [vmem:[#allocation3 + $0x70] sm:$0xff] %vm499_vm8, %v480_v27  ;;  %vm2258_vm8 = vcmask 516096  }
 0x169   :  { %v551_v30 = vpop.permute.xlu1 %550  ;;  %2259 = vst.msk [vmem:[#allocation6 + $0x10] sm:$0x1] %vm2258_vm8, %v4732_v2  ;;  %2260 = vst.msk [vmem:[#allocation6 + $0x20] sm:$0x1] %vm2258_vm8, %v4732_v2 }
 0x16a   :  { %586 = vst.msk [vmem:[#allocation3 + $0x68] sm:$0xff] %vm572_vm9, %v551_v30 }
 0x16b   :  { %v549_v29 = vpop.permute.xlu0 %548  ;;  %2261 = vst.msk [vmem:[#allocation6 + $0x30] sm:$0x1] %vm2258_vm8, %v4732_v2  ;;  %2262 = vst.msk [vmem:[#allocation6 + $0x40] sm:$0x1] %vm2258_vm8, %v4732_v2 }
 0x16c   :  { %585 = vst.msk [vmem:[#allocation3 + $0x60] sm:$0xff] %vm572_vm9, %v549_v29 }
 0x16d   :  { %v555_v33 = vpop.permute.xlu1 %554  ;;  %2263 = vst.msk [vmem:[#allocation6 + $0x50] sm:$0x1] %vm2258_vm8, %v4732_v2  ;;  %2264 = vst.msk [vmem:[#allocation6 + $0x60] sm:$0x1] %vm2258_vm8, %v4732_v2 }
 0x16e   :  { %588 = vst.msk [vmem:[#allocation3 + $0x78] sm:$0xff] %vm572_vm9, %v555_v33 }
 0x16f   :  { %v553_v31 = vpop.permute.xlu0 %552  ;;  %2265 = vst.msk [vmem:[#allocation6 + $0x70] sm:$0x1] %vm2258_vm8, %v4732_v2  ;;  %2266 = vst.msk [vmem:[#allocation6 + $0x80] sm:$0x1] %vm2258_vm8, %v4732_v2 }
 0x170   :  { %587 = vst.msk [vmem:[#allocation3 + $0x70] sm:$0xff] %vm572_vm9, %v553_v31  ;;  %vm2248_vm9 = vcmask 517120  }
 0x171   :  { %v622_v36 = vpop.permute.xlu1 %621  ;;  %2267 = vst.msk [vmem:[#allocation6 + $0xb0] sm:$0x1] %vm2258_vm8, %v4732_v2  ;;  %2268 = vst.msk [vmem:[#allocation6 + $0xc0] sm:$0x1] %vm2258_vm8, %v4732_v2 }
 0x172   :  { %657 = vst.msk [vmem:[#allocation3 + $0x68] sm:$0xff] %vm643_vm10, %v622_v36 }
 0x173   :  { %v620_v34 = vpop.permute.xlu0 %619  ;;  %2269 = vst.msk [vmem:[#allocation6 + $0xd0] sm:$0x1] %vm2258_vm8, %v4732_v2  ;;  %2270 = vst.msk [vmem:[#allocation6 + $0xe0] sm:$0x1] %vm2258_vm8, %v4732_v2 }
 0x174   :  { %656 = vst.msk [vmem:[#allocation3 + $0x60] sm:$0xff] %vm643_vm10, %v620_v34 }
 0x175   :  { %v626_v38 = vpop.permute.xlu1 %625  ;;  %2271 = vst.msk [vmem:[#allocation6 + $0xf0] sm:$0x1] %vm2258_vm8, %v4732_v2  ;;  %2272 = vst.msk [vmem:[#allocation6 + $0x100] sm:$0x1] %vm2258_vm8, %v4732_v2 }
 0x176   :  { %659 = vst.msk [vmem:[#allocation3 + $0x78] sm:$0xff] %vm643_vm10, %v626_v38 }
 0x177   :  { %v624_v37 = vpop.permute.xlu0 %623  ;;  %2273 = vst.msk [vmem:[#allocation6 + $0x110] sm:$0x1] %vm2258_vm8, %v4732_v2  ;;  %2274 = vst.msk [vmem:[#allocation6 + $0x120] sm:$0x1] %vm2258_vm8, %v4732_v2 }
 0x178   :  { %658 = vst.msk [vmem:[#allocation3 + $0x70] sm:$0xff] %vm643_vm10, %v624_v37  ;;  %vm2491_vm10 = vcmask 1048064  }
 0x179   :  { %v689_v32 = vpop.permute.xlu1 %688  ;;  %2275 = vst.msk [vmem:[#allocation6 + $0x19] sm:$0x1] %vm2258_vm8, %v4732_v2  ;;  %2276 = vst.msk [vmem:[#allocation6 + $0x29] sm:$0x1] %vm2258_vm8, %v4732_v2 }
 0x17a   :  { %724 = vst.msk [vmem:[#allocation3 + $0x68] sm:$0xff] %vm710_vm11, %v689_v32  ;;  %v4654_v32 = vld [vmem:[%s7002_s3] sm:$0xff]  }
 0x17b   :  { %v687_v39 = vpop.permute.xlu0 %686  ;;  %2277 = vst.msk [vmem:[#allocation6 + $0x39] sm:$0x1] %vm2258_vm8, %v4732_v2  ;;  %2278 = vst.msk [vmem:[#allocation6 + $0x49] sm:$0x1] %vm2258_vm8, %v4732_v2 }
 0x17c   :  { %723 = vst.msk [vmem:[#allocation3 + $0x60] sm:$0xff] %vm710_vm11, %v687_v39  ;;  %v4653_v39 = vld [vmem:[%s7002_s3 + $0x40] sm:$0xff]  }
 0x17d   :  { %v693_v41 = vpop.permute.xlu1 %692  ;;  %4124 = vmatprep.subr.bf16.mxu1 %v4653_v39  ;;  %2279 = vst.msk [vmem:[#allocation6 + $0x59] sm:$0x1] %vm2258_vm8, %v4732_v2  ;;  %2280 = vst.msk [vmem:[#allocation6 + $0x69] sm:$0x1] %vm2258_vm8, %v4732_v2 }
 0x17e   :  { %726 = vst.msk [vmem:[#allocation3 + $0x78] sm:$0xff] %vm710_vm11, %v693_v41  ;;  %4125 = vmatpush3.bf16.msra.mxu1 %v4654_v32 }
 0x17f   :  { %v691_v42 = vpop.permute.xlu0 %690  ;;  %2281 = vst.msk [vmem:[#allocation6 + $0x79] sm:$0x1] %vm2258_vm8, %v4732_v2  ;;  %2282 = vst.msk [vmem:[#allocation6 + $0x89] sm:$0x1] %vm2258_vm8, %v4732_v2 }
 0x180   :  { %725 = vst.msk [vmem:[#allocation3 + $0x70] sm:$0xff] %vm710_vm11, %v691_v42  ;;  %vm3692_vm11 = vcmask 1044996  }
 0x181   :  { %v762_v47 = vpop.permute.xlu1 %761  ;;  %2283 = vst.msk [vmem:[#allocation6 + $0xb9] sm:$0x1] %vm2258_vm8, %v4732_v2  ;;  %2284 = vst.msk [vmem:[#allocation6 + $0xc9] sm:$0x1] %vm2258_vm8, %v4732_v2 }
 0x182   :  { %797 = vst.msk [vmem:[#allocation3 + $0x68] sm:$0xff] %vm783_vm12, %v762_v47  ;;  %v4657_v47 = vld [vmem:[%s7002_s3 + $0x50] sm:$0xff]  }
 0x183   :  { %v760_v44 = vpop.permute.xlu0 %759  ;;  %2285 = vst.msk [vmem:[#allocation6 + $0xd9] sm:$0x1] %vm2258_vm8, %v4732_v2  ;;  %2286 = vst.msk [vmem:[#allocation6 + $0xe9] sm:$0x1] %vm2258_vm8, %v4732_v2 }
 0x184   :  { %796 = vst.msk [vmem:[#allocation3 + $0x60] sm:$0xff] %vm783_vm12, %v760_v44  ;;  %v4655_v44 = vld [vmem:[%s7002_s3 + $0x48] sm:$0xff]  }
 0x185   :  { %v766_v51 = vpop.permute.xlu1 %765  ;;  %4126 = vmatprep.subr.bf16.mxu1 %v4655_v44  ;;  %v5720_v44 = vld [vmem:[#allocation4 + $0x138] sm:$0x3]  ;;  %2287 = vst.msk [vmem:[#allocation6 + $0xf9] sm:$0x1] %vm2258_vm8, %v4732_v2  ;;  %2288 = vst.msk [vmem:[#allocation6 + $0x109] sm:$0x1] %vm2258_vm8, %v4732_v2 }
 0x186   :  { %799 = vst.msk [vmem:[#allocation3 + $0x78] sm:$0xff] %vm783_vm12, %v766_v51  ;;  %4127 = vmatpush3.bf16.msra.mxu1 %v4656_v46 }
 0x187   :  { %v764_v48 = vpop.permute.xlu0 %763  ;;  %4128 = vmatprep.subr.bf16.mxu1 %v4657_v47  ;;  %2289 = vst.msk [vmem:[#allocation6 + $0x119] sm:$0x1] %vm2258_vm8, %v4732_v2  ;;  %2290 = vst.msk [vmem:[#allocation6 + $0x129] sm:$0x1] %vm2258_vm8, %v4732_v2 }
 0x188   :  { %798 = vst.msk [vmem:[#allocation3 + $0x70] sm:$0xff] %vm783_vm12, %v764_v48  ;;  %vm3682_vm12 = vcmask 1040896  }
 0x189   :  { %v833_v40 = vpop.permute.xlu1 %832  ;;  %2249 = vst.msk [vmem:[#allocation6 + $0x8] sm:$0x3] %vm2248_vm9, %v4732_v2  ;;  %2251 = vst.msk [vmem:[#allocation6 + $0xa8] sm:$0x3] %vm2248_vm9, %v4732_v2 }
 0x18a   :  { %868 = vst.msk [vmem:[#allocation3 + $0x68] sm:$0xff] %vm854_vm13, %v833_v40 }
 0x18b   :  { %v831_v52 = vpop.permute.xlu0 %830  ;;  %2254 = vst.msk [vmem:[#allocation6 + $0x98] sm:$0x3] %vm2248_vm9, %v4732_v2  ;;  %2256 = vst.msk [vmem:[#allocation6 + $0x138] sm:$0x3] %vm2248_vm9, %v4732_v2 }
 0x18c   :  { %867 = vst.msk [vmem:[#allocation3 + $0x60] sm:$0xff] %vm854_vm13, %v831_v52  ;;  %v4658_v52 = vld [vmem:[%s7002_s3 + $0x10] sm:$0xff]  }
 0x18d   :  { %v837_v3 = vpop.permute.xlu1 %836  ;;  %4129 = vmatpush3.bf16.msra.mxu1 %v4658_v52 }
 0x18e   :  { %870 = vst.msk [vmem:[#allocation3 + $0x78] sm:$0xff] %vm854_vm13, %v837_v3 }
 0x18f   :  { %v835_v35 = vpop.permute.xlu0 %834 }
 0x190   :  { %869 = vst.msk [vmem:[#allocation3 + $0x70] sm:$0xff] %vm854_vm13, %v835_v35 }
 0x191   :  { %v884_v54 = vld [vmem:[#allocation3 + $0x68] sm:$0xff] }
 0x193   :  { %v883_v53 = vld [vmem:[#allocation3 + $0x60] sm:$0xff]  ;;  %v1259_v60 = vpop.permute.xlu0 %1258 }
 0x194   :  { %v893_v55 = vpack.c.bf16 %v884_v54, %v883_v53  ;;  %1307 = vst.msk [vmem:[#allocation5] sm:$0xff] %vm1306_vm2, %v1259_v60  ;;  %v4659_v53 = vld [vmem:[%s7002_s3 + $0x58] sm:$0xff]   ;;  %v4664_v60 = vld [vmem:[%s7002_s3 + $0x28] sm:$0xff]  }
 0x195   :  { %v886_v58 = vld [vmem:[#allocation3 + $0x78] sm:$0xff]  ;;  %4130 = vmatprep.subr.bf16.mxu1 %v4659_v53 }
 0x196   :  { %4397 = vmatprep.mubr.msk.bf16.mxu0 %vm917_vm14, %v893_v55  ;;  %v4660_v54 = vld [vmem:[%s7002_s3 + $0x18] sm:$0xff]  }
 0x197   :  { %v885_v56 = vld [vmem:[#allocation3 + $0x70] sm:$0xff]  ;;  %v1372_v61 = vpop.permute.xlu0 %1371  ;;  %4131 = vmatpush3.bf16.msra.mxu1 %v4660_v54 }
 0x198   :  { %v894_v59 = vpack.c.bf16 %v886_v58, %v885_v56  ;;  %1420 = vst.msk [vmem:[#allocation5] sm:$0xff] %vm1419_vm5, %v1372_v61  ;;  %v4661_v56 = vld [vmem:[%s7002_s3 + $0x60] sm:$0xff]   ;;  %v4665_v61 = vld [vmem:[%s7002_s3 + $0x70] sm:$0xff]  }
 0x199   :  { %v4662_v58 = vld [vmem:[%s7002_s3 + $0x20] sm:$0xff]   ;;  %4132 = vmatprep.subr.bf16.mxu1 %v4661_v56 }
 0x19a   :  { %4398 = vmatmul.mubr.msk.bf16.gmra.mrb[12].mxu0 %vm917_vm14, %v894_v59  ;;  %v4663_v59 = vld [vmem:[%s7002_s3 + $0x68] sm:$0xff]  }
 0x19b   :  { %v1275_v62 = vpop.permute.xlu0 %1274  ;;  %4133 = vmatpush3.bf16.msra.mxu1 %v4662_v58 }
 0x19c   :  { %1315 = vst.msk [vmem:[#allocation5 + $0xc0] sm:$0xff] %vm1306_vm2, %v1275_v62  ;;  %4134 = vmatprep.subr.bf16.mxu1 %v4663_v59  ;;  %v4666_v62 = vld [vmem:[%s7002_s3 + $0x30] sm:$0xff]   ;;  %v1812_v59 = vld [vmem:[#allocation5 + $0xb8] sm:$0xff] }
 0x19f   :  { %v1388_v63 = vpop.permute.xlu0 %1387  ;;  %4135 = vmatpush3.bf16.msra.mxu1 %v4664_v60 }
 0x1a0   :  { %1428 = vst.msk [vmem:[#allocation5 + $0xc0] sm:$0xff] %vm1419_vm5, %v1388_v63  ;;  %4136 = vmatprep.subr.bf16.mxu1 %v4665_v61  ;;  %v4667_v63 = vld [vmem:[%s7002_s3 + $0x78] sm:$0xff]   ;;  %v5752_v61 = vpop.permute.xlu1 %1629 }
 0x1a3   :  { %4137 = vmatpush3.bf16.msra.mxu1 %v4666_v62 }
 0x1a4   :  { %4138 = vmatprep.subr.bf16.mxu1 %v4667_v63  ;;  %v5755_v62 = vpop.permute.xlu1 %1701 }
 0x1ad   :  { %v4387_v0 = vpop.f32.mrb[0].mxu0 }
 0x1ae   :  { %v991_v1 = vadd.f32 %v4387_v0, %v5583_v50  ;;  %v982_v49 = vpop.f32.mrb[1].mxu0  ;;  %v4668_v0 = vld [vmem:[%s7002_s3 + $0x38] sm:$0xff]  }
 0x1af   :  { %v983_v57 = vadd.f32 %v5583_v50, %v982_v49  ;;  %v4388_v4 = vpop.f32.mrb[2].mxu0  ;;  %4139 = vmatpush3.bf16.msra.mxu1 %v4668_v0 }
 0x1b0   :  { %v1047_v5 = vmax.f32 %v991_v1, 0.0  ;;  %v994_v6 = vadd.f32 %v4388_v4, %v5583_v50  ;;  %v985_v7 = vpop.f32.mrb[3].mxu0 }
 0x1b1   :  { %v1045_v8 = vmax.f32 %v983_v57, 0.0  ;;  %v986_v23 = vadd.f32 %v5583_v50, %v985_v7 }
 0x1b2   :  { %1108 = vst.msk [vmem:[#allocation4 + $0x31] sm:$0xff] %vm1061_vm15, %v1047_v5  ;;  %v1048_v24 = vmax.f32 %v994_v6, 0.0 }
 0x1b3   :  { %1106 = vst.msk [vmem:[#allocation4 + $0x11] sm:$0xff] %vm1061_vm15, %v1045_v8  ;;  %v1046_v9 = vmax.f32 %v986_v23, 0.0 }
 0x1b4   :  { %1109 = vst.msk [vmem:[#allocation4 + $0x41] sm:$0xff] %vm1061_vm15, %v1048_v24 }
 0x1b5   :  { %1107 = vst.msk [vmem:[#allocation4 + $0x21] sm:$0xff] %vm1061_vm15, %v1046_v9 }
 0x1b9   :  { %v1128_v10 = vld [vmem:[#allocation4 + $0x30] sm:$0xff]  ;;  %v1129_v11 = vld [vmem:[#allocation4 + $0x38] sm:$0x3] }
 0x1ba   :  { %1442 = vrot.lane.b32.xlu0 %v1128_v10, %s4744_s0  ;;  %v1332_v12 = vrot.slane %v1128_v10, 2  ;;  %1165 = vst.msk [vmem:[#allocation5 + $0x48] sm:$0xff] %vm1061_vm15, %v1128_v10  ;;  %1617 = vrot.lane.b32.xlu1 %v1128_v10, %s4743_s30  ;;  %v5596_v13 = vld [vmem:[#allocation4 + $0x10] sm:$0xff]  ;;  %v1219_v14 = vrot.slane %v1128_v10, 1  ;;  %v1220_v15 = vrot.slane %v1129_v11, 1  ;;  %v1333_v16 = vrot.slane %v1129_v11, 2 }
 0x1bb   :  { %v1130_v17 = vld [vmem:[#allocation4 + $0x40] sm:$0xff]  ;;  %1163 = vst.msk [vmem:[#allocation5 + $0x18] sm:$0xff] %vm1061_vm15, %v5596_v13  ;;  %v1125_v18 = vld [vmem:[#allocation4 + $0x18] sm:$0x3]  ;;  %v1213_v19 = vrot.slane %v5596_v13, 1  ;;  %v1326_v35 = vrot.slane %v5596_v13, 2 }
 0x1bc   :  { %1166 = vst.msk [vmem:[#allocation5 + $0x60] sm:$0xff] %vm1061_vm15, %v1130_v17  ;;  %v1221_v20 = vsel %vm221_vm3, %v1219_v14, %v1220_v15  ;;  %v1334_v21 = vsel %vm335_vm4, %v1332_v12, %v1333_v16  ;;  %v1126_v45 = vld [vmem:[#allocation4 + $0x20] sm:$0xff]  ;;  %v1127_v22 = vld [vmem:[#allocation4 + $0x28] sm:$0x3]  ;;  %v1222_v28 = vrot.slane %v1130_v17, 1  ;;  %v1214_v30 = vrot.slane %v1125_v18, 1 }
 0x1bd   :  { %v1131_v25 = vld [vmem:[#allocation4 + $0x48] sm:$0x3]  ;;  %1774 = vst.msk [vmem:[#allocation5 + $0x28] sm:$0xff] %vm1061_vm15, %v1334_v21  ;;  %1529 = vst.msk [vmem:[#allocation5 + $0x38] sm:$0xff] %vm1061_vm15, %v1221_v20  ;;  %v1330_v26 = vrot.slane %v1127_v22, 2  ;;  %v1329_v27 = vrot.slane %v1126_v45, 2 }
 0x1be   :  { %1164 = vst.msk [vmem:[#allocation5 + $0x30] sm:$0xff] %vm1061_vm15, %v1126_v45  ;;  %v1223_v29 = vrot.slane %v1131_v25, 1  ;;  %1444 = vrot.lane.b32.xlu1 %v1130_v17, %s4744_s0  ;;  %1438 = vrot.lane.b32.xlu0 %v5596_v13, %s4744_s0  ;;  %v1335_v31 = vrot.slane %v1130_v17, 2  ;;  %v1336_v33 = vrot.slane %v1131_v25, 2  ;;  %v1216_v37 = vrot.slane %v1126_v45, 1 }
 0x1bf   :  { %v5611_v34 = vsel %vm335_vm4, %v1329_v27, %v1330_v26  ;;  %v1217_v38 = vrot.slane %v1127_v22, 1  ;;  %v1215_v42 = vsel %vm221_vm3, %v1213_v19, %v1214_v30  ;;  %v1327_v3 = vrot.slane %v1125_v18, 2 }
 0x1c0   :  { %v1224_v36 = vsel %vm221_vm3, %v1222_v28, %v1223_v29  ;;  %1773 = vst.msk [vmem:[#allocation5 + $0x10] sm:$0xff] %vm1061_vm15, %v5611_v34  ;;  %v1337_v43 = vsel %vm335_vm4, %v1335_v31, %v1336_v33  ;;  %1527 = vst.msk [vmem:[#allocation5 + $0x8] sm:$0xff] %vm1061_vm15, %v1215_v42 }
 0x1c1   :  { %1530 = vst.msk [vmem:[#allocation5 + $0x50] sm:$0xff] %vm1061_vm15, %v1224_v36  ;;  %1775 = vst.msk [vmem:[#allocation5 + $0x40] sm:$0xff] %vm1061_vm15, %v1337_v43  ;;  %v1218_v41 = vsel %vm221_vm3, %v1216_v37, %v1217_v38  ;;  %v1328_v55 = vsel %vm335_vm4, %v1326_v35, %v1327_v3 }
 0x1c2   :  { %1689 = vrot.lane.b32.xlu1 %v1221_v20, %s4744_s0  ;;  %1619 = vrot.lane.b32.xlu0 %v1130_v17, %s4743_s30  ;;  %1528 = vst.msk [vmem:[#allocation5 + $0x20] sm:$0xff] %vm1061_vm15, %v1218_v41 }
 0x1c4   :  { %v1794_v51 = vld [vmem:[#allocation5 + $0x28] sm:$0xff] }
 0x1c6   :  { %1440 = vrot.lane.b32.xlu1 %v1126_v45, %s4744_s0  ;;  %1615 = vrot.lane.b32.xlu0 %v1126_v45, %s4743_s30 }
 0x1c7   :  { %v1791_v48 = vld [vmem:[#allocation5 + $0x10] sm:$0xff] }
 0x1c8   :  { %v1839_v40 = vpack.c.bf16 %v1794_v51, %v1791_v48  ;;  %v1755_v51 = vrot.slane %v5720_v44, 2  ;;  %v1797_v35 = vld [vmem:[#allocation5 + $0x40] sm:$0xff] }
 0x1ca   :  { %1264 = vrot.lane.b32.xlu1 %v1221_v20, %s4742_s25  ;;  %4405 = vmatprep.mubr.msk.bf16.mxu0 %vm1061_vm15, %v1839_v40 }
 0x1cb   :  { %1553 = vrot.lane.b32.xlu0 %v1334_v21, %s4742_s25 }
 0x1ce   :  { %1377 = vrot.lane.b32.xlu1 %v1334_v21, %s4743_s30 }
 0x1cf   :  { %1549 = vrot.lane.b32.xlu0 %v1328_v55, %s4742_s25 }
 0x1d2   :  { %1260 = vrot.lane.b32.xlu1 %v1215_v42, %s4742_s25 }
 0x1d3   :  { %1691 = vrot.lane.b32.xlu0 %v1224_v36, %s4744_s0 }
 0x1d6   :  { %1373 = vrot.lane.b32.xlu1 %v1328_v55, %s4743_s30 }
 0x1d7   :  { %1266 = vrot.lane.b32.xlu0 %v1224_v36, %s4742_s25 }
 0x1da   :  { %1555 = vrot.lane.b32.xlu1 %v1337_v43, %s4742_s25 }
 0x1db   :  { %1379 = vrot.lane.b32.xlu0 %v1337_v43, %s4743_s30 }
 0x1de   :  { %1551 = vrot.lane.b32.xlu1 %v5611_v34, %s4742_s25 }
 0x1df   :  { %1687 = vrot.lane.b32.xlu0 %v1218_v41, %s4744_s0 }
 0x1e3   :  { %1262 = vrot.lane.b32.xlu0 %v1218_v41, %s4742_s25  ;;  %v5718_v41 = vld [vmem:[#allocation4 + $0x130] sm:$0xff] }
 0x1e4   :  { %v1754_v48 = vrot.slane %v5718_v41, 2 }
 0x1e6   :  { %v1756_v40 = vsel %vm335_vm4, %v1754_v48, %v1755_v51 }
 0x1e7   :  { %1375 = vrot.lane.b32.xlu0 %v5611_v34, %s4743_s30  ;;  %1788 = vst.msk [vmem:[#allocation5 + $0x178] sm:$0xff] %vm1061_vm15, %v1756_v40 }
 0x1ed   :  { %v4391_v1 = vpop.f32.mrb[4].mxu0 }
 0x1ee   :  { %v1007_v49 = vadd.f32 %v4391_v1, %v5583_v50  ;;  %v998_v57 = vpop.f32.mrb[5].mxu0 }
 0x1ef   :  { %v999_v4 = vadd.f32 %v5583_v50, %v998_v57  ;;  %v4392_v5 = vpop.f32.mrb[6].mxu0 }
 0x1f0   :  { %v1051_v6 = vmax.f32 %v1007_v49, 0.0  ;;  %v1010_v7 = vadd.f32 %v4392_v5, %v5583_v50  ;;  %v1001_v8 = vpop.f32.mrb[7].mxu0 }
 0x1f1   :  { %v1049_v23 = vmax.f32 %v999_v4, 0.0  ;;  %v1002_v24 = vadd.f32 %v5583_v50, %v1001_v8 }
 0x1f2   :  { %1112 = vst.msk [vmem:[#allocation4 + $0x71] sm:$0xff] %vm1061_vm15, %v1051_v6  ;;  %v1052_v9 = vmax.f32 %v1010_v7, 0.0 }
 0x1f3   :  { %1110 = vst.msk [vmem:[#allocation4 + $0x51] sm:$0xff] %vm1061_vm15, %v1049_v23  ;;  %v1050_v10 = vmax.f32 %v1002_v24, 0.0 }
 0x1f4   :  { %1113 = vst.msk [vmem:[#allocation4 + $0x81] sm:$0xff] %vm1061_vm15, %v1052_v9 }
 0x1f5   :  { %1111 = vst.msk [vmem:[#allocation4 + $0x61] sm:$0xff] %vm1061_vm15, %v1050_v10 }
 0x1f9   :  { %v1136_v11 = vld [vmem:[#allocation4 + $0x70] sm:$0xff]  ;;  %v1137_v12 = vld [vmem:[#allocation4 + $0x78] sm:$0x3] }
 0x1fa   :  { %v1344_v13 = vrot.slane %v1136_v11, 2  ;;  %1450 = vrot.lane.b32.xlu0 %v1136_v11, %s4744_s0  ;;  %1169 = vst.msk [vmem:[#allocation5 + $0xa8] sm:$0xff] %vm1061_vm15, %v1136_v11  ;;  %1625 = vrot.lane.b32.xlu1 %v1136_v11, %s4743_s30  ;;  %v1132_v14 = vld [vmem:[#allocation4 + $0x50] sm:$0xff]  ;;  %v1133_v15 = vld [vmem:[#allocation4 + $0x58] sm:$0x3]  ;;  %v1231_v16 = vrot.slane %v1136_v11, 1 }
 0x1fb   :  { %v1232_v17 = vrot.slane %v1137_v12, 1  ;;  %v1338_v18 = vrot.slane %v1132_v14, 2  ;;  %v1339_v19 = vrot.slane %v1133_v15, 2  ;;  %1167 = vst.msk [vmem:[#allocation5 + $0x78] sm:$0xff] %vm1061_vm15, %v1132_v14  ;;  %v1138_v20 = vld [vmem:[#allocation4 + $0x80] sm:$0xff]  ;;  %v1345_v45 = vrot.slane %v1137_v12, 2 }
 0x1fc   :  { %v1139_v21 = vld [vmem:[#allocation4 + $0x88] sm:$0x3]  ;;  %v1505_v22 = vrot.slane %v1138_v20, 1  ;;  %v1543_v25 = vrot.slane %v1138_v20, 2  ;;  %v1134_v27 = vld [vmem:[#allocation4 + $0x60] sm:$0xff]  ;;  %v1225_v42 = vrot.slane %v1132_v14, 1 }
 0x1fd   :  { %v1544_v26 = vrot.slane %v1139_v21, 2  ;;  %v1135_v28 = vld [vmem:[#allocation4 + $0x68] sm:$0x3]  ;;  %v1233_v29 = vsel %vm221_vm3, %v1231_v16, %v1232_v17  ;;  %v1340_v30 = vsel %vm335_vm4, %v1338_v18, %v1339_v19  ;;  %v1341_v31 = vrot.slane %v1134_v27, 2  ;;  %1168 = vst.msk [vmem:[#allocation5 + $0x90] sm:$0xff] %vm1061_vm15, %v1134_v27 }
 0x1fe   :  { %v1342_v33 = vrot.slane %v1135_v28, 2  ;;  %v1346_v34 = vsel %vm335_vm4, %v1344_v13, %v1345_v45  ;;  %1533 = vst.msk [vmem:[#allocation5 + $0x98] sm:$0xff] %vm1061_vm15, %v1233_v29  ;;  %1776 = vst.msk [vmem:[#allocation5 + $0x58] sm:$0xff] %vm1061_vm15, %v1340_v30  ;;  %1446 = vrot.lane.b32.xlu0 %v1132_v14, %s4744_s0  ;;  %1621 = vrot.lane.b32.xlu1 %v1132_v14, %s4743_s30  ;;  %v1506_v37 = vrot.slane %v1139_v21, 1  ;;  %v1228_v38 = vrot.slane %v1134_v27, 1 }
 0x1ff   :  { %v1545_v36 = vsel %vm335_vm4, %v1543_v25, %v1544_v26  ;;  %1778 = vst.msk [vmem:[#allocation5 + $0x88] sm:$0xff] %vm1061_vm15, %v1346_v34  ;;  %v1229_v39 = vrot.slane %v1135_v28, 1  ;;  %v1226_v43 = vrot.slane %v1133_v15, 1 }
 0x200   :  { %1779 = vst.msk [vmem:[#allocation5 + $0xa0] sm:$0xff] %vm1061_vm15, %v1545_v36  ;;  %v1343_v32 = vsel %vm335_vm4, %v1341_v31, %v1342_v33  ;;  %v1507_v46 = vsel %vm221_vm3, %v1505_v22, %v1506_v37 }
 0x201   :  { %1777 = vst.msk [vmem:[#allocation5 + $0x70] sm:$0xff] %vm1061_vm15, %v1343_v32  ;;  %v1230_v47 = vsel %vm221_vm3, %v1228_v38, %v1229_v39  ;;  %1534 = vst.msk [vmem:[#allocation5 + $0xb0] sm:$0xff] %vm1061_vm15, %v1507_v46  ;;  %v1227_v52 = vsel %vm221_vm3, %v1225_v42, %v1226_v43 }
 0x202   :  { %1532 = vst.msk [vmem:[#allocation5 + $0x80] sm:$0xff] %vm1061_vm15, %v1230_v47  ;;  %1627 = vrot.lane.b32.xlu0 %v1138_v20, %s4743_s30  ;;  %1452 = vrot.lane.b32.xlu1 %v1138_v20, %s4744_s0  ;;  %1531 = vst.msk [vmem:[#allocation5 + $0x68] sm:$0xff] %vm1061_vm15, %v1227_v52 }
 0x205   :  { %v1800_v3 = vld [vmem:[#allocation5 + $0x58] sm:$0xff] }
 0x206   :  { %1623 = vrot.lane.b32.xlu0 %v1134_v27, %s4743_s30  ;;  %1697 = vrot.lane.b32.xlu1 %v1233_v29, %s4744_s0  ;;  %v1842_v53 = vpack.c.bf16 %v1800_v3, %v1797_v35  ;;  %v1806_v55 = vld [vmem:[#allocation5 + $0x88] sm:$0xff] }
 0x207   :  { %v1809_v58 = vld [vmem:[#allocation5 + $0xa0] sm:$0xff] }
 0x208   :  { %v1803_v54 = vld [vmem:[#allocation5 + $0x70] sm:$0xff]  ;;  %4406 = vmatmul.mubr.msk.bf16.vlgmr.msra.gmra.mrb[16].mxu0 %vm1061_vm15, %v1842_v53  ;;  %v1848_v60 = vpack.c.bf16 %v1812_v59, %v1809_v58 }
 0x209   :  { %v1845_v56 = vpack.c.bf16 %v1806_v55, %v1803_v54 }
 0x20a   :  { %1561 = vrot.lane.b32.xlu0 %v1346_v34, %s4742_s25  ;;  %1448 = vrot.lane.b32.xlu1 %v1134_v27, %s4744_s0 }
 0x20b   :  { %4409 = vmatprep.mubr.msk.bf16.mxu0 %vm1061_vm15, %v1845_v56 }
 0x20e   :  { %1557 = vrot.lane.b32.xlu0 %v1340_v30, %s4742_s25  ;;  %1272 = vrot.lane.b32.xlu1 %v1233_v29, %s4742_s25 }
 0x210   :  { %4410 = vmatmul.mubr.msk.bf16.gmra.mrb[20].mxu0 %vm1061_vm15, %v1848_v60 }
 0x212   :  { %1699 = vrot.lane.b32.xlu0 %v1507_v46, %s4744_s0  ;;  %1385 = vrot.lane.b32.xlu1 %v1346_v34, %s4743_s30 }
 0x216   :  { %1695 = vrot.lane.b32.xlu0 %v1230_v47, %s4744_s0  ;;  %1693 = vrot.lane.b32.xlu1 %v1227_v52, %s4744_s0 }
 0x21a   :  { %1270 = vrot.lane.b32.xlu0 %v1230_v47, %s4742_s25  ;;  %1268 = vrot.lane.b32.xlu1 %v1227_v52, %s4742_s25 }
 0x21e   :  { %1383 = vrot.lane.b32.xlu0 %v1343_v32, %s4743_s30  ;;  %1381 = vrot.lane.b32.xlu1 %v1340_v30, %s4743_s30 }
 0x222   :  { %1563 = vrot.lane.b32.xlu1 %v1545_v36, %s4742_s25 }
 0x226   :  { %1559 = vrot.lane.b32.xlu1 %v1343_v32, %s4742_s25 }
 0x22c   :  { %v5758_v63 = vpop.permute.xlu0 %1442  ;;  %v5760_v0 = vpop.permute.xlu1 %1617 }
 0x22d   :  { %v4395_v1 = vpop.f32.mrb[8].mxu0 }
 0x22e   :  { %v1023_v49 = vadd.f32 %v4395_v1, %v5583_v50  ;;  %v1014_v57 = vpop.f32.mrb[9].mxu0 }
 0x22f   :  { %v1015_v4 = vadd.f32 %v5583_v50, %v1014_v57  ;;  %v4396_v5 = vpop.f32.mrb[10].mxu0 }
 0x230   :  { %v1055_v6 = vmax.f32 %v1023_v49, 0.0  ;;  %v1026_v7 = vadd.f32 %v4396_v5, %v5583_v50  ;;  %v5765_v8 = vpop.permute.xlu1 %1444  ;;  %v1017_v23 = vpop.f32.mrb[11].mxu0 }
 0x231   :  { %v1053_v24 = vmax.f32 %v1015_v4, 0.0  ;;  %v1018_v9 = vadd.f32 %v5583_v50, %v1017_v23  ;;  %v1439_v10 = vpop.permute.xlu0 %1438 }
 0x232   :  { %1116 = vst.msk [vmem:[#allocation4 + $0xd1] sm:$0xff] %vm1061_vm15, %v1055_v6  ;;  %v1056_v11 = vmax.f32 %v1026_v7, 0.0 }
 0x233   :  { %1487 = vst.msk [vmem:[#allocation5] sm:$0xff] %vm1486_vm6, %v1439_v10  ;;  %v1054_v12 = vmax.f32 %v1018_v9, 0.0 }
 0x234   :  { %1114 = vst.msk [vmem:[#allocation4 + $0xb1] sm:$0xff] %vm1061_vm15, %v1053_v24  ;;  %1117 = vst.msk [vmem:[#allocation4 + $0xe1] sm:$0xff] %vm1061_vm15, %v1056_v11  ;;  %v5772_v13 = vpop.permute.xlu1 %1689 }
 0x235   :  { %1115 = vst.msk [vmem:[#allocation4 + $0xc1] sm:$0xff] %vm1061_vm15, %v1054_v12  ;;  %v1620_v14 = vpop.permute.xlu0 %1619 }
 0x238   :  { %v5775_v15 = vpop.permute.xlu1 %1440 }
 0x239   :  { %v1616_v16 = vpop.permute.xlu0 %1615  ;;  %v5777_v17 = vld [vmem:[#allocation4 + $0xd0] sm:$0xff]  ;;  %v1149_v18 = vld [vmem:[#allocation4 + $0xd8] sm:$0x3] }
 0x23a   :  { %1633 = vrot.lane.b32.xlu1 %v5777_v17, %s4743_s30  ;;  %1173 = vst.msk [vmem:[#allocation5 + $0x108] sm:$0xff] %vm1061_vm15, %v5777_v17  ;;  %v1243_v20 = vrot.slane %v5777_v17, 1  ;;  %v1244_v21 = vrot.slane %v1149_v18, 1  ;;  %v1356_v45 = vrot.slane %v5777_v17, 2  ;;  %v1357_v22 = vrot.slane %v1149_v18, 2 }
 0x23b   :  { %v5783_v19 = vld [vmem:[#allocation4 + $0xb0] sm:$0xff]  ;;  %v5792_v26 = vld [vmem:[#allocation4 + $0xe0] sm:$0xff]  ;;  %v5794_v27 = vld [vmem:[#allocation4 + $0xb8] sm:$0x3] }
 0x23c   :  { %v1237_v25 = vrot.slane %v5783_v19, 1  ;;  %1454 = vrot.lane.b32.xlu0 %v5783_v19, %s4744_s0  ;;  %1171 = vst.msk [vmem:[#allocation5 + $0xd8] sm:$0xff] %vm1061_vm15, %v5783_v19  ;;  %v1265_v28 = vpop.permute.xlu1 %1264  ;;  %v1245_v29 = vsel %vm221_vm3, %v1243_v20, %v1244_v21  ;;  %1174 = vst.msk [vmem:[#allocation5 + $0x120] sm:$0xff] %vm1061_vm15, %v5792_v26  ;;  %v1146_v30 = vld [vmem:[#allocation4 + $0xc0] sm:$0xff]  ;;  %v1147_v31 = vld [vmem:[#allocation4 + $0xc8] sm:$0x3]  ;;  %v1358_v33 = vsel %vm335_vm4, %v1356_v45, %v1357_v22 }
 0x23d   :  { %v1238_v34 = vrot.slane %v5794_v27, 1  ;;  %1310 = vst.msk [vmem:[#allocation5 + $0x48] sm:$0xff] %vm1306_vm2, %v1265_v28  ;;  %v1554_v36 = vpop.permute.xlu0 %1553  ;;  %v1353_v37 = vrot.slane %v1146_v30, 2  ;;  %v1354_v38 = vrot.slane %v1147_v31, 2  ;;  %v1240_v39 = vrot.slane %v1146_v30, 1 }
 0x23e   :  { %1537 = vst.msk [vmem:[#allocation5 + $0xf8] sm:$0xff] %vm1061_vm15, %v1245_v29  ;;  %1172 = vst.msk [vmem:[#allocation5 + $0xf0] sm:$0xff] %vm1061_vm15, %v1146_v30  ;;  %v1241_v32 = vrot.slane %v1147_v31, 1  ;;  %v1151_v42 = vld [vmem:[#allocation4 + $0xe8] sm:$0x3]  ;;  %1705 = vrot.lane.b32.xlu1 %v1245_v29, %s4744_s0  ;;  %v1359_v46 = vrot.slane %v5792_v26, 2 }
 0x23f   :  { %1782 = vst.msk [vmem:[#allocation5 + $0xe8] sm:$0xff] %vm1061_vm15, %v1358_v33  ;;  %v1239_v43 = vsel %vm221_vm3, %v1237_v25, %v1238_v34  ;;  %v1360_v47 = vrot.slane %v1151_v42, 2  ;;  %v1355_v48 = vsel %vm335_vm4, %v1353_v37, %v1354_v38  ;;  %v1246_v52 = vrot.slane %v5792_v26, 1 }
 0x240   :  { %1599 = vst.msk [vmem:[#allocation5 + $0x38] sm:$0xff] %vm1306_vm2, %v1554_v36  ;;  %1635 = vrot.lane.b32.xlu0 %v5792_v26, %s4743_s30  ;;  %v1242_v51 = vsel %vm221_vm3, %v1240_v39, %v1241_v32  ;;  %v1247_v40 = vrot.slane %v1151_v42, 1  ;;  %v1378_v35 = vpop.permute.xlu1 %1377  ;;  %v1350_v58 = vrot.slane %v5783_v19, 2  ;;  %v1351_v59 = vrot.slane %v5794_v27, 2 }
 0x241   :  { %1665 = vst.msk [vmem:[#allocation5 + $0x38] sm:$0xff] %vm1419_vm5, %v1620_v14  ;;  %v5819_v3 = vsel %vm335_vm4, %v1359_v46, %v1360_v47  ;;  %1423 = vst.msk [vmem:[#allocation5 + $0x48] sm:$0xff] %vm1419_vm5, %v1378_v35  ;;  %v1550_v53 = vpop.permute.xlu0 %1549 }
 0x242   :  { %1535 = vst.msk [vmem:[#allocation5 + $0xc8] sm:$0xff] %vm1061_vm15, %v1239_v43  ;;  %1781 = vst.msk [vmem:[#allocation5 + $0xd0] sm:$0xff] %vm1061_vm15, %v1355_v48  ;;  %v5825_v54 = vsel %vm221_vm3, %v1246_v52, %v1247_v40  ;;  %1456 = vrot.lane.b32.xlu1 %v1146_v30, %s4744_s0  ;;  %v1352_v5 = vsel %vm335_vm4, %v1350_v58, %v1351_v59 }
 0x243   :  { %1536 = vst.msk [vmem:[#allocation5 + $0xe0] sm:$0xff] %vm1061_vm15, %v1242_v51  ;;  %1783 = vst.msk [vmem:[#allocation5 + $0x100] sm:$0xff] %vm1061_vm15, %v5819_v3 }
 0x244   :  { %1490 = vst.msk [vmem:[#allocation5 + $0x48] sm:$0xff] %vm1486_vm6, %v5765_v8  ;;  %1631 = vrot.lane.b32.xlu0 %v1146_v30, %s4743_s30  ;;  %v1261_v55 = vpop.permute.xlu1 %1260 }
 0x245   :  { %1597 = vst.msk [vmem:[#allocation5 + $0x8] sm:$0xff] %vm1306_vm2, %v1550_v53  ;;  %v1692_v56 = vpop.permute.xlu0 %1691  ;;  %1308 = vst.msk [vmem:[#allocation5 + $0x18] sm:$0xff] %vm1306_vm2, %v1261_v55 }
 0x246   :  { %1538 = vst.msk [vmem:[#allocation5 + $0x110] sm:$0xff] %vm1061_vm15, %v5825_v54  ;;  %1280 = vrot.lane.b32.xlu1 %v1245_v29, %s4742_s25  ;;  %v1818_v1 = vld [vmem:[#allocation5 + $0xe8] sm:$0xff] }
 0x247   :  { %1663 = vst.msk [vmem:[#allocation5 + $0x8] sm:$0xff] %vm1419_vm5, %v1616_v16 }
 0x248   :  { %1737 = vst.msk [vmem:[#allocation5 + $0x38] sm:$0xff] %vm1486_vm6, %v1692_v56  ;;  %1569 = vrot.lane.b32.xlu0 %v1358_v33, %s4742_s25  ;;  %v1374_v49 = vpop.permute.xlu1 %1373 }
 0x249   :  { %v1815_v60 = vld [vmem:[#allocation5 + $0xd0] sm:$0xff]  ;;  %v1267_v4 = vpop.permute.xlu0 %1266  ;;  %1421 = vst.msk [vmem:[#allocation5 + $0x18] sm:$0xff] %vm1419_vm5, %v1374_v49 }
 0x24a   :  { %v1851_v57 = vpack.c.bf16 %v1818_v1, %v1815_v60  ;;  %1311 = vst.msk [vmem:[#allocation5 + $0x60] sm:$0xff] %vm1306_vm2, %v1267_v4  ;;  %1393 = vrot.lane.b32.xlu1 %v1358_v33, %s4743_s30 }
 0x24b   :  { %1488 = vst.msk [vmem:[#allocation5 + $0x18] sm:$0xff] %vm1486_vm6, %v5775_v15 }
 0x24c   :  { %4413 = vmatprep.mubr.msk.bf16.mxu0 %vm1061_vm15, %v1851_v57  ;;  %1565 = vrot.lane.b32.xlu0 %v1352_v5, %s4742_s25  ;;  %v1556_v6 = vpop.permute.xlu1 %1555 }
 0x24d   :  { %v1380_v7 = vpop.permute.xlu0 %1379  ;;  %1600 = vst.msk [vmem:[#allocation5 + $0x50] sm:$0xff] %vm1306_vm2, %v1556_v6 }
 0x24e   :  { %1424 = vst.msk [vmem:[#allocation5 + $0x60] sm:$0xff] %vm1419_vm5, %v1380_v7  ;;  %1276 = vrot.lane.b32.xlu1 %v1239_v43, %s4742_s25 }
 0x250   :  { %1703 = vrot.lane.b32.xlu0 %v1242_v51, %s4744_s0  ;;  %v1552_v8 = vpop.permute.xlu1 %1551 }
 0x251   :  { %v1688_v23 = vpop.permute.xlu0 %1687  ;;  %1598 = vst.msk [vmem:[#allocation5 + $0x20] sm:$0xff] %vm1306_vm2, %v1552_v8 }
 0x252   :  { %1735 = vst.msk [vmem:[#allocation5 + $0x8] sm:$0xff] %vm1486_vm6, %v1688_v23  ;;  %1389 = vrot.lane.b32.xlu1 %v1352_v5, %s4743_s30  ;;  %v1792_v10 = vld [vmem:[#allocation5 + $0x18] sm:$0xff] }
 0x253   :  { %1664 = vst.msk [vmem:[#allocation5 + $0x20] sm:$0xff] %vm1419_vm5, %v5760_v0 }
 0x254   :  { %1736 = vst.msk [vmem:[#allocation5 + $0x20] sm:$0xff] %vm1486_vm6, %v5772_v13  ;;  %1278 = vrot.lane.b32.xlu0 %v1242_v51, %s4742_s25  ;;  %v1789_v13 = vld [vmem:[#allocation5] sm:$0xff] }
 0x255   :  { %v1263_v24 = vpop.permute.xlu0 %1262  ;;  %v1837_v14 = vpack.c.bf16 %v1792_v10, %v1789_v13 }
 0x256   :  { %1309 = vst.msk [vmem:[#allocation5 + $0x30] sm:$0xff] %vm1306_vm2, %v1263_v24  ;;  %1571 = vrot.lane.b32.xlu1 %v5819_v3, %s4742_s25 }
 0x258   :  { %1391 = vrot.lane.b32.xlu0 %v1355_v48, %s4743_s30 }
 0x259   :  { %v1376_v9 = vpop.permute.xlu0 %1375  ;;  %v1790_v0 = vld [vmem:[#allocation5 + $0x8] sm:$0xff] }
 0x25a   :  { %1422 = vst.msk [vmem:[#allocation5 + $0x30] sm:$0xff] %vm1419_vm5, %v1376_v9  ;;  %1567 = vrot.lane.b32.xlu1 %v1355_v48, %s4742_s25 }
 0x25b   :  { %v1793_v11 = vld [vmem:[#allocation5 + $0x20] sm:$0xff]  ;;  %1489 = vst.msk [vmem:[#allocation5 + $0x30] sm:$0xff] %vm1486_vm6, %v5758_v63 }
 0x25c   :  { %1707 = vrot.lane.b32.xlu0 %v5825_v54, %s4744_s0  ;;  %v1838_v12 = vpack.c.bf16 %v1793_v11, %v1790_v0 }
 0x25e   :  { %2068 = vmatprep.mubr.bf16.mxu1 %v1838_v12  ;;  %1460 = vrot.lane.b32.xlu1 %v5792_v26, %s4744_s0 }
 0x25f   :  { %2069 = vmatmul.mubr.bf16.vlgmr.msra.gmra.mrb[0].mxu1 %v1837_v14 }
 0x260   :  { %1458 = vrot.lane.b32.xlu0 %v5777_v17, %s4744_s0 }
 0x26c   :  { %v5875_v15 = vpop.permute.xlu0 %1450  ;;  %v5877_v16 = vpop.permute.xlu1 %1625 }
 0x26d   :  { %v4399_v18 = vpop.f32.mrb[12].mxu0 }
 0x26e   :  { %v1039_v63 = vadd.f32 %v4399_v18, %v5583_v50  ;;  %v1030_v19 = vpop.f32.mrb[13].mxu0 }
 0x26f   :  { %v1031_v20 = vadd.f32 %v5583_v50, %v1030_v19  ;;  %v4400_v21 = vpop.f32.mrb[14].mxu0 }
 0x270   :  { %v1059_v45 = vmax.f32 %v1039_v63, 0.0  ;;  %v1042_v22 = vadd.f32 %v4400_v21, %v5583_v50  ;;  %v1033_v25 = vpop.f32.mrb[15].mxu0  ;;  %v1447_v26 = vpop.permute.xlu0 %1446  ;;  %v1821_v63 = vld [vmem:[#allocation5 + $0x100] sm:$0xff] }
 0x271   :  { %v1057_v27 = vmax.f32 %v1031_v20, 0.0  ;;  %v1034_v28 = vadd.f32 %v5583_v50, %v1033_v25  ;;  %1491 = vst.msk [vmem:[#allocation5 + $0x60] sm:$0xff] %vm1486_vm6, %v1447_v26  ;;  %v1622_v17 = vpop.permute.xlu1 %1621 }
 0x272   :  { %1120 = vst.msk [vmem:[#allocation4 + $0x111] sm:$0xff] %vm1061_vm15, %v1059_v45  ;;  %v1060_v29 = vmax.f32 %v1042_v22, 0.0 }
 0x273   :  { %1666 = vst.msk [vmem:[#allocation5 + $0x50] sm:$0xff] %vm1419_vm5, %v1622_v17  ;;  %v1058_v30 = vmax.f32 %v1034_v28, 0.0 }
 0x274   :  { %1118 = vst.msk [vmem:[#allocation4 + $0xf1] sm:$0xff] %vm1061_vm15, %v1057_v27  ;;  %1121 = vst.msk [vmem:[#allocation4 + $0x121] sm:$0xff] %vm1061_vm15, %v1060_v29  ;;  %v1628_v31 = vpop.permute.xlu0 %1627  ;;  %v1836_v27 = vld [vmem:[#allocation5 + $0x178] sm:$0xff] }
 0x275   :  { %1119 = vst.msk [vmem:[#allocation4 + $0x101] sm:$0xff] %vm1061_vm15, %v1058_v30  ;;  %v5889_v33 = vpop.permute.xlu1 %1452  ;;  %v1795_v30 = vld [vmem:[#allocation5 + $0x30] sm:$0xff] }
 0x278   :  { %v1624_v34 = vpop.permute.xlu0 %1623 }
 0x279   :  { %v5891_v50 = vld [vmem:[#allocation4 + $0x110] sm:$0xff]  ;;  %v1157_v36 = vld [vmem:[#allocation4 + $0x118] sm:$0x3]  ;;  %v5893_v37 = vpop.permute.xlu1 %1697 }
 0x27a   :  { %v1368_v38 = vrot.slane %v5891_v50, 2  ;;  %v1369_v39 = vrot.slane %v1157_v36, 2  ;;  %1177 = vst.msk [vmem:[#allocation5 + $0x168] sm:$0xff] %vm1061_vm15, %v5891_v50  ;;  %v1255_v43 = vrot.slane %v5891_v50, 1  ;;  %v1256_v8 = vrot.slane %v1157_v36, 1 }
 0x27b   :  { %v5898_v32 = vld [vmem:[#allocation4 + $0xf0] sm:$0xff]  ;;  %v1153_v42 = vld [vmem:[#allocation4 + $0xf8] sm:$0x3]  ;;  %v5901_v46 = vld [vmem:[#allocation4 + $0x120] sm:$0xff] }
 0x27c   :  { %v1159_v47 = vld [vmem:[#allocation4 + $0x128] sm:$0x3]  ;;  %1637 = vrot.lane.b32.xlu1 %v5898_v32, %s4743_s30  ;;  %1175 = vst.msk [vmem:[#allocation5 + $0x138] sm:$0xff] %vm1061_vm15, %v5898_v32  ;;  %v1362_v48 = vrot.slane %v5898_v32, 2  ;;  %v1363_v51 = vrot.slane %v1153_v42, 2  ;;  %v1249_v52 = vrot.slane %v5898_v32, 1  ;;  %v5910_v40 = vsel %vm335_vm4, %v1368_v38, %v1369_v39  ;;  %v1562_v55 = vpop.permute.xlu0 %1561 }
 0x27d   :  { %v1546_v35 = vrot.slane %v5901_v46, 2  ;;  %v1547_v53 = vrot.slane %v1159_v47, 2  ;;  %v1250_v56 = vrot.slane %v1153_v42, 1  ;;  %v5913_v58 = vld [vmem:[#allocation4 + $0x100] sm:$0xff]  ;;  %v1155_v59 = vld [vmem:[#allocation4 + $0x108] sm:$0x3]  ;;  %v5918_v60 = vpop.permute.xlu1 %1448  ;;  %v5946_v11 = vsel %vm221_vm3, %v1255_v43, %v1256_v8 }
 0x27e   :  { %1786 = vst.msk [vmem:[#allocation5 + $0x148] sm:$0xff] %vm1061_vm15, %v5910_v40  ;;  %v1364_v1 = vsel %vm335_vm4, %v1362_v48, %v1363_v51  ;;  %v1365_v49 = vrot.slane %v5913_v58, 2  ;;  %v1366_v57 = vrot.slane %v1155_v59, 2  ;;  %1176 = vst.msk [vmem:[#allocation5 + $0x150] sm:$0xff] %vm1061_vm15, %v5913_v58  ;;  %v1252_v4 = vrot.slane %v5913_v58, 1  ;;  %v1798_v38 = vld [vmem:[#allocation5 + $0x48] sm:$0xff] }
 0x27f   :  { %1603 = vst.msk [vmem:[#allocation5 + $0x98] sm:$0xff] %vm1306_vm2, %v1562_v55  ;;  %v5926_v5 = vsel %vm335_vm4, %v1546_v35, %v1547_v53  ;;  %1573 = vrot.lane.b32.xlu0 %v1364_v1, %s4742_s25  ;;  %v1251_v6 = vsel %vm221_vm3, %v1249_v52, %v1250_v56  ;;  %v1253_v7 = vrot.slane %v1155_v59, 1  ;;  %v1508_v24 = vrot.slane %v5901_v46, 1  ;;  %v6129_v8 = vld [vmem:[#allocation6] sm:$0xff] }
 0x280   :  { %1669 = vst.msk [vmem:[#allocation5 + $0x98] sm:$0xff] %vm1419_vm5, %v1628_v31  ;;  %1709 = vrot.lane.b32.xlu1 %v1251_v6, %s4744_s0  ;;  %v5937_v23 = vsel %vm335_vm4, %v1365_v49, %v1366_v57  ;;  %v1509_v9 = vrot.slane %v1159_v47, 1  ;;  %v1558_v10 = vpop.permute.xlu0 %1557  ;;  %v1840_v39 = vpack.c.bf16 %v1798_v38, %v1795_v30  ;;  %v1801_v47 = vld [vmem:[#allocation5 + $0x60] sm:$0xff]  ;;  %v1685_v48 = vrot.slane %v5720_v44, 1 }
 0x281   :  { %1784 = vst.msk [vmem:[#allocation5 + $0x118] sm:$0xff] %vm1061_vm15, %v1364_v1  ;;  %1787 = vst.msk [vmem:[#allocation5 + $0x160] sm:$0xff] %vm1061_vm15, %v5926_v5  ;;  %v5943_v0 = vsel %vm221_vm3, %v1252_v4, %v1253_v7  ;;  %v1273_v12 = vpop.permute.xlu1 %1272 }
 0x282   :  { %1539 = vst.msk [vmem:[#allocation5 + $0x128] sm:$0xff] %vm1061_vm15, %v1251_v6  ;;  %1785 = vst.msk [vmem:[#allocation5 + $0x130] sm:$0xff] %vm1061_vm15, %v5937_v23  ;;  %v5954_v13 = vsel %vm221_vm3, %v1508_v24, %v1509_v9 }
 0x283   :  { %1601 = vst.msk [vmem:[#allocation5 + $0x68] sm:$0xff] %vm1306_vm2, %v1558_v10  ;;  %1314 = vst.msk [vmem:[#allocation5 + $0xa8] sm:$0xff] %vm1306_vm2, %v1273_v12  ;;  %1282 = vrot.lane.b32.xlu0 %v5825_v54, %s4742_s25 }
 0x284   :  { %1540 = vst.msk [vmem:[#allocation5 + $0x140] sm:$0xff] %vm1061_vm15, %v5943_v0  ;;  %1541 = vst.msk [vmem:[#allocation5 + $0x158] sm:$0xff] %vm1061_vm15, %v5946_v11  ;;  %1575 = vrot.lane.b32.xlu1 %v5937_v23, %s4742_s25  ;;  %v1700_v14 = vpop.permute.xlu0 %1699 }
 0x285   :  { %1667 = vst.msk [vmem:[#allocation5 + $0x68] sm:$0xff] %vm1419_vm5, %v1624_v34  ;;  %v1386_v18 = vpop.permute.xlu1 %1385  ;;  %v1830_v21 = vld [vmem:[#allocation5 + $0x148] sm:$0xff] }
 0x286   :  { %1542 = vst.msk [vmem:[#allocation5 + $0x170] sm:$0xff] %vm1061_vm15, %v5954_v13 }
 0x287   :  { %1741 = vst.msk [vmem:[#allocation5 + $0x98] sm:$0xff] %vm1486_vm6, %v1700_v14  ;;  %1639 = vrot.lane.b32.xlu0 %v5913_v58, %s4743_s30 }
 0x288   :  { %v1824_v19 = vld [vmem:[#allocation5 + $0x118] sm:$0xff]  ;;  %1427 = vst.msk [vmem:[#allocation5 + $0xa8] sm:$0xff] %vm1419_vm5, %v1386_v18  ;;  %1284 = vrot.lane.b32.xlu1 %v1251_v6, %s4742_s25  ;;  %v1696_v45 = vpop.permute.xlu0 %1695  ;;  %v1833_v26 = vld [vmem:[#allocation5 + $0x160] sm:$0xff] }
 0x289   :  { %v1854_v20 = vpack.c.bf16 %v1824_v19, %v1821_v63  ;;  %1494 = vst.msk [vmem:[#allocation5 + $0xa8] sm:$0xff] %vm1486_vm6, %v5889_v33  ;;  %v1827_v54 = vld [vmem:[#allocation5 + $0x130] sm:$0xff]  ;;  %1739 = vst.msk [vmem:[#allocation5 + $0x68] sm:$0xff] %vm1486_vm6, %v1696_v45  ;;  %v1694_v25 = vpop.permute.xlu1 %1693  ;;  %v1860_v29 = vpack.c.bf16 %v1836_v27, %v1833_v26  ;;  %v1796_v33 = vld [vmem:[#allocation5 + $0x38] sm:$0xff] }
 0x28a   :  { %v1857_v22 = vpack.c.bf16 %v1830_v21, %v1827_v54  ;;  %1738 = vst.msk [vmem:[#allocation5 + $0x50] sm:$0xff] %vm1486_vm6, %v1694_v25 }
 0x28b   :  { %4414 = vmatmul.mubr.msk.bf16.gmra.mrb[24].mxu0 %vm1061_vm15, %v1854_v20  ;;  %1395 = vrot.lane.b32.xlu0 %v5819_v3, %s4743_s30  ;;  %2347 = vst.msk [vmem:[#allocation7] sm:$0xff] %vm2246_vm7, %v6129_v8 }
 0x28c   :  { %4417 = vmatprep.mubr.msk.bf16.mxu0 %vm1061_vm15, %v1857_v22  ;;  %1641 = vrot.lane.b32.xlu1 %v5891_v50, %s4743_s30  ;;  %v1271_v28 = vpop.permute.xlu0 %1270 }
 0x28d   :  { %1313 = vst.msk [vmem:[#allocation5 + $0x90] sm:$0xff] %vm1306_vm2, %v1271_v28  ;;  %v1269_v17 = vpop.permute.xlu1 %1268 }
 0x28e   :  { %1312 = vst.msk [vmem:[#allocation5 + $0x78] sm:$0xff] %vm1306_vm2, %v1269_v17  ;;  %v1808_v52 = vld [vmem:[#allocation5 + $0x98] sm:$0xff] }
 0x28f   :  { %1711 = vrot.lane.b32.xlu0 %v5943_v0, %s4744_s0 }
 0x290   :  { %1397 = vrot.lane.b32.xlu1 %v1364_v1, %s4743_s30  ;;  %v1384_v3 = vpop.permute.xlu0 %1383  ;;  %v1810_v55 = vld [vmem:[#allocation5 + $0xa8] sm:$0xff] }
 0x291   :  { %1426 = vst.msk [vmem:[#allocation5 + $0x90] sm:$0xff] %vm1419_vm5, %v1384_v3  ;;  %v1382_v31 = vpop.permute.xlu1 %1381  ;;  %v1799_v34 = vld [vmem:[#allocation5 + $0x50] sm:$0xff] }
 0x292   :  { %1493 = vst.msk [vmem:[#allocation5 + $0x90] sm:$0xff] %vm1486_vm6, %v5875_v15  ;;  %v1841_v36 = vpack.c.bf16 %v1799_v34, %v1796_v33 }
 0x293   :  { %4418 = vmatmul.mubr.msk.bf16.gmra.mrb[28].mxu0 %vm1061_vm15, %v1860_v29  ;;  %1425 = vst.msk [vmem:[#allocation5 + $0x78] sm:$0xff] %vm1419_vm5, %v1382_v31  ;;  %1462 = vrot.lane.b32.xlu0 %v5898_v32, %s4744_s0 }
 0x294   :  { %1492 = vst.msk [vmem:[#allocation5 + $0x78] sm:$0xff] %vm1486_vm6, %v5918_v60  ;;  %1713 = vrot.lane.b32.xlu1 %v5946_v11, %s4744_s0  ;;  %2076 = vmatprep.mubr.bf16.mxu1 %v1841_v36 }
 0x295   :  { %v1564_v42 = vpop.permute.xlu1 %1563  ;;  %2077 = vmatmul.mubr.bf16.gmra.mrb[4].mxu1 %v1840_v39 }
 0x296   :  { %1604 = vst.msk [vmem:[#allocation5 + $0xb0] sm:$0xff] %vm1306_vm2, %v1564_v42 }
 0x297   :  { %1577 = vrot.lane.b32.xlu0 %v5910_v40, %s4742_s25  ;;  %1670 = vst.msk [vmem:[#allocation5 + $0xb0] sm:$0xff] %vm1419_vm5, %v5752_v61 }
 0x298   :  { %1464 = vrot.lane.b32.xlu1 %v5913_v58, %s4744_s0  ;;  %1742 = vst.msk [vmem:[#allocation5 + $0xb0] sm:$0xff] %vm1486_vm6, %v5755_v62  ;;  %v1802_v62 = vld [vmem:[#allocation5 + $0x68] sm:$0xff] }
 0x299   :  { %v1560_v15 = vpop.permute.xlu1 %1559 }
 0x29a   :  { %1602 = vst.msk [vmem:[#allocation5 + $0x80] sm:$0xff] %vm1306_vm2, %v1560_v15 }
 0x29b   :  { %1286 = vrot.lane.b32.xlu0 %v5943_v0, %s4742_s25  ;;  %1668 = vst.msk [vmem:[#allocation5 + $0x80] sm:$0xff] %vm1419_vm5, %v5877_v16  ;;  %v1804_v61 = vld [vmem:[#allocation5 + $0x78] sm:$0xff] }
 0x29c   :  { %1579 = vrot.lane.b32.xlu1 %v5926_v5, %s4742_s25  ;;  %1740 = vst.msk [vmem:[#allocation5 + $0x80] sm:$0xff] %vm1486_vm6, %v5893_v37  ;;  %v1684_v37 = vrot.slane %v5718_v41, 1  ;;  %v1843_v51 = vpack.c.bf16 %v1804_v61, %v1801_v47 }
 0x29e   :  { %v1686_v53 = vsel %vm221_vm3, %v1684_v37, %v1685_v48 }
 0x29f   :  { %1643 = vrot.lane.b32.xlu0 %v5901_v46, %s4743_s30  ;;  %v1811_v32 = vld [vmem:[#allocation5 + $0xb0] sm:$0xff] }
 0x2a0   :  { %1288 = vrot.lane.b32.xlu1 %v5946_v11, %s4742_s25  ;;  %v1847_v35 = vpack.c.bf16 %v1811_v32, %v1808_v52 }
 0x2a3   :  { %1399 = vrot.lane.b32.xlu0 %v5937_v23, %s4743_s30  ;;  %v1805_v16 = vld [vmem:[#allocation5 + $0x80] sm:$0xff] }
 0x2a4   :  { %1645 = vrot.lane.b32.xlu1 %v5718_v41, %s4743_s30  ;;  %v1844_v43 = vpack.c.bf16 %v1805_v16, %v1802_v62  ;;  %v1807_v41 = vld [vmem:[#allocation5 + $0x90] sm:$0xff] }
 0x2a5   :  { %v1846_v58 = vpack.c.bf16 %v1810_v55, %v1807_v41 }
 0x2a6   :  { %2084 = vmatprep.mubr.bf16.mxu1 %v1844_v43 }
 0x2a7   :  { %1715 = vrot.lane.b32.xlu0 %v5954_v13, %s4744_s0  ;;  %2085 = vmatmul.mubr.bf16.gmra.mrb[8].mxu1 %v1843_v51 }
 0x2a8   :  { %1401 = vrot.lane.b32.xlu1 %v5910_v40, %s4743_s30  ;;  %2092 = vmatprep.mubr.bf16.mxu1 %v1847_v35 }
 0x2ab   :  { %1466 = vrot.lane.b32.xlu0 %v5891_v50, %s4744_s0 }
 0x2ac   :  { %1717 = vrot.lane.b32.xlu1 %v1686_v53, %s4744_s0  ;;  %v6031_v44 = vpop.permute.xlu1 %1633 }
 0x2ae   :  { %v1455_v56 = vpop.permute.xlu0 %1454 }
 0x2af   :  { %1495 = vst.msk [vmem:[#allocation5 + $0xc0] sm:$0xff] %vm1486_vm6, %v1455_v56  ;;  %2093 = vmatmul.mubr.bf16.gmra.mrb[12].mxu1 %v1846_v58 }
 0x2b0   :  { %1468 = vrot.lane.b32.xlu1 %v5901_v46, %s4744_s0  ;;  %v6036_v40 = vpop.permute.xlu1 %1705 }
 0x2b2   :  { %v1636_v59 = vpop.permute.xlu0 %1635 }
 0x2b4   :  { %v6038_v60 = vpop.permute.xlu1 %1456 }
 0x2b6   :  { %v1632_v50 = vpop.permute.xlu0 %1631  ;;  %v1813_v63 = vld [vmem:[#allocation5 + $0xc0] sm:$0xff] }
 0x2b8   :  { %v1281_v1 = vpop.permute.xlu1 %1280 }
 0x2b9   :  { %1318 = vst.msk [vmem:[#allocation5 + $0x108] sm:$0xff] %vm1306_vm2, %v1281_v1  ;;  %v6183_v1 = vld [vmem:[#allocation6 + $0x90] sm:$0xff] }
 0x2ba   :  { %v1570_v49 = vpop.permute.xlu0 %1569  ;;  %2771 = vst.msk [vmem:[#allocation7 + $0x130] sm:$0xff] %vm2246_vm7, %v6183_v1 }
 0x2bb   :  { %1607 = vst.msk [vmem:[#allocation5 + $0xf8] sm:$0xff] %vm1306_vm2, %v1570_v49  ;;  %v2326_v49 = vld [vmem:[#allocation6 + $0x98] sm:$0x3] }
 0x2bc   :  { %1673 = vst.msk [vmem:[#allocation5 + $0xf8] sm:$0xff] %vm1419_vm5, %v1636_v59  ;;  %v1394_v46 = vpop.permute.xlu1 %1393 }
 0x2bd   :  { %1431 = vst.msk [vmem:[#allocation5 + $0x108] sm:$0xff] %vm1419_vm5, %v1394_v46 }
 0x2be   :  { %v1566_v57 = vpop.permute.xlu0 %1565 }
 0x2bf   :  { %1605 = vst.msk [vmem:[#allocation5 + $0xc8] sm:$0xff] %vm1306_vm2, %v1566_v57  ;;  %v2818_v57 = vrot.slane %v6183_v1, 2 }
 0x2c0   :  { %1671 = vst.msk [vmem:[#allocation5 + $0xc8] sm:$0xff] %vm1419_vm5, %v1632_v50  ;;  %v1277_v4 = vpop.permute.xlu1 %1276 }
 0x2c1   :  { %1316 = vst.msk [vmem:[#allocation5 + $0xd8] sm:$0xff] %vm1306_vm2, %v1277_v4  ;;  %v2819_v4 = vrot.slane %v2326_v49, 2 }
 0x2c2   :  { %v1704_v5 = vpop.permute.xlu0 %1703 }
 0x2c3   :  { %1743 = vst.msk [vmem:[#allocation5 + $0xc8] sm:$0xff] %vm1486_vm6, %v1704_v5  ;;  %v4669_v5 = vld [vmem:[%s7004_s5 + $0x40] sm:$0xff]  }
 0x2c4   :  { %v1390_v6 = vpop.permute.xlu1 %1389  ;;  %4198 = vmatprep.subr.bf16.mxu0 %v4669_v5 }
 0x2c5   :  { %1429 = vst.msk [vmem:[#allocation5 + $0xd8] sm:$0xff] %vm1419_vm5, %v1390_v6  ;;  %v4670_v6 = vld [vmem:[%s7004_s5] sm:$0xff]  }
 0x2c6   :  { %v1279_v7 = vpop.permute.xlu0 %1278  ;;  %1496 = vst.msk [vmem:[#allocation5 + $0xd8] sm:$0xff] %vm1486_vm6, %v6038_v60  ;;  %4199 = vmatpush3.bf16.msra.mxu0 %v4670_v6 }
 0x2c7   :  { %1317 = vst.msk [vmem:[#allocation5 + $0xf0] sm:$0xff] %vm1306_vm2, %v1279_v7  ;;  %v4671_v7 = vld [vmem:[%s7004_s5 + $0x48] sm:$0xff]  }
 0x2c8   :  { %v1572_v23 = vpop.permute.xlu1 %1571  ;;  %4200 = vmatprep.subr.bf16.mxu0 %v4671_v7 }
 0x2c9   :  { %1608 = vst.msk [vmem:[#allocation5 + $0x110] sm:$0xff] %vm1306_vm2, %v1572_v23  ;;  %v2820_v23 = vsel %vm335_vm4, %v2818_v57, %v2819_v4 }
 0x2ca   :  { %v1392_v24 = vpop.permute.xlu0 %1391  ;;  %v1814_v13 = vld [vmem:[#allocation5 + $0xc8] sm:$0xff]  ;;  %2835 = vst.msk [vmem:[#allocation7 + $0x138] sm:$0xff] %vm2246_vm7, %v2820_v23 }
 0x2cb   :  { %1430 = vst.msk [vmem:[#allocation5 + $0xf0] sm:$0xff] %vm1419_vm5, %v1392_v24 }
 0x2cc   :  { %v1568_v9 = vpop.permute.xlu1 %1567 }
 0x2cd   :  { %1606 = vst.msk [vmem:[#allocation5 + $0xe0] sm:$0xff] %vm1306_vm2, %v1568_v9  ;;  %v1816_v12 = vld [vmem:[#allocation5 + $0xd8] sm:$0xff] }
 0x2ce   :  { %v1708_v10 = vpop.permute.xlu0 %1707  ;;  %1672 = vst.msk [vmem:[#allocation5 + $0xe0] sm:$0xff] %vm1419_vm5, %v6031_v44  ;;  %v1849_v19 = vpack.c.bf16 %v1816_v12, %v1813_v63 }
 0x2cf   :  { %1745 = vst.msk [vmem:[#allocation5 + $0xf8] sm:$0xff] %vm1486_vm6, %v1708_v10  ;;  %1744 = vst.msk [vmem:[#allocation5 + $0xe0] sm:$0xff] %vm1486_vm6, %v6036_v40  ;;  %v4672_v10 = vld [vmem:[%s7004_s5 + $0x8] sm:$0xff]  }
 0x2d0   :  { %v1461_v0 = vpop.permute.xlu1 %1460  ;;  %4201 = vmatpush3.bf16.msra.mxu0 %v4672_v10 }
 0x2d1   :  { %1498 = vst.msk [vmem:[#allocation5 + $0x108] sm:$0xff] %vm1486_vm6, %v1461_v0 }
 0x2d2   :  { %v1459_v11 = vpop.permute.xlu0 %1458 }
 0x2d3   :  { %1497 = vst.msk [vmem:[#allocation5 + $0xf0] sm:$0xff] %vm1486_vm6, %v1459_v11 }
 0x2d6   :  { %v1817_v14 = vld [vmem:[#allocation5 + $0xe0] sm:$0xff]  ;;  %v1820_v38 = vld [vmem:[#allocation5 + $0xf8] sm:$0xff] }
 0x2d7   :  { %v1850_v18 = vpack.c.bf16 %v1817_v14, %v1814_v13 }
 0x2d8   :  { %v1822_v34 = vld [vmem:[#allocation5 + $0x108] sm:$0xff] }
 0x2d9   :  { %2100 = vmatprep.mubr.bf16.mxu1 %v1850_v18 }
 0x2da   :  { %2101 = vmatmul.mubr.bf16.gmra.mrb[16].mxu1 %v1849_v19  ;;  %v1819_v33 = vld [vmem:[#allocation5 + $0xf0] sm:$0xff] }
 0x2db   :  { %v6146_v20 = vpop.f32.mrb[16].mxu0  ;;  %v1852_v15 = vpack.c.bf16 %v1822_v34, %v1819_v33  ;;  %v4673_v19 = vld [vmem:[%s7004_s5 + $0x50] sm:$0xff]   ;;  %v4675_v34 = vld [vmem:[%s7004_s5 + $0x58] sm:$0xff]  }
 0x2dc   :  { %v6148_v54 = vpop.f32.mrb[17].mxu0  ;;  %4202 = vmatprep.subr.bf16.mxu0 %v4673_v19 }
 0x2dd   :  { %v6150_v21 = vpop.f32.mrb[18].mxu0 }
 0x2de   :  { %v6152_v45 = vpop.f32.mrb[19].mxu0 }
 0x2e3   :  { %v6154_v22 = vpop.f32.mrb[20].mxu0 }
 0x2e4   :  { %v6156_v25 = vpop.f32.mrb[21].mxu0 }
 0x2e5   :  { %v6158_v26 = vpop.f32.mrb[22].mxu0 }
 0x2e6   :  { %v6160_v27 = vpop.f32.mrb[23].mxu0 }
 0x2ee   :  { %v1638_v28 = vpop.permute.xlu1 %1637 }
 0x2ef   :  { %1674 = vst.msk [vmem:[#allocation5 + $0x110] sm:$0xff] %vm1419_vm5, %v1638_v28 }
 0x2f1   :  { %v1574_v17 = vpop.permute.xlu0 %1573 }
 0x2f2   :  { %1609 = vst.msk [vmem:[#allocation5 + $0x128] sm:$0xff] %vm1306_vm2, %v1574_v17  ;;  %v1710_v29 = vpop.permute.xlu1 %1709  ;;  %v4674_v17 = vld [vmem:[%s7004_s5 + $0x10] sm:$0xff]  }
 0x2f3   :  { %1746 = vst.msk [vmem:[#allocation5 + $0x110] sm:$0xff] %vm1486_vm6, %v1710_v29  ;;  %v6216_v29 = vld [vmem:[%s7003_s4] ss:$0 sm:$0xff]  ;;  %4203 = vmatpush3.bf16.msra.mxu0 %v4674_v17 }
 0x2f4   :  { %4204 = vmatprep.subr.bf16.mxu0 %v4675_v34 }
 0x2f5   :  { %v1283_v3 = vpop.permute.xlu0 %1282 }
 0x2f6   :  { %1319 = vst.msk [vmem:[#allocation5 + $0x120] sm:$0xff] %vm1306_vm2, %v1283_v3  ;;  %v1576_v30 = vpop.permute.xlu1 %1575 }
 0x2f7   :  { %1610 = vst.msk [vmem:[#allocation5 + $0x140] sm:$0xff] %vm1306_vm2, %v1576_v30 }
 0x2f9   :  { %v1640_v31 = vpop.permute.xlu0 %1639 }
 0x2fa   :  { %1675 = vst.msk [vmem:[#allocation5 + $0x128] sm:$0xff] %vm1419_vm5, %v1640_v31  ;;  %v1285_v36 = vpop.permute.xlu1 %1284  ;;  %v1823_v39 = vld [vmem:[#allocation5 + $0x110] sm:$0xff] }
 0x2fb   :  { %1320 = vst.msk [vmem:[#allocation5 + $0x138] sm:$0xff] %vm1306_vm2, %v1285_v36  ;;  %v1853_v42 = vpack.c.bf16 %v1823_v39, %v1820_v38  ;;  %v2308_v39 = vld [vmem:[#allocation6 + $0x8] sm:$0x3] }
 0x2fd   :  { %v1396_v61 = vpop.permute.xlu0 %1395  ;;  %2108 = vmatprep.mubr.bf16.mxu1 %v1853_v42  ;;  %v4676_v42 = vld [vmem:[%s7004_s5 + $0x18] sm:$0xff]  }
 0x2fe   :  { %1432 = vst.msk [vmem:[#allocation5 + $0x120] sm:$0xff] %vm1419_vm5, %v1396_v61  ;;  %v1642_v62 = vpop.permute.xlu1 %1641  ;;  %2109 = vmatmul.mubr.bf16.gmra.mrb[20].mxu1 %v1852_v15  ;;  %v2508_v15 = vrot.slane %v6129_v8, 2  ;;  %v2509_v61 = vrot.slane %v2308_v39, 2  ;;  %4205 = vmatpush3.bf16.msra.mxu0 %v4676_v42 }
 0x2ff   :  { %1676 = vst.msk [vmem:[#allocation5 + $0x140] sm:$0xff] %vm1419_vm5, %v1642_v62 }
 0x301   :  { %v1712_v16 = vpop.permute.xlu0 %1711 }
 0x302   :  { %1747 = vst.msk [vmem:[#allocation5 + $0x128] sm:$0xff] %vm1486_vm6, %v1712_v16  ;;  %v1398_v32 = vpop.permute.xlu1 %1397 }
 0x303   :  { %1433 = vst.msk [vmem:[#allocation5 + $0x138] sm:$0xff] %vm1419_vm5, %v1398_v32  ;;  %v2510_v32 = vsel %vm335_vm4, %v2508_v15, %v2509_v61 }
 0x304   :  { %2572 = vst.msk [vmem:[#allocation7 + $0x8] sm:$0xff] %vm2246_vm7, %v2510_v32 }
 0x305   :  { %v1463_v43 = vpop.permute.xlu0 %1462 }
 0x306   :  { %1499 = vst.msk [vmem:[#allocation5 + $0x120] sm:$0xff] %vm1486_vm6, %v1463_v43  ;;  %v1714_v47 = vpop.permute.xlu1 %1713  ;;  %v4677_v43 = vld [vmem:[%s7004_s5 + $0x60] sm:$0xff]  }
 0x307   :  { %1748 = vst.msk [vmem:[#allocation5 + $0x140] sm:$0xff] %vm1486_vm6, %v1714_v47  ;;  %4206 = vmatprep.subr.bf16.mxu0 %v4677_v43 }
 0x309   :  { %v1578_v37 = vpop.permute.xlu0 %1577  ;;  %v1826_v35 = vld [vmem:[#allocation5 + $0x128] sm:$0xff] }
 0x30a   :  { %1611 = vst.msk [vmem:[#allocation5 + $0x158] sm:$0xff] %vm1306_vm2, %v1578_v37  ;;  %v1465_v48 = vpop.permute.xlu1 %1464 }
 0x30b   :  { %1500 = vst.msk [vmem:[#allocation5 + $0x138] sm:$0xff] %vm1486_vm6, %v1465_v48  ;;  %v4678_v48 = vld [vmem:[%s7004_s5 + $0x20] sm:$0xff]  }
 0x30c   :  { %4207 = vmatpush3.bf16.msra.mxu0 %v4678_v48 }
 0x30d   :  { %v1287_v51 = vpop.permute.xlu0 %1286  ;;  %v1825_v56 = vld [vmem:[#allocation5 + $0x120] sm:$0xff] }
 0x30e   :  { %1321 = vst.msk [vmem:[#allocation5 + $0x150] sm:$0xff] %vm1306_vm2, %v1287_v51  ;;  %v1580_v52 = vpop.permute.xlu1 %1579  ;;  %v1829_v53 = vld [vmem:[#allocation5 + $0x140] sm:$0xff] }
 0x30f   :  { %1612 = vst.msk [vmem:[#allocation5 + $0x170] sm:$0xff] %vm1306_vm2, %v1580_v52  ;;  %v1856_v41 = vpack.c.bf16 %v1829_v53, %v1826_v35  ;;  %v4680_v52 = vld [vmem:[%s7004_s5 + $0x28] sm:$0xff]   ;;  %v4682_v35 = vld [vmem:[%s7004_s5 + $0x30] sm:$0xff]   ;;  %v2395_v53 = vrot.slane %v6129_v8, 1  ;;  %v4684_v8 = vld [vmem:[%s7004_s5 + $0x38] sm:$0xff]  }
 0x311   :  { %v1644_v44 = vpop.permute.xlu0 %1643  ;;  %2116 = vmatprep.mubr.bf16.mxu1 %v1856_v41  ;;  %v2396_v41 = vrot.slane %v2308_v39, 1 }
 0x312   :  { %1677 = vst.msk [vmem:[#allocation5 + $0x158] sm:$0xff] %vm1419_vm5, %v1644_v44  ;;  %v1289_v55 = vpop.permute.xlu1 %1288  ;;  %v1828_v58 = vld [vmem:[#allocation5 + $0x138] sm:$0xff] }
 0x313   :  { %1322 = vst.msk [vmem:[#allocation5 + $0x168] sm:$0xff] %vm1306_vm2, %v1289_v55  ;;  %v1855_v40 = vpack.c.bf16 %v1828_v58, %v1825_v56  ;;  %v4683_v44 = vld [vmem:[%s7004_s5 + $0x78] sm:$0xff]  }
 0x315   :  { %v1400_v59 = vpop.permute.xlu0 %1399  ;;  %2117 = vmatmul.mubr.bf16.gmra.mrb[24].mxu1 %v1855_v40 }
 0x316   :  { %1434 = vst.msk [vmem:[#allocation5 + $0x150] sm:$0xff] %vm1419_vm5, %v1400_v59  ;;  %v1646_v60 = vpop.permute.xlu1 %1645 }
 0x317   :  { %1678 = vst.msk [vmem:[#allocation5 + $0x170] sm:$0xff] %vm1419_vm5, %v1646_v60 }
 0x319   :  { %v1716_v50 = vpop.permute.xlu0 %1715 }
 0x31a   :  { %1749 = vst.msk [vmem:[#allocation5 + $0x158] sm:$0xff] %vm1486_vm6, %v1716_v50  ;;  %v1402_v46 = vpop.permute.xlu1 %1401  ;;  %v6260_v50 = vld [vmem:[#allocation6 + $0xa0] sm:$0xff] }
 0x31b   :  { %1435 = vst.msk [vmem:[#allocation5 + $0x168] sm:$0xff] %vm1419_vm5, %v1402_v46  ;;  %v2397_v46 = vsel %vm221_vm3, %v2395_v53, %v2396_v41 }
 0x31c   :  { %2355 = vst.msk [vmem:[#allocation7 + $0x140] sm:$0xff] %vm2246_vm7, %v6260_v50 }
 0x31d   :  { %v1467_v24 = vpop.permute.xlu0 %1466 }
 0x31e   :  { %1501 = vst.msk [vmem:[#allocation5 + $0x150] sm:$0xff] %vm1486_vm6, %v1467_v24  ;;  %v1718_v9 = vpop.permute.xlu1 %1717 }
 0x31f   :  { %1750 = vst.msk [vmem:[#allocation5 + $0x170] sm:$0xff] %vm1486_vm6, %v1718_v9 }
 0x321   :  { %v1832_v11 = vld [vmem:[#allocation5 + $0x158] sm:$0xff] }
 0x322   :  { %v1469_v0 = vpop.permute.xlu1 %1468 }
 0x323   :  { %1502 = vst.msk [vmem:[#allocation5 + $0x168] sm:$0xff] %vm1486_vm6, %v1469_v0 }
 0x325   :  { %v1831_v14 = vld [vmem:[#allocation5 + $0x150] sm:$0xff] }
 0x326   :  { %v1835_v12 = vld [vmem:[#allocation5 + $0x170] sm:$0xff] }
 0x327   :  { %v1859_v13 = vpack.c.bf16 %v1835_v12, %v1832_v11 }
 0x329   :  { %2124 = vmatprep.mubr.bf16.mxu1 %v1859_v13 }
 0x32a   :  { %v1834_v18 = vld [vmem:[#allocation5 + $0x168] sm:$0xff] }
 0x32b   :  { %v1858_v63 = vpack.c.bf16 %v1834_v18, %v1831_v14 }
 0x32d   :  { %2125 = vmatmul.mubr.bf16.gmra.mrb[28].mxu1 %v1858_v63 }
 0x332   :  { %v4140_v28 = vpop.f32.mrb[0].mxu1 }
 0x333   :  { %v4141_v3 = vpop.f32.mrb[1].mxu1 }
 0x334   :  { %v4142_v30 = vadd.f32 %v4141_v3, %v4140_v28  ;;  %v4143_v31 = vpop.f32.mrb[2].mxu1 }
 0x335   :  { %v4144_v33 = vpop.f32.mrb[3].mxu1 }
 0x336   :  { %v2071_v36 = vadd.f32 %v4142_v30, %v6216_v29  ;;  %v4145_v38 = vadd.f32 %v4144_v33, %v4143_v31 }
 0x338   :  { %v2168_v62 = vadd.f32 %v6148_v54, %v2071_v36  ;;  %v2074_v16 = vadd.f32 %v4145_v38, %v6216_v29  ;;  %v4679_v54 = vld [vmem:[%s7004_s5 + $0x68] sm:$0xff]  }
 0x339   :  { %4208 = vmatprep.subr.bf16.mxu0 %v4679_v54 }
 0x33a   :  { %v2230_v47 = vmax.f32 %v2168_v62, 0.0  ;;  %v2171_v37 = vadd.f32 %v6152_v45, %v2074_v16  ;;  %v4681_v45 = vld [vmem:[%s7004_s5 + $0x70] sm:$0xff]   ;;  %4209 = vmatpush3.bf16.msra.mxu0 %v4680_v52 }
 0x33b   :  { %4210 = vmatprep.subr.bf16.mxu0 %v4681_v45 }
 0x33c   :  { %2291 = vst.msk [vmem:[#allocation6 + $0x11] sm:$0xff] %vm2246_vm7, %v2230_v47  ;;  %v2231_v51 = vmax.f32 %v2171_v37, 0.0 }
 0x33e   :  { %2292 = vst.msk [vmem:[#allocation6 + $0x21] sm:$0xff] %vm2246_vm7, %v2231_v51  ;;  %4211 = vmatpush3.bf16.msra.mxu0 %v4682_v35 }
 0x33f   :  { %4212 = vmatprep.subr.bf16.mxu0 %v4683_v44 }
 0x342   :  { %4213 = vmatpush3.bf16.msra.mxu0 %v4684_v8 }
 0x343   :  { %v2309_v55 = vld [vmem:[#allocation6 + $0x10] sm:$0xff]  ;;  %v2310_v56 = vld [vmem:[#allocation6 + $0x18] sm:$0x3] }
 0x344   :  { %2590 = vrot.lane.b32.xlu0 %v2309_v55, %s4743_s30  ;;  %v2398_v58 = vrot.slane %v2309_v55, 1  ;;  %v2511_v40 = vrot.slane %v2309_v55, 2  ;;  %2348 = vst.msk [vmem:[#allocation7 + $0x28] sm:$0xff] %vm2246_vm7, %v2309_v55  ;;  %v2399_v59 = vrot.slane %v2310_v56, 1  ;;  %v2512_v60 = vrot.slane %v2310_v56, 2 }
 0x345   :  { %v2311_v49 = vld [vmem:[#allocation6 + $0x20] sm:$0xff]  ;;  %v2312_v57 = vld [vmem:[#allocation6 + $0x28] sm:$0x3] }
 0x346   :  { %2592 = vrot.lane.b32.xlu1 %v2311_v49, %s4743_s30  ;;  %2349 = vst.msk [vmem:[#allocation7 + $0x50] sm:$0xff] %vm2246_vm7, %v2311_v49  ;;  %2764 = vst.msk [vmem:[#allocation7 + $0x18] sm:$0xff] %vm2246_vm7, %v2311_v49  ;;  %v2400_v4 = vsel %vm221_vm3, %v2398_v58, %v2399_v59  ;;  %v2401_v5 = vrot.slane %v2311_v49, 1  ;;  %v2402_v6 = vrot.slane %v2312_v57, 1  ;;  %v2515_v7 = vrot.slane %v2312_v57, 2 }
 0x347   :  { %2678 = vst.msk [vmem:[#allocation7 + $0x10] sm:$0xff] %vm2246_vm7, %v2400_v4  ;;  %v6271_v23 = vsel %vm335_vm4, %v2511_v40, %v2512_v60  ;;  %v2514_v24 = vrot.slane %v2311_v49, 2 }
 0x348   :  { %2443 = vrot.lane.b32.xlu0 %v2397_v46, %s4743_s30  ;;  %v2403_v9 = vsel %vm221_vm3, %v2401_v5, %v2402_v6  ;;  %2573 = vst.msk [vmem:[#allocation7 + $0x30] sm:$0xff] %vm2246_vm7, %v6271_v23 }
 0x349   :  { %2679 = vst.msk [vmem:[#allocation7 + $0x38] sm:$0xff] %vm2246_vm7, %v2403_v9  ;;  %v6279_v10 = vsel %vm335_vm4, %v2514_v24, %v2515_v7 }
 0x34a   :  { %2445 = vrot.lane.b32.xlu1 %v2400_v4, %s4743_s30  ;;  %2574 = vst.msk [vmem:[#allocation7 + $0x58] sm:$0xff] %vm2246_vm7, %v6279_v10  ;;  %2828 = vst.msk [vmem:[#allocation7 + $0x20] sm:$0xff] %vm2246_vm7, %v6279_v10 }
 0x35e   :  { %v6286_v0 = vpop.f32.mrb[24].mxu0 }
 0x35f   :  { %v6288_v11 = vpop.f32.mrb[25].mxu0 }
 0x360   :  { %v6290_v12 = vpop.f32.mrb[26].mxu0 }
 0x361   :  { %v6292_v13 = vpop.f32.mrb[27].mxu0 }
 0x366   :  { %v6294_v14 = vpop.f32.mrb[28].mxu0 }
 0x367   :  { %v6296_v18 = vpop.f32.mrb[29].mxu0 }
 0x368   :  { %v6298_v63 = vpop.f32.mrb[30].mxu0  ;;  %v4146_v28 = vpop.f32.mrb[4].mxu1 }
 0x369   :  { %v6300_v19 = vpop.f32.mrb[31].mxu0  ;;  %v4147_v17 = vpop.f32.mrb[5].mxu1 }
 0x36a   :  { %v4148_v3 = vadd.f32 %v4147_v17, %v4146_v28  ;;  %v4149_v30 = vpop.f32.mrb[6].mxu1 }
 0x36b   :  { %v4150_v31 = vpop.f32.mrb[7].mxu1 }
 0x36c   :  { %v2079_v33 = vadd.f32 %v4148_v3, %v6216_v29  ;;  %v4151_v34 = vadd.f32 %v4150_v31, %v4149_v30 }
 0x36e   :  { %v2176_v36 = vadd.f32 %v6146_v20, %v2079_v33  ;;  %v2082_v38 = vadd.f32 %v4151_v34, %v6216_v29 }
 0x370   :  { %v2232_v39 = vmax.f32 %v2176_v36, 0.0  ;;  %v2179_v42 = vadd.f32 %v6150_v21, %v2082_v38 }
 0x372   :  { %2293 = vst.msk [vmem:[#allocation6 + $0x31] sm:$0xff] %vm2246_vm7, %v2232_v39  ;;  %v2233_v15 = vmax.f32 %v2179_v42, 0.0 }
 0x374   :  { %2294 = vst.msk [vmem:[#allocation6 + $0x41] sm:$0xff] %vm2246_vm7, %v2233_v15 }
 0x379   :  { %v2313_v61 = vld [vmem:[#allocation6 + $0x30] sm:$0xff]  ;;  %v2314_v62 = vld [vmem:[#allocation6 + $0x38] sm:$0x3] }
 0x37a   :  { %v4152_v16 = vpop.f32.mrb[8].mxu1  ;;  %2594 = vrot.lane.b32.xlu0 %v2313_v61, %s4743_s30  ;;  %2350 = vst.msk [vmem:[#allocation7 + $0x78] sm:$0xff] %vm2246_vm7, %v2313_v61  ;;  %2765 = vst.msk [vmem:[#allocation7 + $0x40] sm:$0xff] %vm2246_vm7, %v2313_v61  ;;  %v2404_v20 = vrot.slane %v2313_v61, 1  ;;  %v2405_v32 = vrot.slane %v2314_v62, 1  ;;  %v2518_v43 = vrot.slane %v2314_v62, 2 }
 0x37b   :  { %v2517_v47 = vrot.slane %v2313_v61, 2  ;;  %v4153_v37 = vpop.f32.mrb[9].mxu1  ;;  %v2315_v21 = vld [vmem:[#allocation6 + $0x40] sm:$0xff]  ;;  %v2316_v48 = vld [vmem:[#allocation6 + $0x48] sm:$0x3] }
 0x37c   :  { %v4154_v54 = vadd.f32 %v4153_v37, %v4152_v16  ;;  %v4155_v51 = vpop.f32.mrb[10].mxu1  ;;  %2596 = vrot.lane.b32.xlu1 %v2315_v21, %s4743_s30  ;;  %2351 = vst.msk [vmem:[#allocation7 + $0xa0] sm:$0xff] %vm2246_vm7, %v2315_v21  ;;  %2766 = vst.msk [vmem:[#allocation7 + $0x68] sm:$0xff] %vm2246_vm7, %v2315_v21  ;;  %v2406_v52 = vsel %vm221_vm3, %v2404_v20, %v2405_v32  ;;  %v2407_v45 = vrot.slane %v2315_v21, 1  ;;  %v2408_v35 = vrot.slane %v2316_v48, 1 }
 0x37d   :  { %v4156_v53 = vpop.f32.mrb[11].mxu1  ;;  %2680 = vst.msk [vmem:[#allocation7 + $0x60] sm:$0xff] %vm2246_vm7, %v2406_v52  ;;  %v2521_v41 = vrot.slane %v2316_v48, 2  ;;  %v6317_v44 = vsel %vm335_vm4, %v2517_v47, %v2518_v43  ;;  %v2520_v55 = vrot.slane %v2315_v21, 2 }
 0x37e   :  { %v2087_v56 = vadd.f32 %v4154_v54, %v6216_v29  ;;  %v4157_v58 = vadd.f32 %v4156_v53, %v4155_v51  ;;  %2447 = vrot.lane.b32.xlu0 %v2403_v9, %s4743_s30  ;;  %v2409_v40 = vsel %vm221_vm3, %v2407_v45, %v2408_v35  ;;  %2575 = vst.msk [vmem:[#allocation7 + $0x80] sm:$0xff] %vm2246_vm7, %v6317_v44  ;;  %2829 = vst.msk [vmem:[#allocation7 + $0x48] sm:$0xff] %vm2246_vm7, %v6317_v44 }
 0x37f   :  { %2681 = vst.msk [vmem:[#allocation7 + $0x88] sm:$0xff] %vm2246_vm7, %v2409_v40  ;;  %v6328_v59 = vsel %vm335_vm4, %v2520_v55, %v2521_v41 }
 0x380   :  { %v2184_v60 = vadd.f32 %v6156_v25, %v2087_v56  ;;  %v2090_v8 = vadd.f32 %v4157_v58, %v6216_v29  ;;  %2449 = vrot.lane.b32.xlu1 %v2406_v52, %s4743_s30  ;;  %2576 = vst.msk [vmem:[#allocation7 + $0xa8] sm:$0xff] %vm2246_vm7, %v6328_v59  ;;  %2830 = vst.msk [vmem:[#allocation7 + $0x70] sm:$0xff] %vm2246_vm7, %v6328_v59  ;;  %v2345_v56 = vld [vmem:[#allocation6 + $0x130] sm:$0xff]  ;;  %v2346_v58 = vld [vmem:[#allocation6 + $0x138] sm:$0x3] }
 0x381   :  { %2779 = vst.msk [vmem:[#allocation7 + $0x270] sm:$0xff] %vm2246_vm7, %v2345_v56 }
 0x382   :  { %v2234_v49 = vmax.f32 %v2184_v60, 0.0  ;;  %v2187_v46 = vadd.f32 %v6160_v27, %v2090_v8  ;;  %v4158_v57 = vpop.f32.mrb[12].mxu1  ;;  %v2821_v8 = vrot.slane %v2345_v56, 2 }
 0x383   :  { %v4159_v4 = vpop.f32.mrb[13].mxu1 }
 0x384   :  { %2295 = vst.msk [vmem:[#allocation6 + $0x51] sm:$0xff] %vm2246_vm7, %v2234_v49  ;;  %v2235_v5 = vmax.f32 %v2187_v46, 0.0  ;;  %v4160_v6 = vadd.f32 %v4159_v4, %v4158_v57  ;;  %v4161_v25 = vpop.f32.mrb[14].mxu1  ;;  %v2822_v49 = vrot.slane %v2346_v58, 2 }
 0x385   :  { %v4162_v7 = vpop.f32.mrb[15].mxu1 }
 0x386   :  { %2296 = vst.msk [vmem:[#allocation6 + $0x61] sm:$0xff] %vm2246_vm7, %v2235_v5  ;;  %v2095_v24 = vadd.f32 %v4160_v6, %v6216_v29  ;;  %v4163_v9 = vadd.f32 %v4162_v7, %v4161_v25  ;;  %v2823_v4 = vsel %vm335_vm4, %v2821_v8, %v2822_v49  ;;  %v2328_v25 = vld [vmem:[#allocation6 + $0xa8] sm:$0x3] }
 0x387   :  { %2843 = vst.msk [vmem:[#allocation7 + $0x278] sm:$0xff] %vm2246_vm7, %v2823_v4 }
 0x388   :  { %v2192_v28 = vadd.f32 %v6154_v22, %v2095_v24  ;;  %v2098_v17 = vadd.f32 %v4163_v9, %v6216_v29  ;;  %v2532_v9 = vrot.slane %v6260_v50, 2 }
 0x38a   :  { %v2236_v3 = vmax.f32 %v2192_v28, 0.0  ;;  %v2195_v27 = vadd.f32 %v6158_v26, %v2098_v17  ;;  %v2533_v28 = vrot.slane %v2328_v25, 2 }
 0x38b   :  { %v2317_v30 = vld [vmem:[#allocation6 + $0x50] sm:$0xff]  ;;  %v2318_v31 = vld [vmem:[#allocation6 + $0x58] sm:$0x3] }
 0x38c   :  { %2297 = vst.msk [vmem:[#allocation6 + $0x71] sm:$0xff] %vm2246_vm7, %v2236_v3  ;;  %v2237_v33 = vmax.f32 %v2195_v27, 0.0  ;;  %2598 = vrot.lane.b32.xlu0 %v2317_v30, %s4743_s30  ;;  %2352 = vst.msk [vmem:[#allocation7 + $0xc8] sm:$0xff] %vm2246_vm7, %v2317_v30  ;;  %v2410_v34 = vrot.slane %v2317_v30, 1  ;;  %v2411_v36 = vrot.slane %v2318_v31, 1  ;;  %v2524_v38 = vrot.slane %v2318_v31, 2 }
 0x38d   :  { %2767 = vst.msk [vmem:[#allocation7 + $0x90] sm:$0xff] %vm2246_vm7, %v2317_v30  ;;  %v2319_v22 = vld [vmem:[#allocation6 + $0x60] sm:$0xff]  ;;  %v2320_v39 = vld [vmem:[#allocation6 + $0x68] sm:$0x3]  ;;  %v2523_v42 = vrot.slane %v2317_v30, 2  ;;  %v2534_v30 = vsel %vm335_vm4, %v2532_v9, %v2533_v28 }
 0x38e   :  { %2298 = vst.msk [vmem:[#allocation6 + $0x81] sm:$0xff] %vm2246_vm7, %v2237_v33  ;;  %2600 = vrot.lane.b32.xlu1 %v2319_v22, %s4743_s30  ;;  %2353 = vst.msk [vmem:[#allocation7 + $0xf0] sm:$0xff] %vm2246_vm7, %v2319_v22  ;;  %v2412_v26 = vsel %vm221_vm3, %v2410_v34, %v2411_v36  ;;  %v2413_v15 = vrot.slane %v2319_v22, 1  ;;  %v2414_v61 = vrot.slane %v2320_v39, 1  ;;  %v2527_v62 = vrot.slane %v2320_v39, 2 }
 0x38f   :  { %2768 = vst.msk [vmem:[#allocation7 + $0xb8] sm:$0xff] %vm2246_vm7, %v2319_v22  ;;  %2682 = vst.msk [vmem:[#allocation7 + $0xb0] sm:$0xff] %vm2246_vm7, %v2412_v26  ;;  %v6355_v16 = vsel %vm335_vm4, %v2523_v42, %v2524_v38  ;;  %v2526_v20 = vrot.slane %v2319_v22, 2 }
 0x390   :  { %2451 = vrot.lane.b32.xlu0 %v2409_v40, %s4743_s30  ;;  %v2415_v32 = vsel %vm221_vm3, %v2413_v15, %v2414_v61  ;;  %2577 = vst.msk [vmem:[#allocation7 + $0xd0] sm:$0xff] %vm2246_vm7, %v6355_v16  ;;  %2831 = vst.msk [vmem:[#allocation7 + $0x98] sm:$0xff] %vm2246_vm7, %v6355_v16 }
 0x391   :  { %2683 = vst.msk [vmem:[#allocation7 + $0xd8] sm:$0xff] %vm2246_vm7, %v2415_v32  ;;  %v6365_v43 = vsel %vm335_vm4, %v2526_v20, %v2527_v62  ;;  %2580 = vst.msk [vmem:[#allocation7 + $0x148] sm:$0xff] %vm2246_vm7, %v2534_v30  ;;  %v2420_v62 = vrot.slane %v2328_v25, 1 }
 0x392   :  { %2453 = vrot.lane.b32.xlu1 %v2412_v26, %s4743_s30  ;;  %2578 = vst.msk [vmem:[#allocation7 + $0xf8] sm:$0xff] %vm2246_vm7, %v6365_v43  ;;  %2832 = vst.msk [vmem:[#allocation7 + $0xc0] sm:$0xff] %vm2246_vm7, %v6365_v43  ;;  %v2787_v26 = vrot.slane %v2345_v56, 1 }
 0x393   :  { %v2321_v47 = vld [vmem:[#allocation6 + $0x70] sm:$0xff]  ;;  %v2322_v37 = vld [vmem:[#allocation6 + $0x78] sm:$0x3] }
 0x394   :  { %2602 = vrot.lane.b32.xlu0 %v2321_v47, %s4743_s30  ;;  %2354 = vst.msk [vmem:[#allocation7 + $0x118] sm:$0xff] %vm2246_vm7, %v2321_v47  ;;  %2769 = vst.msk [vmem:[#allocation7 + $0xe0] sm:$0xff] %vm2246_vm7, %v2321_v47  ;;  %v2416_v21 = vrot.slane %v2321_v47, 1  ;;  %v2417_v48 = vrot.slane %v2322_v37, 1  ;;  %v2530_v54 = vrot.slane %v2322_v37, 2  ;;  %v2529_v51 = vrot.slane %v2321_v47, 2 }
 0x395   :  { %v2323_v52 = vld [vmem:[#allocation6 + $0x80] sm:$0xff]  ;;  %v2324_v45 = vld [vmem:[#allocation6 + $0x88] sm:$0x3] }
 0x396   :  { %v2656_v35 = vrot.slane %v2323_v52, 1  ;;  %v2694_v53 = vrot.slane %v2323_v52, 2  ;;  %2604 = vrot.lane.b32.xlu1 %v2323_v52, %s4743_s30  ;;  %2770 = vst.msk [vmem:[#allocation7 + $0x108] sm:$0xff] %vm2246_vm7, %v2323_v52  ;;  %v2418_v41 = vsel %vm221_vm3, %v2416_v21, %v2417_v48  ;;  %v6379_v55 = vsel %vm335_vm4, %v2529_v51, %v2530_v54 }
 0x397   :  { %2684 = vst.msk [vmem:[#allocation7 + $0x100] sm:$0xff] %vm2246_vm7, %v2418_v41  ;;  %2579 = vst.msk [vmem:[#allocation7 + $0x120] sm:$0xff] %vm2246_vm7, %v6379_v55  ;;  %v2657_v40 = vrot.slane %v2324_v45, 1  ;;  %v2695_v60 = vrot.slane %v2324_v45, 2 }
 0x398   :  { %2833 = vst.msk [vmem:[#allocation7 + $0xe8] sm:$0xff] %vm2246_vm7, %v6379_v55  ;;  %2455 = vrot.lane.b32.xlu0 %v2415_v32, %s4743_s30 }
 0x399   :  { %v6389_v46 = vsel %vm221_vm3, %v2656_v35, %v2657_v40  ;;  %v6392_v57 = vsel %vm335_vm4, %v2694_v53, %v2695_v60 }
 0x39a   :  { %2457 = vrot.lane.b32.xlu1 %v2418_v41, %s4743_s30  ;;  %2685 = vst.msk [vmem:[#allocation7 + $0x128] sm:$0xff] %vm2246_vm7, %v6389_v46  ;;  %2834 = vst.msk [vmem:[#allocation7 + $0x110] sm:$0xff] %vm2246_vm7, %v6392_v57 }
 0x3ad   :  { %v4164_v5 = vpop.f32.mrb[16].mxu1 }
 0x3ae   :  { %v4165_v6 = vpop.f32.mrb[17].mxu1 }
 0x3af   :  { %v4166_v7 = vadd.f32 %v4165_v6, %v4164_v5  ;;  %v4167_v24 = vpop.f32.mrb[18].mxu1 }
 0x3b0   :  { %v4168_v17 = vpop.f32.mrb[19].mxu1 }
 0x3b1   :  { %v2103_v3 = vadd.f32 %v4166_v7, %v6216_v29  ;;  %v4169_v27 = vadd.f32 %v4168_v17, %v4167_v24 }
 0x3b3   :  { %v2200_v31 = vadd.f32 %v6288_v11, %v2103_v3  ;;  %v2106_v33 = vadd.f32 %v4169_v27, %v6216_v29  ;;  %v2788_v11 = vrot.slane %v2346_v58, 1 }
 0x3b5   :  { %v2238_v34 = vmax.f32 %v2200_v31, 0.0  ;;  %v2203_v36 = vadd.f32 %v6292_v13, %v2106_v33  ;;  %v6414_v61 = vsel %vm221_vm3, %v2787_v26, %v2788_v11  ;;  %v2419_v13 = vrot.slane %v6260_v50, 1  ;;  %v4685_v31 = vld [vmem:[%s7004_s5 + $0xc0] sm:$0xff]  }
 0x3b6   :  { %v2591_v38 = vpop.permute.xlu0 %2590  ;;  %4262 = vmatprep.subr.bf16.mxu1 %v4685_v31 }
 0x3b7   :  { %2638 = vst.msk [vmem:[#allocation7 + $0x8] sm:$0xff] %vm2491_vm10, %v2591_v38  ;;  %v2239_v22 = vmax.f32 %v2203_v36, 0.0  ;;  %v2421_v35 = vsel %vm221_vm3, %v2419_v13, %v2420_v62  ;;  %v4686_v36 = vld [vmem:[%s7004_s5 + $0x80] sm:$0xff]  }
 0x3b8   :  { %2299 = vst.msk [vmem:[#allocation6 + $0xb1] sm:$0xff] %vm2246_vm7, %v2238_v34  ;;  %v2593_v39 = vpop.permute.xlu1 %2592  ;;  %4263 = vmatpush3.bf16.msra.mxu1 %v4686_v36 }
 0x3b9   :  { %2639 = vst.msk [vmem:[#allocation7 + $0x30] sm:$0xff] %vm2491_vm10, %v2593_v39 }
 0x3ba   :  { %2300 = vst.msk [vmem:[#allocation6 + $0xc1] sm:$0xff] %vm2246_vm7, %v2239_v22  ;;  %v2444_v42 = vpop.permute.xlu0 %2443  ;;  %v4688_v22 = vld [vmem:[%s7004_s5 + $0xc8] sm:$0xff]  }
 0x3bb   :  { %2492 = vst.msk [vmem:[#allocation7] sm:$0xff] %vm2491_vm10, %v2444_v42  ;;  %4264 = vmatprep.subr.bf16.mxu1 %v4688_v22  ;;  %v4689_v42 = vld [vmem:[%s7004_s5 + $0x88] sm:$0xff]  }
 0x3bc   :  { %v2446_v15 = vpop.permute.xlu1 %2445  ;;  %4265 = vmatpush3.bf16.msra.mxu1 %v4689_v42 }
 0x3bd   :  { %2493 = vst.msk [vmem:[#allocation7 + $0x28] sm:$0xff] %vm2491_vm10, %v2446_v15 }
 0x3be   :  { %v2845_v21 = vld [vmem:[#allocation7 + $0x8] sm:$0xff] }
 0x3bf   :  { %v2329_v20 = vld [vmem:[#allocation6 + $0xb0] sm:$0xff]  ;;  %v2330_v32 = vld [vmem:[#allocation6 + $0xb8] sm:$0x3] }
 0x3c0   :  { %v2422_v47 = vrot.slane %v2329_v20, 1  ;;  %v2535_v37 = vrot.slane %v2329_v20, 2  ;;  %2606 = vrot.lane.b32.xlu0 %v2329_v20, %s4743_s30  ;;  %2356 = vst.msk [vmem:[#allocation7 + $0x168] sm:$0xff] %vm2246_vm7, %v2329_v20  ;;  %v2850_v48 = vld [vmem:[#allocation7 + $0x30] sm:$0xff]  ;;  %v2423_v54 = vrot.slane %v2330_v32, 1  ;;  %v2536_v51 = vrot.slane %v2330_v32, 2 }
 0x3c1   :  { %v2331_v52 = vld [vmem:[#allocation6 + $0xc0] sm:$0xff]  ;;  %v2925_v45 = vpack.c.bf16 %v2850_v48, %v2845_v21  ;;  %v2332_v53 = vld [vmem:[#allocation6 + $0xc8] sm:$0x3] }
 0x3c2   :  { %2608 = vrot.lane.b32.xlu1 %v2331_v52, %s4743_s30  ;;  %2357 = vst.msk [vmem:[#allocation7 + $0x190] sm:$0xff] %vm2246_vm7, %v2331_v52  ;;  %2772 = vst.msk [vmem:[#allocation7 + $0x158] sm:$0xff] %vm2246_vm7, %v2331_v52  ;;  %v2424_v50 = vsel %vm221_vm3, %v2422_v47, %v2423_v54  ;;  %v2844_v41 = vld [vmem:[#allocation7] sm:$0xff]  ;;  %v2425_v56 = vrot.slane %v2331_v52, 1  ;;  %v2426_v58 = vrot.slane %v2332_v53, 1  ;;  %v6426_v40 = vsel %vm335_vm4, %v2535_v37, %v2536_v51  ;;  %v4690_v51 = vld [vmem:[%s7004_s5 + $0xd0] sm:$0xff]  }
 0x3c3   :  { %3315 = vmatprep.mubr.bf16.mxu0 %v2925_v45  ;;  %2686 = vst.msk [vmem:[#allocation7 + $0x150] sm:$0xff] %vm2246_vm7, %v2424_v50  ;;  %2581 = vst.msk [vmem:[#allocation7 + $0x170] sm:$0xff] %vm2246_vm7, %v6426_v40  ;;  %v2538_v60 = vrot.slane %v2331_v52, 2  ;;  %v2539_v8 = vrot.slane %v2332_v53, 2  ;;  %v4691_v52 = vld [vmem:[%s7004_s5 + $0x90] sm:$0xff]   ;;  %4266 = vmatprep.subr.bf16.mxu1 %v4690_v51 }
 0x3c4   :  { %2459 = vrot.lane.b32.xlu0 %v2421_v35, %s4743_s30  ;;  %v2849_v49 = vld [vmem:[#allocation7 + $0x28] sm:$0xff]  ;;  %v2427_v4 = vsel %vm221_vm3, %v2425_v56, %v2426_v58  ;;  %4267 = vmatpush3.bf16.msra.mxu1 %v4691_v52 }
 0x3c5   :  { %v2924_v5 = vpack.c.bf16 %v2849_v49, %v2844_v41  ;;  %2687 = vst.msk [vmem:[#allocation7 + $0x178] sm:$0xff] %vm2246_vm7, %v2427_v4  ;;  %v6435_v6 = vsel %vm335_vm4, %v2538_v60, %v2539_v8 }
 0x3c6   :  { %2461 = vrot.lane.b32.xlu1 %v2424_v50, %s4743_s30  ;;  %2836 = vst.msk [vmem:[#allocation7 + $0x160] sm:$0xff] %vm2246_vm7, %v6435_v6  ;;  %2582 = vst.msk [vmem:[#allocation7 + $0x198] sm:$0xff] %vm2246_vm7, %v6435_v6 }
 0x3c7   :  { %3316 = vmatmul.mubr.bf16.vlgmr.msra.gmra.mrb[32].mxu0 %v2924_v5 }
 0x3d1   :  { %v4170_v25 = vpop.f32.mrb[20].mxu1 }
 0x3d2   :  { %v4171_v7 = vpop.f32.mrb[21].mxu1 }
 0x3d3   :  { %v4172_v24 = vadd.f32 %v4171_v7, %v4170_v25  ;;  %v4173_v9 = vpop.f32.mrb[22].mxu1 }
 0x3d4   :  { %v4174_v28 = vpop.f32.mrb[23].mxu1 }
 0x3d5   :  { %v2111_v17 = vadd.f32 %v4172_v24, %v6216_v29  ;;  %v4175_v3 = vadd.f32 %v4174_v28, %v4173_v9 }
 0x3d7   :  { %v2208_v27 = vadd.f32 %v6286_v0, %v2111_v17  ;;  %v2114_v30 = vadd.f32 %v4175_v3, %v6216_v29  ;;  %v4687_v0 = vld [vmem:[%s7004_s5 + $0x100] sm:$0xff]   ;;  %v4694_v3 = vld [vmem:[%s7004_s5 + $0x98] sm:$0xff]  }
 0x3d8   :  { %4421 = vmatprep.subr.bf16.mxu0 %v4687_v0 }
 0x3d9   :  { %v2240_v33 = vmax.f32 %v2208_v27, 0.0  ;;  %v2211_v34 = vadd.f32 %v6290_v12, %v2114_v30  ;;  %4422 = vmatpush3.bf16.msra.mxu0 %v4687_v0 }
 0x3db   :  { %2301 = vst.msk [vmem:[#allocation6 + $0xd1] sm:$0xff] %vm2246_vm7, %v2240_v33  ;;  %v2241_v38 = vmax.f32 %v2211_v34, 0.0 }
 0x3dd   :  { %2302 = vst.msk [vmem:[#allocation6 + $0xe1] sm:$0xff] %vm2246_vm7, %v2241_v38 }
 0x3e2   :  { %v2333_v12 = vld [vmem:[#allocation6 + $0xd0] sm:$0xff]  ;;  %v2334_v39 = vld [vmem:[#allocation6 + $0xd8] sm:$0x3] }
 0x3e3   :  { %2610 = vrot.lane.b32.xlu0 %v2333_v12, %s4743_s30  ;;  %2358 = vst.msk [vmem:[#allocation7 + $0x1b8] sm:$0xff] %vm2246_vm7, %v2333_v12  ;;  %2773 = vst.msk [vmem:[#allocation7 + $0x180] sm:$0xff] %vm2246_vm7, %v2333_v12  ;;  %v2428_v26 = vrot.slane %v2333_v12, 1  ;;  %v2429_v11 = vrot.slane %v2334_v39, 1  ;;  %v2541_v15 = vrot.slane %v2333_v12, 2  ;;  %v2542_v13 = vrot.slane %v2334_v39, 2 }
 0x3e4   :  { %v2335_v62 = vld [vmem:[#allocation6 + $0xe0] sm:$0xff]  ;;  %v2336_v20 = vld [vmem:[#allocation6 + $0xe8] sm:$0x3] }
 0x3e5   :  { %2612 = vrot.lane.b32.xlu1 %v2335_v62, %s4743_s30  ;;  %2359 = vst.msk [vmem:[#allocation7 + $0x1e0] sm:$0xff] %vm2246_vm7, %v2335_v62  ;;  %2774 = vst.msk [vmem:[#allocation7 + $0x1a8] sm:$0xff] %vm2246_vm7, %v2335_v62  ;;  %v2430_v32 = vsel %vm221_vm3, %v2428_v26, %v2429_v11  ;;  %v2431_v47 = vrot.slane %v2335_v62, 1  ;;  %v2432_v37 = vrot.slane %v2336_v20, 1  ;;  %v6471_v21 = vsel %vm335_vm4, %v2541_v15, %v2542_v13  ;;  %v4695_v12 = vld [vmem:[%s7004_s5 + $0xe0] sm:$0xff]  }
 0x3e6   :  { %2688 = vst.msk [vmem:[#allocation7 + $0x1a0] sm:$0xff] %vm2246_vm7, %v2430_v32  ;;  %2837 = vst.msk [vmem:[#allocation7 + $0x188] sm:$0xff] %vm2246_vm7, %v6471_v21  ;;  %v2544_v48 = vrot.slane %v2335_v62, 2  ;;  %v2545_v54 = vrot.slane %v2336_v20, 2  ;;  %v4696_v39 = vld [vmem:[%s7004_s5 + $0xa0] sm:$0xff]  }
 0x3e7   :  { %2583 = vst.msk [vmem:[#allocation7 + $0x1c0] sm:$0xff] %vm2246_vm7, %v6471_v21  ;;  %2463 = vrot.lane.b32.xlu0 %v2427_v4, %s4743_s30  ;;  %v6486_v45 = vsel %vm221_vm3, %v2431_v47, %v2432_v37  ;;  %v4692_v4 = vld [vmem:[%s7004_s5 + $0x108] sm:$0xff]  }
 0x3e8   :  { %v4176_v35 = vpop.f32.mrb[24].mxu1  ;;  %2689 = vst.msk [vmem:[#allocation7 + $0x1c8] sm:$0xff] %vm2246_vm7, %v6486_v45  ;;  %v6491_v53 = vsel %vm335_vm4, %v2544_v48, %v2545_v54  ;;  %4423 = vmatprep.subr.bf16.mxu0 %v4692_v4 }
 0x3e9   :  { %v4177_v50 = vpop.f32.mrb[25].mxu1  ;;  %2465 = vrot.lane.b32.xlu1 %v2430_v32, %s4743_s30  ;;  %2838 = vst.msk [vmem:[#allocation7 + $0x1b0] sm:$0xff] %vm2246_vm7, %v6491_v53  ;;  %2584 = vst.msk [vmem:[#allocation7 + $0x1e8] sm:$0xff] %vm2246_vm7, %v6491_v53  ;;  %4424 = vmatpush3.bf16.msra.mxu0 %v4692_v4 }
 0x3ea   :  { %v4178_v41 = vadd.f32 %v4177_v50, %v4176_v35  ;;  %v4179_v56 = vpop.f32.mrb[26].mxu1  ;;  %v4697_v35 = vld [vmem:[%s7004_s5 + $0x110] sm:$0xff]   ;;  %v4698_v50 = vld [vmem:[%s7004_s5 + $0xe8] sm:$0xff]  }
 0x3eb   :  { %v4180_v58 = vpop.f32.mrb[27].mxu1  ;;  %4425 = vmatprep.subr.bf16.mxu0 %v4697_v35 }
 0x3ec   :  { %v2119_v60 = vadd.f32 %v4178_v41, %v6216_v29  ;;  %v4181_v8 = vadd.f32 %v4180_v58, %v4179_v56  ;;  %v2595_v49 = vpop.permute.xlu0 %2594  ;;  %v4699_v41 = vld [vmem:[%s7004_s5 + $0xa8] sm:$0xff]  }
 0x3ed   :  { %2640 = vst.msk [vmem:[#allocation7 + $0x58] sm:$0xff] %vm2491_vm10, %v2595_v49  ;;  %4426 = vmatpush3.bf16.msra.mxu0 %v4697_v35 }
 0x3ee   :  { %v2216_v5 = vadd.f32 %v6296_v18, %v2119_v60  ;;  %v2122_v25 = vadd.f32 %v4181_v8, %v6216_v29  ;;  %v2597_v7 = vpop.permute.xlu1 %2596  ;;  %v4693_v18 = vld [vmem:[%s7004_s5 + $0xd8] sm:$0xff]  }
 0x3ef   :  { %2641 = vst.msk [vmem:[#allocation7 + $0x80] sm:$0xff] %vm2491_vm10, %v2597_v7  ;;  %4268 = vmatprep.subr.bf16.mxu1 %v4693_v18 }
 0x3f0   :  { %v2242_v24 = vmax.f32 %v2216_v5, 0.0  ;;  %v2219_v9 = vadd.f32 %v6300_v19, %v2122_v25  ;;  %v2448_v28 = vpop.permute.xlu0 %2447  ;;  %4269 = vmatpush3.bf16.msra.mxu1 %v4694_v3 }
 0x3f1   :  { %2494 = vst.msk [vmem:[#allocation7 + $0x50] sm:$0xff] %vm2491_vm10, %v2448_v28  ;;  %2802 = vst.msk [vmem:[#allocation7 + $0x18] sm:$0xff] %vm2491_vm10, %v2448_v28  ;;  %4270 = vmatprep.subr.bf16.mxu1 %v4695_v12  ;;  %v4702_v12 = vld [vmem:[%s7004_s5 + $0x118] sm:$0xff]  }
 0x3f2   :  { %2303 = vst.msk [vmem:[#allocation6 + $0xf1] sm:$0xff] %vm2246_vm7, %v2242_v24  ;;  %v2243_v17 = vmax.f32 %v2219_v9, 0.0  ;;  %v2450_v19 = vpop.permute.xlu1 %2449  ;;  %4427 = vmatprep.subr.bf16.mxu0 %v4702_v12 }
 0x3f3   :  { %2495 = vst.msk [vmem:[#allocation7 + $0x78] sm:$0xff] %vm2491_vm10, %v2450_v19  ;;  %2803 = vst.msk [vmem:[#allocation7 + $0x40] sm:$0xff] %vm2491_vm10, %v2450_v19  ;;  %4428 = vmatpush3.bf16.msra.mxu0 %v4702_v12 }
 0x3f4   :  { %2304 = vst.msk [vmem:[#allocation6 + $0x101] sm:$0xff] %vm2246_vm7, %v2243_v17  ;;  %v2855_v27 = vld [vmem:[#allocation7 + $0x58] sm:$0xff]  ;;  %4271 = vmatpush3.bf16.msra.mxu1 %v4696_v39 }
 0x3f5   :  { %4272 = vmatprep.subr.bf16.mxu1 %v4698_v50 }
 0x3f6   :  { %v2860_v30 = vld [vmem:[#allocation7 + $0x80] sm:$0xff] }
 0x3f7   :  { %v2930_v31 = vpack.c.bf16 %v2860_v30, %v2855_v27 }
 0x3f8   :  { %v2854_v34 = vld [vmem:[#allocation7 + $0x50] sm:$0xff]  ;;  %v2847_v36 = vld [vmem:[#allocation7 + $0x18] sm:$0xff]  ;;  %4273 = vmatpush3.bf16.msra.mxu1 %v4699_v41 }
 0x3f9   :  { %v2337_v33 = vld [vmem:[#allocation6 + $0xf0] sm:$0xff]  ;;  %3323 = vmatprep.mubr.bf16.mxu0 %v2930_v31  ;;  %v2338_v38 = vld [vmem:[#allocation6 + $0xf8] sm:$0x3] }
 0x3fa   :  { %2614 = vrot.lane.b32.xlu0 %v2337_v33, %s4743_s30  ;;  %2360 = vst.msk [vmem:[#allocation7 + $0x208] sm:$0xff] %vm2246_vm7, %v2337_v33  ;;  %2775 = vst.msk [vmem:[#allocation7 + $0x1d0] sm:$0xff] %vm2246_vm7, %v2337_v33  ;;  %v2434_v0 = vrot.slane %v2337_v33, 1  ;;  %v2547_v22 = vrot.slane %v2337_v33, 2  ;;  %v2859_v26 = vld [vmem:[#allocation7 + $0x78] sm:$0xff]  ;;  %v2852_v11 = vld [vmem:[#allocation7 + $0x40] sm:$0xff] }
 0x3fb   :  { %v2339_v42 = vld [vmem:[#allocation6 + $0x100] sm:$0xff]  ;;  %v2435_v15 = vrot.slane %v2338_v38, 1  ;;  %v2548_v13 = vrot.slane %v2338_v38, 2  ;;  %v2929_v62 = vpack.c.bf16 %v2859_v26, %v2854_v34  ;;  %v2927_v20 = vpack.c.bf16 %v2852_v11, %v2847_v36  ;;  %v2340_v32 = vld [vmem:[#allocation6 + $0x108] sm:$0x3]  ;;  %v4700_v34 = vld [vmem:[%s7004_s5 + $0xf0] sm:$0xff]  }
 0x3fc   :  { %2616 = vrot.lane.b32.xlu1 %v2339_v42, %s4743_s30  ;;  %2361 = vst.msk [vmem:[#allocation7 + $0x230] sm:$0xff] %vm2246_vm7, %v2339_v42  ;;  %2776 = vst.msk [vmem:[#allocation7 + $0x1f8] sm:$0xff] %vm2246_vm7, %v2339_v42  ;;  %v2437_v47 = vrot.slane %v2339_v42, 1  ;;  %v2550_v37 = vrot.slane %v2339_v42, 2  ;;  %v2438_v54 = vrot.slane %v2340_v32, 1  ;;  %v2551_v52 = vrot.slane %v2340_v32, 2  ;;  %4274 = vmatprep.subr.bf16.mxu1 %v4700_v34 }
 0x3fd   :  { %v2436_v48 = vsel %vm221_vm3, %v2434_v0, %v2435_v15  ;;  %v6533_v51 = vsel %vm335_vm4, %v2547_v22, %v2548_v13  ;;  %3324 = vmatmul.mubr.bf16.gmra.mrb[36].mxu0 %v2929_v62  ;;  %3412 = vmatprep.mubr.bf16.mxu1 %v2927_v20 }
 0x3fe   :  { %2690 = vst.msk [vmem:[#allocation7 + $0x1f0] sm:$0xff] %vm2246_vm7, %v2436_v48  ;;  %2839 = vst.msk [vmem:[#allocation7 + $0x1d8] sm:$0xff] %vm2246_vm7, %v6533_v51  ;;  %2467 = vrot.lane.b32.xlu0 %v6486_v45, %s4743_s30  ;;  %v2599_v56 = vpop.permute.xlu0 %2598  ;;  %v6552_v58 = vsel %vm221_vm3, %v2437_v47, %v2438_v54  ;;  %v6555_v60 = vsel %vm335_vm4, %v2550_v37, %v2551_v52  ;;  %v4703_v47 = vld [vmem:[%s7004_s5 + $0xf8] sm:$0xff]  }
 0x3ff   :  { %2585 = vst.msk [vmem:[#allocation7 + $0x210] sm:$0xff] %vm2246_vm7, %v6533_v51  ;;  %2691 = vst.msk [vmem:[#allocation7 + $0x218] sm:$0xff] %vm2246_vm7, %v6552_v58  ;;  %v4704_v37 = vld [vmem:[%s7004_s5 + $0xb8] sm:$0xff]  }
 0x400   :  { %2642 = vst.msk [vmem:[#allocation7 + $0xa8] sm:$0xff] %vm2491_vm10, %v2599_v56  ;;  %v4182_v8 = vpop.f32.mrb[28].mxu1  ;;  %2469 = vrot.lane.b32.xlu1 %v2436_v48, %s4743_s30  ;;  %v2601_v45 = vpop.permute.xlu1 %2600 }
 0x401   :  { %2840 = vst.msk [vmem:[#allocation7 + $0x200] sm:$0xff] %vm2246_vm7, %v6555_v60  ;;  %2586 = vst.msk [vmem:[#allocation7 + $0x238] sm:$0xff] %vm2246_vm7, %v6555_v60  ;;  %v4183_v49 = vpop.f32.mrb[29].mxu1 }
 0x402   :  { %2643 = vst.msk [vmem:[#allocation7 + $0xd0] sm:$0xff] %vm2491_vm10, %v2601_v45  ;;  %v4184_v4 = vadd.f32 %v4183_v49, %v4182_v8  ;;  %v4185_v5 = vpop.f32.mrb[30].mxu1  ;;  %v2452_v25 = vpop.permute.xlu0 %2451 }
 0x403   :  { %v4186_v7 = vpop.f32.mrb[31].mxu1  ;;  %2496 = vst.msk [vmem:[#allocation7 + $0xa0] sm:$0xff] %vm2491_vm10, %v2452_v25  ;;  %2804 = vst.msk [vmem:[#allocation7 + $0x68] sm:$0xff] %vm2491_vm10, %v2452_v25 }
 0x404   :  { %v2127_v24 = vadd.f32 %v4184_v4, %v6216_v29  ;;  %v4187_v9 = vadd.f32 %v4186_v7, %v4185_v5  ;;  %v2454_v28 = vpop.permute.xlu1 %2453 }
 0x405   :  { %2497 = vst.msk [vmem:[#allocation7 + $0xc8] sm:$0xff] %vm2491_vm10, %v2454_v28  ;;  %2805 = vst.msk [vmem:[#allocation7 + $0x90] sm:$0xff] %vm2491_vm10, %v2454_v28 }
 0x406   :  { %v2224_v17 = vadd.f32 %v6294_v14, %v2127_v24  ;;  %v2130_v18 = vadd.f32 %v4187_v9, %v6216_v29  ;;  %v2603_v3 = vpop.permute.xlu0 %2602  ;;  %v4701_v29 = vld [vmem:[%s7004_s5 + $0xb0] sm:$0xff]   ;;  %v4707_v24 = vld [vmem:[#allocation6 + $0x98] sm:$0x3] }
 0x407   :  { %2644 = vst.msk [vmem:[#allocation7 + $0xf8] sm:$0xff] %vm2491_vm10, %v2603_v3  ;;  %v2865_v30 = vld [vmem:[#allocation7 + $0xa8] sm:$0xff]  ;;  %4275 = vmatpush3.bf16.msra.mxu1 %v4701_v29  ;;  %v2785_v9 = vrot.slane %v4707_v24, 1  ;;  %v2858_v24 = vld [vmem:[#allocation7 + $0x70] sm:$0xff] }
 0x408   :  { %v2244_v19 = vmax.f32 %v2224_v17, 0.0  ;;  %v2227_v27 = vadd.f32 %v6298_v63, %v2130_v18  ;;  %v2605_v31 = vpop.permute.xlu1 %2604  ;;  %4276 = vmatprep.subr.bf16.mxu1 %v4703_v47 }
 0x409   :  { %v2870_v33 = vld [vmem:[#allocation7 + $0xd0] sm:$0xff]  ;;  %2645 = vst.msk [vmem:[#allocation7 + $0x120] sm:$0xff] %vm2491_vm10, %v2605_v31 }
 0x40a   :  { %2305 = vst.msk [vmem:[#allocation6 + $0x111] sm:$0xff] %vm2246_vm7, %v2244_v19  ;;  %v2245_v14 = vmax.f32 %v2227_v27, 0.0  ;;  %v2935_v36 = vpack.c.bf16 %v2870_v33, %v2865_v30  ;;  %v2456_v63 = vpop.permute.xlu0 %2455  ;;  %v2864_v0 = vld [vmem:[#allocation7 + $0xa0] sm:$0xff] }
 0x40b   :  { %2498 = vst.msk [vmem:[#allocation7 + $0xf0] sm:$0xff] %vm2491_vm10, %v2456_v63  ;;  %2806 = vst.msk [vmem:[#allocation7 + $0xb8] sm:$0xff] %vm2491_vm10, %v2456_v63  ;;  %4277 = vmatpush3.bf16.msra.mxu1 %v4704_v37 }
 0x40c   :  { %2306 = vst.msk [vmem:[#allocation6 + $0x121] sm:$0xff] %vm2246_vm7, %v2245_v14  ;;  %3331 = vmatprep.mubr.bf16.mxu0 %v2935_v36  ;;  %v2458_v38 = vpop.permute.xlu1 %2457  ;;  %v2869_v22 = vld [vmem:[#allocation7 + $0xc8] sm:$0xff] }
 0x40d   :  { %2499 = vst.msk [vmem:[#allocation7 + $0x118] sm:$0xff] %vm2491_vm10, %v2458_v38  ;;  %2807 = vst.msk [vmem:[#allocation7 + $0xe0] sm:$0xff] %vm2491_vm10, %v2458_v38  ;;  %v2934_v39 = vpack.c.bf16 %v2869_v22, %v2864_v0 }
 0x40e   :  { %v2875_v42 = vld [vmem:[#allocation7 + $0xf8] sm:$0xff] }
 0x40f   :  { %3332 = vmatmul.mubr.bf16.gmra.mrb[40].mxu0 %v2934_v39 }
 0x410   :  { %v2880_v11 = vld [vmem:[#allocation7 + $0x120] sm:$0xff] }
 0x411   :  { %v2341_v26 = vld [vmem:[#allocation6 + $0x110] sm:$0xff]  ;;  %v2342_v15 = vld [vmem:[#allocation6 + $0x118] sm:$0x3]  ;;  %v2940_v13 = vpack.c.bf16 %v2880_v11, %v2875_v42 }
 0x412   :  { %2618 = vrot.lane.b32.xlu0 %v2341_v26, %s4743_s30  ;;  %2362 = vst.msk [vmem:[#allocation7 + $0x258] sm:$0xff] %vm2246_vm7, %v2341_v26  ;;  %2777 = vst.msk [vmem:[#allocation7 + $0x220] sm:$0xff] %vm2246_vm7, %v2341_v26  ;;  %v2440_v62 = vrot.slane %v2341_v26, 1  ;;  %v2441_v20 = vrot.slane %v2342_v15, 1  ;;  %v2553_v32 = vrot.slane %v2341_v26, 2  ;;  %v2554_v52 = vrot.slane %v2342_v15, 2 }
 0x413   :  { %v2343_v48 = vld [vmem:[#allocation6 + $0x120] sm:$0xff]  ;;  %v2344_v54 = vld [vmem:[#allocation6 + $0x128] sm:$0x3]  ;;  %3339 = vmatprep.mubr.bf16.mxu0 %v2940_v13  ;;  %v2874_v8 = vld [vmem:[#allocation7 + $0xf0] sm:$0xff] }
 0x414   :  { %v2659_v35 = vrot.slane %v2343_v48, 1  ;;  %v2697_v50 = vrot.slane %v2343_v48, 2  ;;  %2620 = vrot.lane.b32.xlu1 %v2343_v48, %s4743_s30  ;;  %2778 = vst.msk [vmem:[#allocation7 + $0x248] sm:$0xff] %vm2246_vm7, %v2343_v48  ;;  %v2442_v41 = vsel %vm221_vm3, %v2440_v62, %v2441_v20  ;;  %v2660_v56 = vrot.slane %v2344_v54, 1  ;;  %v2879_v45 = vld [vmem:[#allocation7 + $0x118] sm:$0xff]  ;;  %v2853_v62 = vld [vmem:[#allocation7 + $0x48] sm:$0xff] }
 0x415   :  { %2692 = vst.msk [vmem:[#allocation7 + $0x240] sm:$0xff] %vm2246_vm7, %v2442_v41  ;;  %v2555_v49 = vsel %vm335_vm4, %v2553_v32, %v2554_v52  ;;  %v2698_v4 = vrot.slane %v2344_v54, 2  ;;  %v2939_v5 = vpack.c.bf16 %v2879_v45, %v2874_v8  ;;  %v2848_v48 = vld [vmem:[#allocation7 + $0x20] sm:$0xff]  ;;  %v2857_v45 = vld [vmem:[#allocation7 + $0x68] sm:$0xff] }
 0x416   :  { %2471 = vrot.lane.b32.xlu0 %v6552_v58, %s4743_s30  ;;  %v2661_v25 = vsel %vm221_vm3, %v2659_v35, %v2660_v56  ;;  %2841 = vst.msk [vmem:[#allocation7 + $0x228] sm:$0xff] %vm2246_vm7, %v2555_v49  ;;  %2587 = vst.msk [vmem:[#allocation7 + $0x260] sm:$0xff] %vm2246_vm7, %v2555_v49  ;;  %v2784_v58 = vrot.slane %v6183_v1, 1  ;;  %v2928_v52 = vpack.c.bf16 %v2853_v62, %v2848_v48  ;;  %v2862_v35 = vld [vmem:[#allocation7 + $0x90] sm:$0xff] }
 0x417   :  { %2693 = vst.msk [vmem:[#allocation7 + $0x268] sm:$0xff] %vm2246_vm7, %v2661_v25  ;;  %v2699_v7 = vsel %vm335_vm4, %v2697_v50, %v2698_v4  ;;  %3340 = vmatmul.mubr.bf16.gmra.mrb[44].mxu0 %v2939_v5  ;;  %v2932_v4 = vpack.c.bf16 %v2862_v35, %v2857_v45  ;;  %v2863_v5 = vld [vmem:[#allocation7 + $0x98] sm:$0xff]  ;;  %vm3687_vm4 = vcmask 519171  }
 0x418   :  { %2473 = vrot.lane.b32.xlu1 %v2442_v41, %s4743_s30  ;;  %2842 = vst.msk [vmem:[#allocation7 + $0x250] sm:$0xff] %vm2246_vm7, %v2699_v7  ;;  %v2923_v35 = vld [vmem:[#allocation7 + $0x278] sm:$0xff] }
 0x41a   :  { %2700 = vrot.lane.b32.xlu0 %v6271_v23, %s4743_s30  ;;  %v2786_v23 = vsel %vm221_vm3, %v2784_v58, %v2785_v9  ;;  %vm4746_vm3 = vmmov 0  }
 0x41c   :  { %2702 = vrot.lane.b32.xlu1 %v6279_v10, %s4743_s30 }
 0x41e   :  { %2704 = vrot.lane.b32.xlu0 %v6317_v44, %s4743_s30 }
 0x420   :  { %2706 = vrot.lane.b32.xlu1 %v6328_v59, %s4743_s30 }
 0x422   :  { %2708 = vrot.lane.b32.xlu0 %v6355_v16, %s4743_s30 }
 0x424   :  { %2710 = vrot.lane.b32.xlu1 %v6365_v43, %s4743_s30 }
 0x426   :  { %2790 = vrot.lane.b32.xlu0 %v6389_v46, %s4743_s30 }
 0x428   :  { %2792 = vrot.lane.b32.xlu1 %v2786_v23, %s4743_s30  ;;  %v2933_v23 = vpack.c.bf16 %v2863_v5, %v2858_v24 }
 0x42a   :  { %2712 = vrot.lane.b32.xlu0 %v6379_v55, %s4743_s30 }
 0x42c   :  { %2714 = vrot.lane.b32.xlu1 %v6392_v57, %s4743_s30 }
 0x42e   :  { %2716 = vrot.lane.b32.xlu0 %v6426_v40, %s4743_s30 }
 0x430   :  { %2718 = vrot.lane.b32.xlu1 %v6435_v6, %s4743_s30 }
 0x432   :  { %v2607_v1 = vpop.permute.xlu0 %2606  ;;  %2720 = vrot.lane.b32.xlu0 %v6471_v21, %s4743_s30 }
 0x433   :  { %2646 = vst.msk [vmem:[#allocation7 + $0x148] sm:$0xff] %vm2491_vm10, %v2607_v1  ;;  %v2868_v1 = vld [vmem:[#allocation7 + $0xc0] sm:$0xff] }
 0x434   :  { %2722 = vrot.lane.b32.xlu1 %v6491_v53, %s4743_s30  ;;  %v2609_v10 = vpop.permute.xlu1 %2608 }
 0x435   :  { %2647 = vst.msk [vmem:[#allocation7 + $0x170] sm:$0xff] %vm2491_vm10, %v2609_v10 }
 0x436   :  { %2724 = vrot.lane.b32.xlu0 %v6533_v51, %s4743_s30  ;;  %v2460_v44 = vpop.permute.xlu0 %2459 }
 0x437   :  { %2500 = vst.msk [vmem:[#allocation7 + $0x140] sm:$0xff] %vm2491_vm10, %v2460_v44 }
 0x438   :  { %2726 = vrot.lane.b32.xlu1 %v6555_v60, %s4743_s30  ;;  %v2462_v59 = vpop.permute.xlu1 %2461 }
 0x439   :  { %2501 = vst.msk [vmem:[#allocation7 + $0x168] sm:$0xff] %vm2491_vm10, %v2462_v59 }
 0x43a   :  { %2794 = vrot.lane.b32.xlu0 %v2661_v25, %s4743_s30  ;;  %v2885_v16 = vld [vmem:[#allocation7 + $0x148] sm:$0xff] }
 0x43b   :  { %v2873_v25 = vld [vmem:[#allocation7 + $0xe8] sm:$0xff] }
 0x43c   :  { %2796 = vrot.lane.b32.xlu1 %v6414_v61, %s4743_s30  ;;  %v2890_v43 = vld [vmem:[#allocation7 + $0x170] sm:$0xff] }
 0x43d   :  { %v2945_v55 = vpack.c.bf16 %v2890_v43, %v2885_v16  ;;  %v2938_v16 = vpack.c.bf16 %v2873_v25, %v2868_v1 }
 0x43e   :  { %2728 = vrot.lane.b32.xlu0 %v2555_v49, %s4743_s30  ;;  %v2884_v46 = vld [vmem:[#allocation7 + $0x140] sm:$0xff] }
 0x43f   :  { %3347 = vmatprep.mubr.bf16.mxu0 %v2945_v55 }
 0x440   :  { %2730 = vrot.lane.b32.xlu1 %v2699_v7, %s4743_s30  ;;  %v2889_v57 = vld [vmem:[#allocation7 + $0x168] sm:$0xff] }
 0x441   :  { %v2944_v40 = vpack.c.bf16 %v2889_v57, %v2884_v46  ;;  %v2872_v46 = vld [vmem:[#allocation7 + $0xe0] sm:$0xff] }
 0x443   :  { %3348 = vmatmul.mubr.bf16.gmra.mrb[48].mxu0 %v2944_v40 }
 0x455   :  { %v2611_v6 = vpop.permute.xlu0 %2610 }
 0x456   :  { %2648 = vst.msk [vmem:[#allocation7 + $0x198] sm:$0xff] %vm2491_vm10, %v2611_v6 }
 0x457   :  { %v2613_v21 = vpop.permute.xlu1 %2612 }
 0x458   :  { %2649 = vst.msk [vmem:[#allocation7 + $0x1c0] sm:$0xff] %vm2491_vm10, %v2613_v21 }
 0x459   :  { %v2464_v53 = vpop.permute.xlu0 %2463 }
 0x45a   :  { %2502 = vst.msk [vmem:[#allocation7 + $0x190] sm:$0xff] %vm2491_vm10, %v2464_v53  ;;  %2810 = vst.msk [vmem:[#allocation7 + $0x158] sm:$0xff] %vm2491_vm10, %v2464_v53  ;;  %v2867_v53 = vld [vmem:[#allocation7 + $0xb8] sm:$0xff] }
 0x45b   :  { %v2466_v61 = vpop.permute.xlu1 %2465 }
 0x45c   :  { %2503 = vst.msk [vmem:[#allocation7 + $0x1b8] sm:$0xff] %vm2491_vm10, %v2466_v61  ;;  %2811 = vst.msk [vmem:[#allocation7 + $0x180] sm:$0xff] %vm2491_vm10, %v2466_v61 }
 0x45d   :  { %v2895_v51 = vld [vmem:[#allocation7 + $0x198] sm:$0xff] }
 0x45f   :  { %v2900_v60 = vld [vmem:[#allocation7 + $0x1c0] sm:$0xff] }
 0x460   :  { %v2950_v28 = vpack.c.bf16 %v2900_v60, %v2895_v51  ;;  %v2937_v51 = vpack.c.bf16 %v2872_v46, %v2867_v53  ;;  %v2878_v60 = vld [vmem:[#allocation7 + $0x110] sm:$0xff] }
 0x461   :  { %v2894_v17 = vld [vmem:[#allocation7 + $0x190] sm:$0xff] }
 0x462   :  { %3355 = vmatprep.mubr.bf16.mxu0 %v2950_v28  ;;  %v2883_v28 = vld [vmem:[#allocation7 + $0x138] sm:$0xff] }
 0x463   :  { %v2899_v18 = vld [vmem:[#allocation7 + $0x1b8] sm:$0xff]  ;;  %v2892_v62 = vld [vmem:[#allocation7 + $0x180] sm:$0xff] }
 0x464   :  { %v2949_v3 = vpack.c.bf16 %v2899_v18, %v2894_v17  ;;  %v2893_v17 = vld [vmem:[#allocation7 + $0x188] sm:$0xff] }
 0x466   :  { %3356 = vmatmul.mubr.bf16.gmra.mrb[52].mxu0 %v2949_v3  ;;  %v2943_v3 = vpack.c.bf16 %v2883_v28, %v2878_v60 }
 0x46c   :  { %v2615_v19 = vpop.permute.xlu0 %2614 }
 0x46d   :  { %2650 = vst.msk [vmem:[#allocation7 + $0x1e8] sm:$0xff] %vm2491_vm10, %v2615_v19  ;;  %v2888_v19 = vld [vmem:[#allocation7 + $0x160] sm:$0xff] }
 0x46e   :  { %v2617_v27 = vpop.permute.xlu1 %2616 }
 0x46f   :  { %2651 = vst.msk [vmem:[#allocation7 + $0x210] sm:$0xff] %vm2491_vm10, %v2617_v27 }
 0x470   :  { %v2468_v30 = vpop.permute.xlu0 %2467 }
 0x471   :  { %2504 = vst.msk [vmem:[#allocation7 + $0x1e0] sm:$0xff] %vm2491_vm10, %v2468_v30  ;;  %2812 = vst.msk [vmem:[#allocation7 + $0x1a8] sm:$0xff] %vm2491_vm10, %v2468_v30  ;;  %v2948_v30 = vpack.c.bf16 %v2893_v17, %v2888_v19 }
 0x472   :  { %v2470_v31 = vpop.permute.xlu1 %2469 }
 0x473   :  { %2505 = vst.msk [vmem:[#allocation7 + $0x208] sm:$0xff] %vm2491_vm10, %v2470_v31  ;;  %2813 = vst.msk [vmem:[#allocation7 + $0x1d0] sm:$0xff] %vm2491_vm10, %v2470_v31 }
 0x474   :  { %v2905_v33 = vld [vmem:[#allocation7 + $0x1e8] sm:$0xff] }
 0x476   :  { %v2910_v34 = vld [vmem:[#allocation7 + $0x210] sm:$0xff] }
 0x477   :  { %v2955_v29 = vpack.c.bf16 %v2910_v34, %v2905_v33 }
 0x478   :  { %v2904_v14 = vld [vmem:[#allocation7 + $0x1e0] sm:$0xff] }
 0x479   :  { %3363 = vmatprep.mubr.bf16.mxu0 %v2955_v29 }
 0x47a   :  { %v2909_v36 = vld [vmem:[#allocation7 + $0x208] sm:$0xff] }
 0x47b   :  { %v2954_v63 = vpack.c.bf16 %v2909_v36, %v2904_v14 }
 0x47d   :  { %3364 = vmatmul.mubr.bf16.gmra.mrb[56].mxu0 %v2954_v63 }
 0x484   :  { %v2619_v38 = vpop.permute.xlu0 %2618 }
 0x485   :  { %2652 = vst.msk [vmem:[#allocation7 + $0x238] sm:$0xff] %vm2491_vm10, %v2619_v38 }
 0x486   :  { %v2621_v0 = vpop.permute.xlu1 %2620 }
 0x487   :  { %2653 = vst.msk [vmem:[#allocation7 + $0x260] sm:$0xff] %vm2491_vm10, %v2621_v0  ;;  %v2903_v0 = vld [vmem:[#allocation7 + $0x1d8] sm:$0xff] }
 0x488   :  { %v2472_v22 = vpop.permute.xlu0 %2471 }
 0x489   :  { %2506 = vst.msk [vmem:[#allocation7 + $0x230] sm:$0xff] %vm2491_vm10, %v2472_v22  ;;  %2814 = vst.msk [vmem:[#allocation7 + $0x1f8] sm:$0xff] %vm2491_vm10, %v2472_v22  ;;  %v2913_v22 = vld [vmem:[#allocation7 + $0x228] sm:$0xff] }
 0x48a   :  { %v2474_v12 = vpop.permute.xlu1 %2473 }
 0x48b   :  { %2507 = vst.msk [vmem:[#allocation7 + $0x258] sm:$0xff] %vm2491_vm10, %v2474_v12  ;;  %2815 = vst.msk [vmem:[#allocation7 + $0x220] sm:$0xff] %vm2491_vm10, %v2474_v12 }
 0x48c   :  { %v2701_v39 = vpop.permute.xlu0 %2700  ;;  %v2915_v26 = vld [vmem:[#allocation7 + $0x238] sm:$0xff] }
 0x48d   :  { %2748 = vst.msk [vmem:[#allocation7 + $0x10] sm:$0xff] %vm2491_vm10, %v2701_v39  ;;  %v2898_v39 = vld [vmem:[#allocation7 + $0x1b0] sm:$0xff] }
 0x48e   :  { %v2703_v42 = vpop.permute.xlu1 %2702  ;;  %v2920_v11 = vld [vmem:[#allocation7 + $0x260] sm:$0xff] }
 0x48f   :  { %2749 = vst.msk [vmem:[#allocation7 + $0x38] sm:$0xff] %vm2491_vm10, %v2703_v42  ;;  %v2960_v15 = vpack.c.bf16 %v2920_v11, %v2915_v26  ;;  %v2953_v42 = vpack.c.bf16 %v2903_v0, %v2898_v39  ;;  %v2908_v26 = vld [vmem:[#allocation7 + $0x200] sm:$0xff] }
 0x490   :  { %v2705_v13 = vpop.permute.xlu0 %2704  ;;  %v2914_v32 = vld [vmem:[#allocation7 + $0x230] sm:$0xff] }
 0x491   :  { %2750 = vst.msk [vmem:[#allocation7 + $0x60] sm:$0xff] %vm2491_vm10, %v2705_v13  ;;  %3371 = vmatprep.mubr.bf16.mxu0 %v2960_v15  ;;  %v2958_v15 = vpack.c.bf16 %v2913_v22, %v2908_v26 }
 0x492   :  { %v2707_v20 = vpop.permute.xlu1 %2706  ;;  %v2919_v47 = vld [vmem:[#allocation7 + $0x258] sm:$0xff] }
 0x493   :  { %2751 = vst.msk [vmem:[#allocation7 + $0x88] sm:$0xff] %vm2491_vm10, %v2707_v20  ;;  %v2959_v37 = vpack.c.bf16 %v2919_v47, %v2914_v32 }
 0x494   :  { %v2709_v54 = vpop.permute.xlu0 %2708  ;;  %v2846_v41 = vld [vmem:[#allocation7 + $0x10] sm:$0xff] }
 0x495   :  { %2752 = vst.msk [vmem:[#allocation7 + $0xb0] sm:$0xff] %vm2491_vm10, %v2709_v54  ;;  %3372 = vmatmul.mubr.bf16.gmra.mrb[60].mxu0 %v2959_v37  ;;  %v2887_v37 = vld [vmem:[#allocation7 + $0x158] sm:$0xff] }
 0x496   :  { %v2711_v50 = vpop.permute.xlu1 %2710  ;;  %4429 = vmatprep.mubr.msk.bf16.mxu0 %vm2246_vm7, %v2928_v52  ;;  %v2851_v56 = vld [vmem:[#allocation7 + $0x38] sm:$0xff]  ;;  %v2947_v54 = vpack.c.bf16 %v2892_v62, %v2887_v37  ;;  %v2918_v52 = vld [vmem:[#allocation7 + $0x250] sm:$0xff] }
 0x497   :  { %2753 = vst.msk [vmem:[#allocation7 + $0xd8] sm:$0xff] %vm2491_vm10, %v2711_v50  ;;  %v2926_v8 = vpack.c.bf16 %v2851_v56, %v2846_v41  ;;  %v2963_v41 = vpack.c.bf16 %v2923_v35, %v2918_v52 }
 0x498   :  { %v2791_v49 = vpop.permute.xlu0 %2790  ;;  %v2856_v6 = vld [vmem:[#allocation7 + $0x60] sm:$0xff] }
 0x499   :  { %2808 = vst.msk [vmem:[#allocation7 + $0x108] sm:$0xff] %vm2491_vm10, %v2791_v49  ;;  %3413 = vmatmul.mubr.bf16.vlgmr.msra.gmra.mrb[32].mxu1 %v2926_v8  ;;  %v2902_v8 = vld [vmem:[#allocation7 + $0x1d0] sm:$0xff] }
 0x49a   :  { %v2793_v7 = vpop.permute.xlu1 %2792  ;;  %v4214_v58 = vpop.f32.mrb[32].mxu0  ;;  %3420 = vmatprep.mubr.bf16.mxu1 %v2932_v4  ;;  %v2861_v43 = vld [vmem:[#allocation7 + $0x88] sm:$0xff] }
 0x49b   :  { %2809 = vst.msk [vmem:[#allocation7 + $0x130] sm:$0xff] %vm2491_vm10, %v2793_v7  ;;  %v4215_v9 = vpop.f32.mrb[33].mxu0  ;;  %v2931_v21 = vpack.c.bf16 %v2861_v43, %v2856_v6  ;;  %v2897_v4 = vld [vmem:[#allocation7 + $0x1a8] sm:$0xff]  ;;  %v2912_v7 = vld [vmem:[#allocation7 + $0x220] sm:$0xff] }
 0x49c   :  { %v6683_v10 = vadd.f32 %v4215_v9, %v4214_v58  ;;  %v2713_v44 = vpop.permute.xlu0 %2712  ;;  %v4217_v59 = vpop.f32.mrb[34].mxu0  ;;  %v2866_v29 = vld [vmem:[#allocation7 + $0xb0] sm:$0xff]  ;;  %v2952_v5 = vpack.c.bf16 %v2902_v8, %v2897_v4  ;;  %v2907_v9 = vld [vmem:[#allocation7 + $0x1f8] sm:$0xff] }
 0x49d   :  { %2754 = vst.msk [vmem:[#allocation7 + $0x100] sm:$0xff] %vm2491_vm10, %v2713_v44  ;;  %v4218_v55 = vpop.f32.mrb[35].mxu0  ;;  %4430 = vmatmul.mubr.msk.bf16.vlgmr.msra.gmra.mrb[64].mxu0 %vm2246_vm7, %v2933_v23  ;;  %v2957_v23 = vpack.c.bf16 %v2912_v7, %v2907_v9 }
 0x49e   :  { %v6687_v57 = vadd.f32 %v4218_v55, %v4217_v59  ;;  %v2715_v40 = vpop.permute.xlu1 %2714  ;;  %4433 = vmatprep.mubr.msk.bf16.mxu0 %vm2246_vm7, %v2938_v16  ;;  %v2871_v31 = vld [vmem:[#allocation7 + $0xd8] sm:$0xff] }
 0x49f   :  { %2755 = vst.msk [vmem:[#allocation7 + $0x128] sm:$0xff] %vm2491_vm10, %v2715_v40  ;;  %v2936_v14 = vpack.c.bf16 %v2871_v31, %v2866_v29 }
 0x4a0   :  { %v2717_v61 = vpop.permute.xlu0 %2716  ;;  %v2877_v36 = vld [vmem:[#allocation7 + $0x108] sm:$0xff] }
 0x4a1   :  { %2756 = vst.msk [vmem:[#allocation7 + $0x150] sm:$0xff] %vm2491_vm10, %v2717_v61  ;;  %3421 = vmatmul.mubr.bf16.gmra.mrb[36].mxu1 %v2931_v21 }
 0x4a2   :  { %v2719_v18 = vpop.permute.xlu1 %2718  ;;  %3428 = vmatprep.mubr.bf16.mxu1 %v2937_v51  ;;  %v2882_v33 = vld [vmem:[#allocation7 + $0x130] sm:$0xff] }
 0x4a3   :  { %2757 = vst.msk [vmem:[#allocation7 + $0x178] sm:$0xff] %vm2491_vm10, %v2719_v18  ;;  %v2942_v38 = vpack.c.bf16 %v2882_v33, %v2877_v36 }
 0x4a4   :  { %v2721_v27 = vpop.permute.xlu0 %2720  ;;  %v2876_v32 = vld [vmem:[#allocation7 + $0x100] sm:$0xff] }
 0x4a5   :  { %2758 = vst.msk [vmem:[#allocation7 + $0x1a0] sm:$0xff] %vm2491_vm10, %v2721_v27  ;;  %4434 = vmatmul.mubr.msk.bf16.gmra.mrb[68].mxu0 %vm2246_vm7, %v2943_v3 }
 0x4a6   :  { %v2723_v34 = vpop.permute.xlu1 %2722  ;;  %4437 = vmatprep.mubr.msk.bf16.mxu0 %vm2246_vm7, %v2948_v30  ;;  %v2881_v13 = vld [vmem:[#allocation7 + $0x128] sm:$0xff] }
 0x4a7   :  { %2759 = vst.msk [vmem:[#allocation7 + $0x1c8] sm:$0xff] %vm2491_vm10, %v2723_v34  ;;  %v2941_v47 = vpack.c.bf16 %v2881_v13, %v2876_v32  ;;  %v4747_v13 = vmov 0  }
 0x4a8   :  { %v2725_v63 = vpop.permute.xlu0 %2724  ;;  %v2886_v45 = vld [vmem:[#allocation7 + $0x150] sm:$0xff]  ;;  %4648 = vset.pattern.permute.xlu0 %v4747_v13 }
 0x4a9   :  { %2760 = vst.msk [vmem:[#allocation7 + $0x1f0] sm:$0xff] %vm2491_vm10, %v2725_v63  ;;  %3429 = vmatmul.mubr.bf16.gmra.mrb[40].mxu1 %v2936_v14  ;;  %v4745_v63 = vmov 0.0|0.0  }
 0x4aa   :  { %v2727_v12 = vpop.permute.xlu1 %2726  ;;  %3436 = vmatprep.mubr.bf16.mxu1 %v2942_v38  ;;  %v2891_v56 = vld [vmem:[#allocation7 + $0x178] sm:$0xff]  ;;  %4534 = vmatprep.subr.bf16.mxu1 %v4745_v63 }
 0x4ab   :  { %2761 = vst.msk [vmem:[#allocation7 + $0x218] sm:$0xff] %vm2491_vm10, %v2727_v12  ;;  %v2946_v49 = vpack.c.bf16 %v2891_v56, %v2886_v45  ;;  %4558 = vmatprep.subr.bf16.mxu0 %v4745_v63 }
 0x4ac   :  { %v2795_v11 = vpop.permute.xlu0 %2794  ;;  %v2896_v58 = vld [vmem:[#allocation7 + $0x1a0] sm:$0xff] }
 0x4ad   :  { %2816 = vst.msk [vmem:[#allocation7 + $0x248] sm:$0xff] %vm2491_vm10, %v2795_v11  ;;  %4438 = vmatmul.mubr.msk.bf16.gmra.mrb[72].mxu0 %vm2246_vm7, %v2953_v42  ;;  %v3591_v11 = vld [vmem:[%s7007_s8] sm:$0x1f] }
 0x4ae   :  { %v2797_v20 = vpop.permute.xlu1 %2796  ;;  %4441 = vmatprep.mubr.msk.bf16.mxu0 %vm2246_vm7, %v2958_v15  ;;  %v2901_v25 = vld [vmem:[#allocation7 + $0x1c8] sm:$0xff]  ;;  %3594 = vperm.xlu0 %4648, %v3591_v11  }
 0x4af   :  { %2817 = vst.msk [vmem:[#allocation7 + $0x270] sm:$0xff] %vm2491_vm10, %v2797_v20  ;;  %v2951_v24 = vpack.c.bf16 %v2901_v25, %v2896_v58 }
 0x4b0   :  { %v2729_v48 = vpop.permute.xlu0 %2728  ;;  %v2906_v59 = vld [vmem:[#allocation7 + $0x1f0] sm:$0xff] }
 0x4b1   :  { %2762 = vst.msk [vmem:[#allocation7 + $0x240] sm:$0xff] %vm2491_vm10, %v2729_v48  ;;  %3437 = vmatmul.mubr.bf16.gmra.mrb[44].mxu1 %v2941_v47 }
 0x4b2   :  { %v2731_v50 = vpop.permute.xlu1 %2730  ;;  %3444 = vmatprep.mubr.bf16.mxu1 %v2947_v54  ;;  %v2911_v1 = vld [vmem:[#allocation7 + $0x218] sm:$0xff] }
 0x4b3   :  { %2763 = vst.msk [vmem:[#allocation7 + $0x268] sm:$0xff] %vm2491_vm10, %v2731_v50  ;;  %v2956_v16 = vpack.c.bf16 %v2911_v1, %v2906_v59 }
 0x4b4   :  { %v2917_v43 = vld [vmem:[#allocation7 + $0x248] sm:$0xff] }
 0x4b5   :  { %4442 = vmatmul.mubr.msk.bf16.gmra.mrb[76].mxu0 %vm2246_vm7, %v2963_v41 }
 0x4b6   :  { %v2922_v44 = vld [vmem:[#allocation7 + $0x270] sm:$0xff] }
 0x4b7   :  { %v2962_v55 = vpack.c.bf16 %v2922_v44, %v2917_v43 }
 0x4b8   :  { %v2916_v40 = vld [vmem:[#allocation7 + $0x240] sm:$0xff] }
 0x4b9   :  { %3445 = vmatmul.mubr.bf16.gmra.mrb[48].mxu1 %v2946_v49  ;;  %v6742_v49 = vld [vmem:[%s7005_s6] ss:$0 sm:$0xff] }
 0x4ba   :  { %3452 = vmatprep.mubr.bf16.mxu1 %v2952_v5  ;;  %v2921_v46 = vld [vmem:[#allocation7 + $0x268] sm:$0xff]  ;;  %v3318_v58 = vadd.f32 %v6683_v10, %v6742_v49  ;;  %v3321_v1 = vadd.f32 %v6687_v57, %v6742_v49 }
 0x4bb   :  { %v2961_v6 = vpack.c.bf16 %v2921_v46, %v2916_v40 }
 0x4c1   :  { %3453 = vmatmul.mubr.bf16.gmra.mrb[52].mxu1 %v2951_v24 }
 0x4c2   :  { %3460 = vmatprep.mubr.bf16.mxu1 %v2957_v23 }
 0x4c9   :  { %3461 = vmatmul.mubr.bf16.gmra.mrb[56].mxu1 %v2956_v16 }
 0x4ca   :  { %3468 = vmatprep.mubr.bf16.mxu1 %v2962_v55 }
 0x4d0   :  { %v4220_v21 = vpop.f32.mrb[36].mxu0 }
 0x4d1   :  { %3469 = vmatmul.mubr.bf16.gmra.mrb[60].mxu1 %v2961_v6  ;;  %v4221_v53 = vpop.f32.mrb[37].mxu0 }
 0x4d2   :  { %v6706_v61 = vadd.f32 %v4221_v53, %v4220_v21  ;;  %v4223_v51 = vpop.f32.mrb[38].mxu0  ;;  %4477 = vmatprep.mubr.msk.f32.mxu1 %vm4746_vm3, %v4732_v2 }
 0x4d3   :  { %v4224_v60 = vpop.f32.mrb[39].mxu0 }
 0x4d4   :  { %v6708_v28 = vadd.f32 %v4224_v60, %v4223_v51  ;;  %v3326_v10 = vadd.f32 %v6706_v61, %v6742_v49 }
 0x4d6   :  { %v3329_v57 = vadd.f32 %v6708_v28, %v6742_v49 }
 0x4e2   :  { %v4226_v17 = vpop.f32.mrb[40].mxu0 }
 0x4e3   :  { %v4227_v18 = vpop.f32.mrb[41].mxu0 }
 0x4e4   :  { %v6710_v3 = vadd.f32 %v4227_v18, %v4226_v17  ;;  %v4229_v19 = vpop.f32.mrb[42].mxu0 }
 0x4e5   :  { %v4230_v27 = vpop.f32.mrb[43].mxu0 }
 0x4e6   :  { %v6712_v30 = vadd.f32 %v4230_v27, %v4229_v19  ;;  %v3334_v13 = vadd.f32 %v6710_v3, %v6742_v49 }
 0x4ea   :  { %v4232_v31 = vpop.f32.mrb[44].mxu0 }
 0x4eb   :  { %v4233_v33 = vpop.f32.mrb[45].mxu0 }
 0x4ec   :  { %v6714_v34 = vadd.f32 %v4233_v33, %v4232_v31  ;;  %v4235_v29 = vpop.f32.mrb[46].mxu0 }
 0x4ed   :  { %v4236_v14 = vpop.f32.mrb[47].mxu0 }
 0x4ee   :  { %v6716_v36 = vadd.f32 %v4236_v14, %v4235_v29 }
 0x516   :  { %v4238_v38 = vpop.f32.mrb[48].mxu0 }
 0x517   :  { %v4239_v0 = vpop.f32.mrb[49].mxu0 }
 0x518   :  { %v6720_v22 = vadd.f32 %v4239_v0, %v4238_v38  ;;  %v4241_v12 = vpop.f32.mrb[50].mxu0 }
 0x519   :  { %v4242_v39 = vpop.f32.mrb[51].mxu0 }
 0x51a   :  { %v6722_v42 = vadd.f32 %v4242_v39, %v4241_v12 }
 0x539   :  { %v4244_v26 = vpop.f32.mrb[52].mxu0 }
 0x53a   :  { %v4245_v15 = vpop.f32.mrb[53].mxu0 }
 0x53b   :  { %v6729_v62 = vadd.f32 %v4245_v15, %v4244_v26  ;;  %v4247_v20 = vpop.f32.mrb[54].mxu0 }
 0x53c   :  { %v4248_v32 = vpop.f32.mrb[55].mxu0 }
 0x53d   :  { %v6731_v47 = vadd.f32 %v4248_v32, %v4247_v20 }
 0x550   :  { %v4250_v37 = vpop.f32.mrb[56].mxu0 }
 0x551   :  { %v4251_v48 = vpop.f32.mrb[57].mxu0 }
 0x552   :  { %v6733_v54 = vadd.f32 %v4251_v48, %v4250_v37  ;;  %v4253_v52 = vpop.f32.mrb[58].mxu0 }
 0x553   :  { %v4254_v35 = vpop.f32.mrb[59].mxu0 }
 0x554   :  { %v6735_v50 = vadd.f32 %v4254_v35, %v4253_v52  ;;  %v3337_v52 = vadd.f32 %v6712_v30, %v6742_v49 }
 0x568   :  { %v4256_v41 = vpop.f32.mrb[60].mxu0 }
 0x569   :  { %v4257_v56 = vpop.f32.mrb[61].mxu0 }
 0x56a   :  { %v6737_v8 = vadd.f32 %v4257_v56, %v4256_v41  ;;  %v4259_v45 = vpop.f32.mrb[62].mxu0 }
 0x56b   :  { %v4260_v4 = vpop.f32.mrb[63].mxu0 }
 0x56c   :  { %v6744_v5 = vadd.f32 %v4260_v4, %v4259_v45  ;;  %v4278_v25 = vpop.f32.mrb[32].mxu1 }
 0x56d   :  { %v4279_v7 = vpop.f32.mrb[33].mxu1 }
 0x56e   :  { %v4280_v24 = vadd.f32 %v4279_v7, %v4278_v25  ;;  %v4281_v9 = vpop.f32.mrb[34].mxu1 }
 0x56f   :  { %v4282_v23 = vpop.f32.mrb[35].mxu1 }
 0x570   :  { %v4283_v44 = vadd.f32 %v4282_v23, %v4281_v9  ;;  %v4431_v59 = vpop.f32.mrb[64].mxu0  ;;  %v3415_v16 = vadd.f32 %v4280_v24, %v3318_v58 }
 0x571   :  { %v3511_v43 = vpop.f32.mrb[65].mxu0 }
 0x572   :  { %v3512_v55 = vadd.f32 %v3511_v43, %v3415_v16  ;;  %v4432_v46 = vpop.f32.mrb[66].mxu0  ;;  %v3418_v40 = vadd.f32 %v4283_v44, %v3321_v1  ;;  %v3342_v1 = vadd.f32 %v6714_v34, %v6742_v49 }
 0x573   :  { %v3514_v6 = vpop.f32.mrb[67].mxu0 }
 0x574   :  { %v3515_v21 = vadd.f32 %v3514_v6, %v3418_v40  ;;  %v4284_v53 = vpop.f32.mrb[36].mxu1  ;;  %v3574_v60 = vmax.f32 %v3512_v55, 0.0  ;;  %v3345_v55 = vadd.f32 %v6716_v36, %v6742_v49  ;;  %v3350_v36 = vadd.f32 %v6720_v22, %v6742_v49 }
 0x575   :  { %v4285_v51 = vpop.f32.mrb[37].mxu1  ;;  %v3358_v22 = vadd.f32 %v6729_v62, %v6742_v49  ;;  %v3366_v62 = vadd.f32 %v6733_v54, %v6742_v49  ;;  %v3374_v54 = vadd.f32 %v6737_v8, %v6742_v49 }
 0x576   :  { %v3575_v17 = vmax.f32 %v3515_v21, 0.0  ;;  %v4286_v18 = vadd.f32 %v4285_v51, %v4284_v53  ;;  %v4287_v19 = vpop.f32.mrb[38].mxu1 }
 0x577   :  { %v4288_v27 = vpop.f32.mrb[39].mxu1 }
 0x578   :  { %v4535_v31 = vpack.c.bf16 %v3575_v17, %v3574_v60  ;;  %v3423_v33 = vadd.f32 %v4286_v18, %v3326_v10  ;;  %v4289_v29 = vadd.f32 %v4288_v27, %v4287_v19  ;;  %v4435_v14 = vpop.f32.mrb[68].mxu0 }
 0x579   :  { %v3527_v38 = vpop.f32.mrb[69].mxu0 }
 0x57a   :  { %v3520_v0 = vadd.f32 %v4431_v59, %v3423_v33  ;;  %v3426_v12 = vadd.f32 %v4289_v29, %v3329_v57  ;;  %v4436_v39 = vpop.f32.mrb[70].mxu0  ;;  %4536 = vmatpush3.bf16.xpose.msra.mxu1 %v4535_v31 }
 0x57b   :  { %v3530_v26 = vpop.f32.mrb[71].mxu0  ;;  %4537 = vmatprep.subr.bf16.mxu1 %v4745_v63 }
 0x57c   :  { %v3523_v61 = vadd.f32 %v4432_v46, %v3426_v12  ;;  %v4290_v11 = vpop.f32.mrb[40].mxu1  ;;  %v3576_v20 = vmax.f32 %v3520_v0, 0.0 }
 0x57d   :  { %v4291_v15 = vpop.f32.mrb[41].mxu1 }
 0x57e   :  { %v3577_v28 = vmax.f32 %v3523_v61, 0.0  ;;  %v4292_v32 = vadd.f32 %v4291_v15, %v4290_v11  ;;  %v4293_v37 = vpop.f32.mrb[42].mxu1 }
 0x57f   :  { %v4294_v48 = vpop.f32.mrb[43].mxu1 }
 0x580   :  { %v4538_v35 = vpack.c.bf16 %v3577_v28, %v3576_v20  ;;  %v3431_v41 = vadd.f32 %v4292_v32, %v3334_v13  ;;  %v4295_v56 = vadd.f32 %v4294_v48, %v4293_v37  ;;  %v4439_v45 = vpop.f32.mrb[72].mxu0 }
 0x581   :  { %v3543_v4 = vpop.f32.mrb[73].mxu0 }
 0x582   :  { %v3528_v25 = vadd.f32 %v3527_v38, %v3431_v41  ;;  %v3434_v7 = vadd.f32 %v4295_v56, %v3337_v52  ;;  %v4440_v58 = vpop.f32.mrb[74].mxu0  ;;  %4539 = vmatpush3.bf16.xpose.msra.mxu1 %v4538_v35 }
 0x583   :  { %v3546_v24 = vpop.f32.mrb[75].mxu0  ;;  %4540 = vmatprep.subr.bf16.mxu1 %v4745_v63 }
 0x584   :  { %v3531_v3 = vadd.f32 %v3530_v26, %v3434_v7  ;;  %v4296_v9 = vpop.f32.mrb[44].mxu1  ;;  %v3578_v44 = vmax.f32 %v3528_v25, 0.0 }
 0x585   :  { %v4297_v23 = vpop.f32.mrb[45].mxu1 }
 0x586   :  { %v3579_v30 = vmax.f32 %v3531_v3, 0.0  ;;  %v4298_v59 = vadd.f32 %v4297_v23, %v4296_v9  ;;  %v4299_v16 = vpop.f32.mrb[46].mxu1 }
 0x587   :  { %v4300_v43 = vpop.f32.mrb[47].mxu1 }
 0x588   :  { %v4541_v46 = vpack.c.bf16 %v3579_v30, %v3578_v44  ;;  %v3439_v40 = vadd.f32 %v4298_v59, %v3342_v1  ;;  %v4301_v6 = vadd.f32 %v4300_v43, %v4299_v16  ;;  %v6764_v21 = vpop.f32.mrb[76].mxu0 }
 0x589   :  { %v3559_v53 = vpop.f32.mrb[77].mxu0 }
 0x58a   :  { %v3536_v51 = vadd.f32 %v4435_v14, %v3439_v40  ;;  %v3442_v10 = vadd.f32 %v4301_v6, %v3345_v55  ;;  %v6766_v60 = vpop.f32.mrb[78].mxu0  ;;  %4542 = vmatpush3.bf16.xpose.msra.mxu1 %v4541_v46  ;;  %v3353_v14 = vadd.f32 %v6722_v42, %v6742_v49  ;;  %v3361_v42 = vadd.f32 %v6731_v47, %v6742_v49 }
 0x58b   :  { %v3562_v34 = vpop.f32.mrb[79].mxu0  ;;  %4543 = vmatprep.subr.bf16.mxu1 %v4745_v63  ;;  %v3369_v47 = vadd.f32 %v6735_v50, %v6742_v49  ;;  %v3377_v50 = vadd.f32 %v6744_v5, %v6742_v49  ;;  %v3590_v49 = vld [vmem:[%s7006_s7] sm:$0x1f] }
 0x58c   :  { %v3539_v17 = vadd.f32 %v4436_v39, %v3442_v10  ;;  %v4302_v18 = vpop.f32.mrb[48].mxu1  ;;  %v3580_v27 = vmax.f32 %v3536_v51, 0.0  ;;  %v3707_v5 = vld [vmem:[%s7008_s9] sm:$0xff] }
 0x58d   :  { %v4303_v19 = vpop.f32.mrb[49].mxu1 }
 0x58e   :  { %v3581_v57 = vmax.f32 %v3539_v17, 0.0  ;;  %v4304_v31 = vadd.f32 %v4303_v19, %v4302_v18  ;;  %v4305_v33 = vpop.f32.mrb[50].mxu1 }
 0x58f   :  { %v4306_v29 = vpop.f32.mrb[51].mxu1 }
 0x590   :  { %v4544_v38 = vpack.c.bf16 %v3581_v57, %v3580_v27  ;;  %v3447_v0 = vadd.f32 %v4304_v31, %v3350_v36  ;;  %v4307_v12 = vadd.f32 %v4306_v29, %v4305_v33  ;;  %v3710_v33 = vld [vmem:[%s7008_s9 + $0x18] sm:$0xff]  ;;  %v3822_v29 = vld [vmem:[%s7010_s11] sm:$0xff] }
 0x592   :  { %v3544_v26 = vadd.f32 %v3543_v4, %v3447_v0  ;;  %v3450_v61 = vadd.f32 %v4307_v12, %v3353_v14  ;;  %4545 = vmatpush3.bf16.xpose.msra.mxu1 %v4544_v38  ;;  %v3823_v14 = vld [vmem:[%s7010_s11 + $0x8] sm:$0xff]  ;;  %v3824_v0 = vld [vmem:[%s7010_s11 + $0x10] sm:$0xff] }
 0x593   :  { %4546 = vmatprep.subr.bf16.mxu1 %v4745_v63  ;;  %v4595_v38 = vpack.c.bf16 %v3823_v14, %v3822_v29 }
 0x594   :  { %v3547_v39 = vadd.f32 %v3546_v24, %v3450_v61  ;;  %v4308_v11 = vpop.f32.mrb[52].mxu1  ;;  %v3582_v13 = vmax.f32 %v3544_v26, 0.0  ;;  %v3825_v26 = vld [vmem:[%s7010_s11 + $0x18] sm:$0xff]  ;;  %v3711_v61 = vld [vmem:[%s7008_s9 + $0x20] sm:$0xff] }
 0x595   :  { %v4309_v15 = vpop.f32.mrb[53].mxu1 }
 0x596   :  { %v3583_v20 = vmax.f32 %v3547_v39, 0.0  ;;  %v4310_v28 = vadd.f32 %v4309_v15, %v4308_v11  ;;  %v4311_v32 = vpop.f32.mrb[54].mxu1  ;;  %v3712_v39 = vld [vmem:[%s7008_s9 + $0x28] sm:$0xff]  ;;  %v4598_v11 = vpack.c.bf16 %v3825_v26, %v3824_v0  ;;  %v3826_v15 = vld [vmem:[%s7010_s11 + $0x20] sm:$0xff]  ;;  %v3730_v0 = vld [vmem:[%s7008_s9 + $0xb8] sm:$0xff] }
 0x597   :  { %v4312_v37 = vpop.f32.mrb[55].mxu1 }
 0x598   :  { %v4547_v48 = vpack.c.bf16 %v3583_v20, %v3582_v13  ;;  %v3455_v52 = vadd.f32 %v4310_v28, %v3358_v22  ;;  %v4313_v35 = vadd.f32 %v4312_v37, %v4311_v32  ;;  %v3827_v22 = vld [vmem:[%s7010_s11 + $0x28] sm:$0xff]  ;;  %v4565_v13 = vpack.c.bf16 %v3712_v39, %v3711_v61  ;;  %v3713_v20 = vld [vmem:[%s7008_s9 + $0x30] sm:$0xff]  ;;  %v3714_v28 = vld [vmem:[%s7008_s9 + $0x38] sm:$0xff] }
 0x599   :  { %v4601_v32 = vpack.c.bf16 %v3827_v22, %v3826_v15  ;;  %v3828_v37 = vld [vmem:[%s7010_s11 + $0x30] sm:$0xff] }
 0x59a   :  { %v3552_v41 = vadd.f32 %v4439_v45, %v3455_v52  ;;  %v3458_v56 = vadd.f32 %v4313_v35, %v3361_v42  ;;  %4548 = vmatpush3.bf16.xpose.msra.mxu1 %v4547_v48  ;;  %v3829_v42 = vld [vmem:[%s7010_s11 + $0x38] sm:$0xff]  ;;  %v4568_v48 = vpack.c.bf16 %v3714_v28, %v3713_v20  ;;  %v3715_v52 = vld [vmem:[%s7008_s9 + $0x40] sm:$0xff]  ;;  %v3716_v35 = vld [vmem:[%s7008_s9 + $0x48] sm:$0xff] }
 0x59b   :  { %4549 = vmatprep.subr.bf16.mxu1 %v4745_v63  ;;  %v3916_v28 = vld [vmem:[%s7012_s13] sm:$0xff] }
 0x59c   :  { %v3555_v4 = vadd.f32 %v4440_v58, %v3458_v56  ;;  %v4314_v25 = vpop.f32.mrb[56].mxu1  ;;  %v3584_v24 = vmax.f32 %v3552_v41, 0.0  ;;  %v4604_v41 = vpack.c.bf16 %v3829_v42, %v3828_v37  ;;  %v3830_v56 = vld [vmem:[%s7010_s11 + $0x40] sm:$0xff] }
 0x59d   :  { %v4315_v7 = vpop.f32.mrb[57].mxu1 }
 0x59e   :  { %v3585_v3 = vmax.f32 %v3555_v4, 0.0  ;;  %v4316_v9 = vadd.f32 %v4315_v7, %v4314_v25  ;;  %v4317_v23 = vpop.f32.mrb[58].mxu1  ;;  %v3831_v4 = vld [vmem:[%s7010_s11 + $0x48] sm:$0xff]  ;;  %v4571_v25 = vpack.c.bf16 %v3716_v35, %v3715_v52  ;;  %v3717_v7 = vld [vmem:[%s7008_s9 + $0x50] sm:$0xff]  ;;  %v3919_v35 = vld [vmem:[%s7012_s13 + $0x18] sm:$0xff] }
 0x59f   :  { %v4318_v1 = vpop.f32.mrb[59].mxu1  ;;  %v3918_v52 = vld [vmem:[%s7012_s13 + $0x10] sm:$0xff] }
 0x5a0   :  { %v4550_v44 = vpack.c.bf16 %v3585_v3, %v3584_v24  ;;  %v3463_v45 = vadd.f32 %v4316_v9, %v3366_v62  ;;  %v4319_v30 = vadd.f32 %v4318_v1, %v4317_v23  ;;  %v3718_v62 = vld [vmem:[%s7008_s9 + $0x58] sm:$0xff]  ;;  %v4607_v24 = vpack.c.bf16 %v3831_v4, %v3830_v56  ;;  %v3832_v3 = vld [vmem:[%s7010_s11 + $0x50] sm:$0xff]  ;;  %v3719_v1 = vld [vmem:[%s7008_s9 + $0x60] sm:$0xff] }
 0x5a1   :  { %v3833_v9 = vld [vmem:[%s7010_s11 + $0x58] sm:$0xff]  ;;  %v4574_v23 = vpack.c.bf16 %v3718_v62, %v3717_v7  ;;  %v3920_v56 = vld [vmem:[%s7012_s13 + $0x20] sm:$0xff]  ;;  %v3921_v4 = vld [vmem:[%s7012_s13 + $0x28] sm:$0xff] }
 0x5a2   :  { %v3560_v59 = vadd.f32 %v3559_v53, %v3463_v45  ;;  %v3466_v16 = vadd.f32 %v4319_v30, %v3369_v47  ;;  %4551 = vmatpush3.bf16.xpose.msra.mxu1 %v4550_v44  ;;  %v3720_v47 = vld [vmem:[%s7008_s9 + $0x68] sm:$0xff]  ;;  %v4610_v44 = vpack.c.bf16 %v3833_v9, %v3832_v3  ;;  %v4748_v30 = vmov 1983009808   ;;  %v3923_v7 = vld [vmem:[%s7012_s13 + $0x38] sm:$0xff] }
 0x5a3   :  { %4552 = vmatprep.subr.bf16.mxu1 %v4745_v63  ;;  %v4577_v45 = vpack.c.bf16 %v3720_v47, %v3719_v1 }
 0x5a4   :  { %v3563_v58 = vadd.f32 %v3562_v34, %v3466_v16  ;;  %v4320_v43 = vpop.f32.mrb[60].mxu1  ;;  %v3586_v46 = vmax.f32 %v3560_v59, 0.0  ;;  %v3671_v59 = vunpack.c.l.s4 %v4748_v30  ;;  %v3673_v16 = vlaneseq }
 0x5a5   :  { %v4321_v55 = vpop.f32.mrb[61].mxu1 }
 0x5a6   :  { %v3587_v40 = vmax.f32 %v3563_v58, 0.0  ;;  %v4322_v6 = vadd.f32 %v4321_v55, %v4320_v43  ;;  %v4323_v51 = vpop.f32.mrb[62].mxu1  ;;  %v3721_v58 = vld [vmem:[%s7008_s9 + $0x70] sm:$0xff]  ;;  %v3722_v43 = vld [vmem:[%s7008_s9 + $0x78] sm:$0xff]  ;;  %v3834_v55 = vld [vmem:[%s7010_s11 + $0x60] sm:$0xff] }
 0x5a7   :  { %v4324_v10 = vpop.f32.mrb[63].mxu1 }
 0x5a8   :  { %v4553_v17 = vpack.c.bf16 %v3587_v40, %v3586_v46  ;;  %v3471_v53 = vadd.f32 %v4322_v6, %v3374_v54  ;;  %v4325_v18 = vadd.f32 %v4324_v10, %v4323_v51  ;;  %v4580_v54 = vpack.c.bf16 %v3722_v43, %v3721_v58  ;;  %v3835_v46 = vld [vmem:[%s7010_s11 + $0x68] sm:$0xff]  ;;  %v3723_v10 = vld [vmem:[%s7008_s9 + $0x80] sm:$0xff] }
 0x5a9   :  { %v4613_v40 = vpack.c.bf16 %v3835_v46, %v3834_v55  ;;  %v3672_v6 = vunpack.c.0.s8 %v3671_v59  ;;  %v3674_v51 = vshrl.u32 %v3673_v16, 7 }
 0x5aa   :  { %v3568_v19 = vadd.f32 %v6764_v21, %v3471_v53  ;;  %v3474_v36 = vadd.f32 %v4325_v18, %v3377_v50  ;;  %4554 = vmatpush3.bf16.xpose.msra.mxu1 %v4553_v17  ;;  %v3708_v21 = vld [vmem:[%s7008_s9 + $0x8] sm:$0xff]  ;;  %v3836_v17 = vld [vmem:[%s7010_s11 + $0x70] sm:$0xff]  ;;  %v3595_v53 = vpop.permute.xlu0 %3594 }
 0x5ab   :  { %4555 = vmatprep.subr.bf16.mxu1 %v4745_v63  ;;  %v4559_v31 = vpack.c.bf16 %v3708_v21, %v3707_v5  ;;  %v3724_v50 = vld [vmem:[%s7008_s9 + $0x88] sm:$0xff]  ;;  %v3675_v5 = vsub.s32 %v3672_v6, %v3674_v51 }
 0x5ac   :  { %v3571_v34 = vadd.f32 %v6766_v60, %v3474_v36  ;;  %v3588_v8 = vmax.f32 %v3568_v19, 0.0  ;;  %v3709_v60 = vld [vmem:[%s7008_s9 + $0x10] sm:$0xff]  ;;  %v4583_v18 = vpack.c.bf16 %v3724_v50, %v3723_v10  ;;  %v3837_v19 = vld [vmem:[%s7010_s11 + $0x78] sm:$0xff] }
 0x5ad   :  { %4560 = vmatpush1.bf16.msra.mxu0 %v4559_v31  ;;  %v4562_v12 = vpack.c.bf16 %v3710_v33, %v3709_v60  ;;  %v4616_v36 = vpack.c.bf16 %v3837_v19, %v3836_v17  ;;  %v3727_v60 = vld [vmem:[%s7008_s9 + $0xa0] sm:$0xff]  ;;  %v3728_v31 = vld [vmem:[%s7008_s9 + $0xa8] sm:$0xff] }
 0x5ae   :  { %v3589_v27 = vmax.f32 %v3571_v34, 0.0  ;;  %4561 = vmatprep.subr.bf16.mxu0 %v4745_v63  ;;  %v4589_v29 = vpack.c.bf16 %v3728_v31, %v3727_v60 }
 0x5b0   :  { %v4556_v57 = vpack.c.bf16 %v3589_v27, %v3588_v8  ;;  %v3725_v8 = vld [vmem:[%s7008_s9 + $0x90] sm:$0xff]  ;;  %v3726_v27 = vld [vmem:[%s7008_s9 + $0x98] sm:$0xff] }
 0x5b1   :  { %4563 = vmatpush1.bf16.msra.mxu0 %v4562_v12  ;;  %v4586_v21 = vpack.c.bf16 %v3726_v27, %v3725_v8 }
 0x5b2   :  { %4557 = vmatpush3.bf16.xpose.msra.mxu1 %v4556_v57  ;;  %4564 = vmatprep.subr.bf16.mxu0 %v4745_v63 }
 0x5b3   :  { %4594 = vmatprep.subr.bf16.mxu1 %v4745_v63 }
 0x5b5   :  { %4566 = vmatpush1.bf16.msra.mxu0 %v4565_v13 }
 0x5b6   :  { %4567 = vmatprep.subr.bf16.mxu0 %v4745_v63 }
 0x5b9   :  { %4478 = vmatmul.mubr.f32.vlgmr.msra.gmra.mrb[64].mxu1 %v3590_v49  ;;  %4569 = vmatpush1.bf16.msra.mxu0 %v4568_v48 }
 0x5ba   :  { %4512 = vmatprep.mubr.msk.f32.mxu1 %vm4746_vm3, %v4732_v2  ;;  %4596 = vmatpush3.bf16.msra.mxu1 %v4595_v38  ;;  %v3729_v38 = vld [vmem:[%s7008_s9 + $0xb0] sm:$0xff] }
 0x5bb   :  { %4597 = vmatprep.subr.bf16.mxu1 %v4745_v63  ;;  %4570 = vmatprep.subr.bf16.mxu0 %v4745_v63  ;;  %v4592_v61 = vpack.c.bf16 %v3730_v0, %v3729_v38 }
 0x5bd   :  { %4572 = vmatpush1.bf16.msra.mxu0 %v4571_v25  ;;  %v4625_v25 = vpack.c.bf16 %v3921_v4, %v3920_v56 }
 0x5be   :  { %4599 = vmatpush3.bf16.msra.mxu1 %v4598_v11  ;;  %4573 = vmatprep.subr.bf16.mxu0 %v4745_v63 }
 0x5bf   :  { %4600 = vmatprep.subr.bf16.mxu1 %v4745_v63 }
 0x5c1   :  { %4575 = vmatpush1.bf16.msra.mxu0 %v4574_v23 }
 0x5c2   :  { %4602 = vmatpush3.bf16.msra.mxu1 %v4601_v32  ;;  %4576 = vmatprep.subr.bf16.mxu0 %v4745_v63  ;;  %v3917_v32 = vld [vmem:[%s7012_s13 + $0x8] sm:$0xff] }
 0x5c3   :  { %4603 = vmatprep.subr.bf16.mxu1 %v4745_v63  ;;  %v4619_v48 = vpack.c.bf16 %v3917_v32, %v3916_v28 }
 0x5c5   :  { %4578 = vmatpush1.bf16.msra.mxu0 %v4577_v45 }
 0x5c6   :  { %4605 = vmatpush3.bf16.msra.mxu1 %v4604_v41  ;;  %4579 = vmatprep.subr.bf16.mxu0 %v4745_v63  ;;  %v4622_v41 = vpack.c.bf16 %v3919_v35, %v3918_v52 }
 0x5c7   :  { %4606 = vmatprep.subr.bf16.mxu1 %v4745_v63 }
 0x5c9   :  { %4581 = vmatpush1.bf16.msra.mxu0 %v4580_v54 }
 0x5ca   :  { %4608 = vmatpush3.bf16.msra.mxu1 %v4607_v24  ;;  %4582 = vmatprep.subr.bf16.mxu0 %v4745_v63  ;;  %v4111_v24 = vld [vmem:[%s7011_s12] ss:$0 sm:$0xff] }
 0x5cb   :  { %4609 = vmatprep.subr.bf16.mxu1 %v4745_v63 }
 0x5cd   :  { %4584 = vmatpush1.bf16.msra.mxu0 %v4583_v18 }
 0x5ce   :  { %4611 = vmatpush3.bf16.msra.mxu1 %v4610_v44  ;;  %4585 = vmatprep.subr.bf16.mxu0 %v4745_v63 }
 0x5cf   :  { %4612 = vmatprep.subr.bf16.mxu1 %v4745_v63 }
 0x5d1   :  { %4587 = vmatpush1.bf16.msra.mxu0 %v4586_v21 }
 0x5d2   :  { %4614 = vmatpush3.bf16.msra.mxu1 %v4613_v40  ;;  %4588 = vmatprep.subr.bf16.mxu0 %v4745_v63 }
 0x5d3   :  { %4615 = vmatprep.subr.bf16.mxu1 %v4745_v63 }
 0x5d5   :  { %4590 = vmatpush1.bf16.msra.mxu0 %v4589_v29 }
 0x5d6   :  { %4617 = vmatpush3.bf16.msra.mxu1 %v4616_v36  ;;  %4591 = vmatprep.subr.bf16.mxu0 %v4745_v63 }
 0x5d9   :  { %4593 = vmatpush1.bf16.msra.mxu0 %v4592_v61 }
 0x5da   :  { %4618 = vmatprep.subr.bf16.mxu0 %v4745_v63 }
 0x68c   :  { %v3663_v34 = vpop.f32.mrb[64].mxu1 }
 0x68d   :  { %v3664_v57 = vadd.f32 %v3663_v34, %v3595_v53  ;;  %v4479_v49 = vpop.f32.mrb[65].mxu1 }
 0x68f   :  { %v3667_v33 = vmax.f32 %v3664_v57, 0.0 }
 0x691   :  { %3668 = vst.msk [vmem:[#allocation8] sm:$0x1] %vm2258_vm8, %v3667_v33  ;;  %3689 = vrot.lane.b32.xlu1 %v3667_v33, %s4743_s30  ;;  %v3676_v14 = vrot.slane %v3667_v33, %v3675_v5 }
 0x692   :  { %3688 = vst.msk [vmem:[#allocation9 - $0x3] sm:$0x8] %vm3687_vm4, %v3667_v33 }
 0x693   :  { %v3677_v12 = vrot.slane %v3676_v14, 7  ;;  %v3684_v26 = vcombine.high %v3676_v14, %v3676_v14 }
 0x695   :  { %3694 = vrot.lane.b32.xlu1 %v3676_v14, %s4743_s30  ;;  %v3678_v39 = vrot.slane %v3677_v12, 2  ;;  %3686 = vst.msk [vmem:[#allocation8 + $0x2] sm:$0x1] %vm2258_vm8, %v3684_v26 }
 0x697   :  { %3679 = vrot.lane.b32.xlu0 %v3678_v39, %s4743_s30 }
 0x699   :  { %3700 = vrot.lane.b32.xlu1 %v3684_v26, %s4743_s30 }
 0x703   :  { %v3690_v11 = vpop.permute.xlu1 %3689 }
 0x704   :  { %3693 = vst.msk [vmem:[#allocation9 - $0x4] sm:$0x10] %vm3692_vm11, %v3690_v11 }
 0x705   :  { %3704 = vst.msk [vmem:[#allocation9 - $0x2] sm:$0x8] %vm3687_vm4, %v3690_v11 }
 0x706   :  { %3705 = vst.msk [vmem:[#allocation9 - $0x3] sm:$0x10] %vm3692_vm11, %v3667_v33 }
 0x707   :  { %v3695_v15 = vpop.permute.xlu1 %3694 }
 0x708   :  { %3697 = vst.msk [vmem:[#allocation8 + $0x1] sm:$0x1] %vm2258_vm8, %v3695_v15 }
 0x709   :  { %3699 = vst.msk [vmem:[#allocation8 + $0x1] sm:$0x1] %vm3682_vm12, %v3678_v39  ;;  %v3680_v22 = vpop.permute.xlu0 %3679 }
 0x70a   :  { %3683 = vst.msk [vmem:[#allocation8] sm:$0x1] %vm3682_vm12, %v3680_v22 }
 0x70b   :  { %v3701_v13 = vpop.permute.xlu1 %3700 }
 0x70c   :  { %3703 = vst.msk [vmem:[#allocation8 + $0x3] sm:$0x1] %vm2258_vm8, %v3701_v13 }
 0x70d   :  { %v3821_v20 = vld [vmem:[#allocation9] sm:$0x3] }
 0x70e   :  { %4513 = vmatmul.mubr.f32.vlgmr.msra.gmra.mrb[66].mxu1 %v3821_v20 }
 0x713   :  { %v4109_v37 = vld.sshfl [vmem:[#allocation8] sm:$0x33 pattern:$0x76325410] }
 0x714   :  { %v3746_v42 = vcombine.high %v4109_v37, %v4109_v37 }
 0x716   :  { %4110 = vmatprep.mubr.msk.f32.mxu0 %vm2246_vm7, %v3746_v42 }
 0x717   :  { %3815 = vmatmul.mubr.f32.vlgmr.msra.gmra.mrb[80].mxu0 %v4109_v37 }
 0x718   :  { %4620 = vmatpush3.bf16.msra.mxu0 %v4619_v48  ;;  %4531 = vmatprep.mubr.msk.f32.mxu0 %vm4746_vm3, %v4732_v2  ;;  %v3922_v2 = vld [vmem:[%s7012_s13 + $0x30] sm:$0xff]  ;;  %s4749_s13 = smov [#allocation11]  }
 0x719   :  { %4621 = vmatprep.subr.bf16.mxu0 %v4745_v63  ;;  %v4628_v62 = vpack.c.bf16 %v3923_v7, %v3922_v2  ;;  %s4013_s18 = sshll.u32 %s4749_s13, 4  ;;  %s4014_s18 = int_to_ptr.vmem [resolvable:$true] %s4013_s18 }
 0x71a   :  { %s4708_s22 = scalar_lea.vmem %s4014_s18, 32  ;;  %p4713_p1 = scmp.lt.s32.totalorder %s4014_s18, %s4014_s18 }
 0x71b   :  { %p4709_p0 = scmp.ne.s32.totalorder %s4014_s18, %s4708_s22  ;;  %p4714_p2 = scmp.lt.s32.totalorder %s4708_s22, %s4708_s22 }
 0x71c   :  { %4623 = vmatpush3.bf16.msra.mxu0 %v4622_v41 }
 0x71d   :  { %4624 = vmatprep.subr.bf16.mxu0 %v4745_v63  ;;  %p4715_p3 = por %p4714_p2, %p4713_p1 }
 0x71f   :  { %p4716_p4 = pnand %p4715_p3, %p4709_p0 }
 0x720   :  { %4626 = vmatpush3.bf16.msra.mxu0 %v4625_v25 }
 0x721   :  { %4627 = vmatprep.subr.bf16.mxu0 %v4745_v63  ;;  %v4108_v63 = vld [vmem:[%s7009_s10] ss:$0 sm:$0xff] }
 0x724   :  { %4629 = vmatpush3.bf16.msra.mxu0 %v4628_v62 }
 0x7e1   :  { %v3911_v3 = vpop.f32.mrb[66].mxu1 }
 0x7e2   :  { %v3912_v9 = vadd.f32 %v4111_v24, %v3911_v3  ;;  %v4514_v23 = vpop.f32.mrb[67].mxu1 }
 0x7e4   :  { %v3915_v1 = vmax.f32 %v3912_v9, 0.0 }
 0x7e6   :  { %4532 = vmatmul.mubr.msk.f32.vlgmr.msra.gmra.mrb[82].mxu0 %vm2246_vm7, %v3915_v1 }
 0x7ea   :  { %v3816_v47 = vpop.f32.mrb[80].mxu0 }
 0x7eb   :  { %v3817_v44 = vadd.f32 %v4108_v63, %v3816_v47  ;;  %v3818_v45 = vpop.f32.mrb[81].mxu0 }
 0x7ed   :  { %3820 = vst.msk [vmem:[#allocation11] sm:$0x3] %vm2248_vm9, %v3817_v44 }
 0x7ee   :  { %4719 = shalt.err (!%p4716_p4)
}
 0x7ef   :  { %s4720_s26 = scalar_lea.hbm %s7014_s15, 32 }
 0x7f0   :  { %p4721_p5 = scmp.ne.s32.totalorder %s7014_s15, %s4720_s26  ;;  %p4724_p6 = scmp.lt.u32.totalorder %s4720_s26, %s7014_s15 }
 0x7f2   :  { %p4726_p7 = pnand %p4724_p6, %p4721_p5 }
 0x7f4   :  { %4729 = shalt.err (!%p4726_p7)
}
 0x7f5   :  { %4016 = dma.vmem_to_hbm [thread:$0]  %s4014_s18, 32, %s7014_s15, [#allocation12]   ;;  %v4112_v30 = vld [vmem:[#allocation10] ss:$0 sm:$0xff]  ;;  %vm4005_vm13 = vcmask 1024  }
 0x8b9   :  { %v4000_v59 = vpop.f32.mrb[82].mxu0 }
 0x8ba   :  { %v4001_v16 = vadd.f32 %v4112_v30, %v4000_v59  ;;  %v4533_v58 = vpop.f32.mrb[83].mxu0 }
 0x8bc   :  { %4705 = vtanh.f32 %v4001_v16 }
 0x8c6   :  { %v4706_v43 = vpop.eup %4705 }
 0x8c7   :  { %4006 = vst.msk [vmem:[%s7015_s16] sm:$0x3] %vm4005_vm13, %v4706_v43 }
 0x8c8   :  { %4730 = dma.done.wait [#allocation12], 32  }
 0x8c9   :  { %4731 = vsyncadd [#allocation12], 4294967264 }
 0x8ca   :  { %4024 = vsyncpa [#allocation12], 1 }

</bundles_post_ra>
